<compile_context>
chip_gen: v5e
topology: v5e:2x2
jax: 0.10.0
libtpu: 0.0.40
codegen_flags: <defaults>
</compile_context>

<pallas_src>
import jax
import jax.numpy as jnp
from jax import lax
from jax.experimental import pallas as pl
from jax.experimental.pallas import tpu as pltpu
from functools import partial


# ------------------------------ Pallas kernels -------------------------------

def _maxpool2_kernel(x_ref, o_ref):
    """2x2 stride-2 max pool of one NHWC image: (1,H,W,C) -> (1,H/2,W/2,C)."""
    h2, w2 = o_ref.shape[1], o_ref.shape[2]
    x = x_ref[0].astype(jnp.float32)                  # (H, W, C)
    x = x.reshape(h2, 2, x.shape[1], x.shape[2])      # split leading dim (row pairs)
    rmax = jnp.max(x, axis=1)                         # (H/2, W, C)
    for j in range(w2):                               # static unroll over column pairs
        col = jnp.maximum(rmax[:, 2 * j, :], rmax[:, 2 * j + 1, :])   # (H/2, C)
        o_ref[0, :, j, :] = col.astype(o_ref.dtype)


def _conv3x3_kernel(x_ref, w_ref, b_ref, o_ref, *, oh, ow):
    """3x3 'same' conv, one padded NHWC image x one 128-wide Cout tile.

    x: (1, oh+2, ow+2, cin) bf16   (already zero-padded by 1)
    w: (3, 3, cin, tn)      bf16
    b: (1, tn)              f32
    o: (1, oh, ow, tn)      f32
    im2col is fused: the nine taps are shifted-window MXU matmuls, f32 acc.
    """
    cin = x_ref.shape[3]
    tn = o_ref.shape[3]
    w = w_ref[...]                                    # (3, 3, cin, tn)
    acc = jnp.zeros((oh * ow, tn), jnp.float32)
    for kh in range(3):
        for kw in range(3):
            a = x_ref[0, kh:kh + oh, kw:kw + ow, :]   # (oh, ow, cin) bf16
            a = a.reshape(oh * ow, cin)               # ow is a multiple of 8 here
            acc = acc + jnp.dot(a, w[kh, kw],
                                preferred_element_type=jnp.float32)
    acc = acc + b_ref[...]                            # (1, tn) broadcast
    o_ref[...] = acc.reshape(1, oh, ow, tn).astype(o_ref.dtype)


def _bn_stats_kernel(x_ref, sum_ref, sq_ref):
    """Per-channel sum / sum-of-squares, accumulated over row tiles of (M, C)."""
    @pl.when(pl.program_id(0) == 0)
    def _():
        sum_ref[...] = jnp.zeros_like(sum_ref)
        sq_ref[...] = jnp.zeros_like(sq_ref)
    x = x_ref[...].astype(jnp.float32)
    sum_ref[...] += jnp.sum(x, axis=0, keepdims=True)
    sq_ref[...] += jnp.sum(x * x, axis=0, keepdims=True)


def _bn_apply_relu_kernel(x_ref, scale_ref, shift_ref, o_ref):
    """Per-channel affine (precomputed scale/shift) + ReLU, row-tiled, f32 math."""
    y = x_ref[...].astype(jnp.float32) * scale_ref[...] + shift_ref[...]
    o_ref[...] = jnp.maximum(y, 0.0).astype(o_ref.dtype)


# ------------------------------ Pallas wrappers -------------------------------

def maxpool2(x):
    N, H, W, C = x.shape
    h2, w2 = H // 2, W // 2
    return pl.pallas_call(
        _maxpool2_kernel,
        out_shape=jax.ShapeDtypeStruct((N, h2, w2, C), x.dtype),
        grid=(N,),
        in_specs=[pl.BlockSpec((1, H, W, C), lambda n: (n, 0, 0, 0))],
        out_specs=pl.BlockSpec((1, h2, w2, C), lambda n: (n, 0, 0, 0)),
        compiler_params=pltpu.CompilerParams(dimension_semantics=("parallel",)),
    )(x)


def conv3x3_same(x_pad, w, b):
    """x_pad: (N, OH+2, OW+2, Cin) bf16; w: (3,3,Cin,CP) bf16; b: (CP,) f32."""
    N, Hp, Wp, Cin = x_pad.shape
    CP = w.shape[-1]
    OH, OW = Hp - 2, Wp - 2
    TN = min(CP, 128)                                 # Cout tile (lane width)
    return pl.pallas_call(
        partial(_conv3x3_kernel, oh=OH, ow=OW),
        out_shape=jax.ShapeDtypeStruct((N, OH, OW, CP), jnp.float32),
        grid=(N, CP // TN),
        in_specs=[
            pl.BlockSpec((1, Hp, Wp, Cin), lambda n, j: (n, 0, 0, 0)),
            pl.BlockSpec((3, 3, Cin, TN), lambda n, j: (0, 0, 0, j)),
            pl.BlockSpec((1, TN), lambda n, j: (0, j)),
        ],
        out_specs=pl.BlockSpec((1, OH, OW, TN), lambda n, j: (n, 0, 0, j)),
        compiler_params=pltpu.CompilerParams(
            dimension_semantics=("parallel", "parallel")),
    )(x_pad, w, b.reshape(1, CP).astype(jnp.float32))


def _row_tile(m, cap=512):
    """Largest tile <= cap that divides m (multiple of 8), preferring >=2 steps."""
    cands = [t for t in (512, 256, 128, 64, 32, 16, 8) if t <= cap and m % t == 0]
    if not cands:
        return m
    if cands[0] == m and len(cands) > 1:
        return cands[1]                               # >=2 grid steps (v7x dual TC)
    return cands[0]


def batchnorm_relu(x, gamma, beta, *, eps=1e-5, out_dtype=jnp.float32):
    """Training-mode BatchNorm2d (+ ReLU) on NHWC, channel-last / lane-dense."""
    N, H, W, C = x.shape
    M = N * H * W
    x2 = x.reshape(M, C)
    TR = _row_tile(M)
    grid = (M // TR,)

    s, ss = pl.pallas_call(
        _bn_stats_kernel,
        out_shape=(jax.ShapeDtypeStruct((1, C), jnp.float32),
                   jax.ShapeDtypeStruct((1, C), jnp.float32)),
        grid=grid,
        in_specs=[pl.BlockSpec((TR, C), lambda i: (i, 0))],
        out_specs=(pl.BlockSpec((1, C), lambda i: (0, 0)),
                   pl.BlockSpec((1, C), lambda i: (0, 0))),
        compiler_params=pltpu.CompilerParams(dimension_semantics=("arbitrary",)),
    )(x2)

    mean = s / M
    var = ss / M - mean * mean                        # biased var (PyTorch BN)
    scale = gamma.reshape(1, C) * lax.rsqrt(var + eps)
    shift = beta.reshape(1, C) - mean * scale

    y = pl.pallas_call(
        _bn_apply_relu_kernel,
        out_shape=jax.ShapeDtypeStruct((M, C), out_dtype),
        grid=grid,
        in_specs=[pl.BlockSpec((TR, C), lambda i: (i, 0)),
                  pl.BlockSpec((1, C), lambda i: (0, 0)),
                  pl.BlockSpec((1, C), lambda i: (0, 0))],
        out_specs=pl.BlockSpec((TR, C), lambda i: (i, 0)),
        compiler_params=pltpu.CompilerParams(dimension_semantics=("parallel",)),
    )(x2, scale.astype(jnp.float32), shift.astype(jnp.float32))
    return y.reshape(N, H, W, C)


# -------------------------------- forward pass --------------------------------

def down_forward(params, x, *, out_ch, eps=1e-5):
    """x: NCHW f32 -> NCHW f32 of shape (N, out_ch, H/2, W/2)."""
    # NCHW -> NHWC; bf16 GEMM operands (accumulation stays f32 in-kernel).
    h = jnp.transpose(x, (0, 2, 3, 1)).astype(jnp.bfloat16)
    h = maxpool2(h)                                            # (N, H/2, W/2, Cin)

    # conv1 3x3 p1 -> BN -> ReLU   (Cin -> CP, padded Cout)
    hp = jnp.pad(h, ((0, 0), (1, 1), (1, 1), (0, 0)))
    h = conv3x3_same(hp, params["w1"], params["b1"])
    h = batchnorm_relu(h, params["g1"], params["bt1"], eps=eps,
                       out_dtype=jnp.bfloat16)

    # conv2 3x3 p1 -> BN -> ReLU   (CP -> CP)
    hp = jnp.pad(h, ((0, 0), (1, 1), (1, 1), (0, 0)))
    h = conv3x3_same(hp, params["w2"], params["b2"])
    h = batchnorm_relu(h, params["g2"], params["bt2"], eps=eps,
                       out_dtype=jnp.float32)

    h = h[..., :out_ch]                                        # drop channel padding
    return jnp.transpose(h, (0, 3, 1, 2))                      # back to NCHW


# ------------------------------ parameter setup --------------------------------

def _conv_init(key, cout, cin, k):
    kw, kb = jax.random.split(key)
    fan_in = cin * k * k
    bound = 1.0 / jnp.sqrt(jnp.float32(fan_in))
    w = jax.random.uniform(kw, (cout, cin, k, k), jnp.float32, -bound, bound)
    b = jax.random.uniform(kb, (cout,), jnp.float32, -bound, bound)
    return w, b


def init_down_params(key, in_ch, out_ch):
    k1, k2 = jax.random.split(key)
    w1, b1 = _conv_init(k1, out_ch, in_ch, 3)
    w2, b2 = _conv_init(k2, out_ch, out_ch, 3)
    g = jnp.ones((out_ch,), jnp.float32)
    bt = jnp.zeros((out_ch,), jnp.float32)
    return dict(w1=w1, b1=b1, w2=w2, b2=b2, g1=g, bt1=bt, g2=g, bt2=bt)


def prepare_params(raw, in_ch, out_ch, cp):
    """PyTorch OIHW f32 -> HWIO bf16; Cout (and conv2 Cin) zero-padded to cp."""
    def prep(w, b, cin_pad):
        w = jnp.transpose(w, (2, 3, 1, 0))                     # (3,3,Cin,Cout)
        w = jnp.pad(w, ((0, 0), (0, 0),
                        (0, cin_pad - w.shape[2]), (0, cp - w.shape[3])))
        return w.astype(jnp.bfloat16), jnp.pad(b, (0, cp - b.shape[0]))
    W1, B1 = prep(raw["w1"], raw["b1"], in_ch)
    W2, B2 = prep(raw["w2"], raw["b2"], cp)
    pad_c = (0, cp - out_ch)
    return dict(
        w1=W1, b1=B1, w2=W2, b2=B2,
        g1=jnp.pad(raw["g1"], pad_c, constant_values=1.0),
        bt1=jnp.pad(raw["bt1"], pad_c),
        g2=jnp.pad(raw["g2"], pad_c, constant_values=1.0),
        bt2=jnp.pad(raw["bt2"], pad_c),
    )


# ----------------------------- pure-JAX reference ------------------------------

def reference_down(raw, x, eps=1e-5):
    N, C, H, W = x.shape
    h = x.reshape(N, C, H // 2, 2, W // 2, 2).max(axis=(3, 5))   # MaxPool2d(2)

    def conv_bn_relu(h, w, b, g, bt):
        h = lax.conv_general_dilated(
            h, w, window_strides=(1, 1), padding=((1, 1), (1, 1)),
            dimension_numbers=("NCHW", "OIHW", "NCHW"))
        h = h + b[None, :, None, None]
        mean = jnp.mean(h, axis=(0, 2, 3), keepdims=True)
        var = jnp.mean((h - mean) ** 2, axis=(0, 2, 3), keepdims=True)
        h = (h - mean) * lax.rsqrt(var + eps)
        h = h * g[None, :, None, None] + bt[None, :, None, None]
        return jnp.maximum(h, 0.0)

    h = conv_bn_relu(h, raw["w1"], raw["b1"], raw["g1"], raw["bt1"])
    h = conv_bn_relu(h, raw["w2"], raw["b2"], raw["g2"], raw["bt2"])
    return h


# ------------------------------------ main -------------------------------------

if __name__ == "__main__":
    IN_CH, OUT_CH = 4, 32
    CP = 128                                  # out-channel count padded to lane width
    key = jax.random.PRNGKey(0)
    kx, kp = jax.random.split(key)
    x = jax.random.normal(kx, (2, IN_CH, 16, 16), jnp.float32)

    raw = init_down_params(kp, IN_CH, OUT_CH)
    params = prepare_params(raw, IN_CH, OUT_CH, CP)

    fwd = jax.jit(partial(down_forward, out_ch=OUT_CH))
    y = jax.block_until_ready(fwd(params, x))

    assert y.shape == (2, OUT_CH, 8, 8), y.shape
    assert bool(jnp.all(jnp.isfinite(y)))
    assert bool(jnp.all(y >= 0.0))            # ReLU output

    # Loose check vs. f32 reference (bf16 GEMM operands -> small numeric drift).
    y_ref = reference_down(raw, x)
    err = float(jnp.max(jnp.abs(y - y_ref)))
    assert err < 0.25, f"max abs err vs reference: {err}"

    print("KERNEL_OK")
</pallas_src>

<mosaic_0001>
module attributes {stable_mosaic.version = 11 : i64} {
  func.func @_maxpool2_kernel(%arg0: i32, %arg1: memref<1x16x16x4xbf16, #tpu.memory_space<vmem>>, %arg2: memref<1x8x8x4xbf16, #tpu.memory_space<vmem>>) attributes {dimension_semantics = [#tpu.dimension_semantics<parallel>], iteration_bounds = array<i64: 2>, scalar_prefetch = 0 : i64, scratch_operands = 0 : i64, tpu.core_type = #tpu.core_type<tc>, window_params = [{transform_indices = @transform_0, window_bounds = array<i64: 1, 16, 16, 4>}, {transform_indices = @transform_1, window_bounds = array<i64: 1, 8, 8, 4>}]} {
    %c0 = arith.constant 0 : index
    %c0_0 = arith.constant 0 : index
    %c0_1 = arith.constant 0 : index
    %c0_2 = arith.constant 0 : index
    %0 = vector.load %arg1[%c0, %c0_0, %c0_1, %c0_2] : memref<1x16x16x4xbf16, #tpu.memory_space<vmem>>, vector<1x16x16x4xbf16>
    %1 = vector.shape_cast %0 : vector<1x16x16x4xbf16> to vector<16x16x4xbf16>
    %2 = arith.extf %1 : vector<16x16x4xbf16> to vector<16x16x4xf32>
    %3 = vector.shape_cast %2 : vector<16x16x4xf32> to vector<8x2x16x4xf32>
    %cst = arith.constant dense<0xFF800000> : vector<8x16x4xf32>
    %4 = vector.multi_reduction <maximumf>, %3, %cst [1] : vector<8x2x16x4xf32> to vector<8x16x4xf32>
    %5 = vector.extract_strided_slice %4 {offsets = [0, 0, 0], sizes = [8, 1, 4], strides = [1, 1, 1]} : vector<8x16x4xf32> to vector<8x1x4xf32>
    %6 = vector.shape_cast %5 : vector<8x1x4xf32> to vector<8x4xf32>
    %7 = vector.extract_strided_slice %4 {offsets = [0, 1, 0], sizes = [8, 1, 4], strides = [1, 1, 1]} : vector<8x16x4xf32> to vector<8x1x4xf32>
    %8 = vector.shape_cast %7 : vector<8x1x4xf32> to vector<8x4xf32>
    %9 = arith.maximumf %6, %8 : vector<8x4xf32>
    %10 = arith.truncf %9 : vector<8x4xf32> to vector<8x4xbf16>
    %c0_3 = arith.constant 0 : index
    %c0_4 = arith.constant 0 : index
    %c0_5 = arith.constant 0 : index
    %c0_6 = arith.constant 0 : index
    %11 = vector.load %arg2[%c0_3, %c0_4, %c0_5, %c0_6] : memref<1x8x8x4xbf16, #tpu.memory_space<vmem>>, vector<1x8x1x4xbf16>
    %12 = vector.shape_cast %11 : vector<1x8x1x4xbf16> to vector<8x4xbf16>
    %13 = vector.shape_cast %10 : vector<8x4xbf16> to vector<1x8x1x4xbf16>
    tpu.vector_store %arg2[%c0_3, %c0_4, %c0_5, %c0_6], %13 {strides = array<i32>} : memref<1x8x8x4xbf16, #tpu.memory_space<vmem>>, vector<1x8x1x4xbf16>,
    %14 = vector.extract_strided_slice %4 {offsets = [0, 2, 0], sizes = [8, 1, 4], strides = [1, 1, 1]} : vector<8x16x4xf32> to vector<8x1x4xf32>
    %15 = vector.shape_cast %14 : vector<8x1x4xf32> to vector<8x4xf32>
    %16 = vector.extract_strided_slice %4 {offsets = [0, 3, 0], sizes = [8, 1, 4], strides = [1, 1, 1]} : vector<8x16x4xf32> to vector<8x1x4xf32>
    %17 = vector.shape_cast %16 : vector<8x1x4xf32> to vector<8x4xf32>
    %18 = arith.maximumf %15, %17 : vector<8x4xf32>
    %19 = arith.truncf %18 : vector<8x4xf32> to vector<8x4xbf16>
    %c0_7 = arith.constant 0 : index
    %c0_8 = arith.constant 0 : index
    %c1 = arith.constant 1 : index
    %c0_9 = arith.constant 0 : index
    %20 = vector.load %arg2[%c0_7, %c0_8, %c1, %c0_9] : memref<1x8x8x4xbf16, #tpu.memory_space<vmem>>, vector<1x8x1x4xbf16>
    %21 = vector.shape_cast %20 : vector<1x8x1x4xbf16> to vector<8x4xbf16>
    %22 = vector.shape_cast %19 : vector<8x4xbf16> to vector<1x8x1x4xbf16>
    tpu.vector_store %arg2[%c0_7, %c0_8, %c1, %c0_9], %22 {strides = array<i32>} : memref<1x8x8x4xbf16, #tpu.memory_space<vmem>>, vector<1x8x1x4xbf16>,
    %23 = vector.extract_strided_slice %4 {offsets = [0, 4, 0], sizes = [8, 1, 4], strides = [1, 1, 1]} : vector<8x16x4xf32> to vector<8x1x4xf32>
    %24 = vector.shape_cast %23 : vector<8x1x4xf32> to vector<8x4xf32>
    %25 = vector.extract_strided_slice %4 {offsets = [0, 5, 0], sizes = [8, 1, 4], strides = [1, 1, 1]} : vector<8x16x4xf32> to vector<8x1x4xf32>
    %26 = vector.shape_cast %25 : vector<8x1x4xf32> to vector<8x4xf32>
    %27 = arith.maximumf %24, %26 : vector<8x4xf32>
    %28 = arith.truncf %27 : vector<8x4xf32> to vector<8x4xbf16>
    %c0_10 = arith.constant 0 : index
    %c0_11 = arith.constant 0 : index
    %c2 = arith.constant 2 : index
    %c0_12 = arith.constant 0 : index
    %29 = vector.load %arg2[%c0_10, %c0_11, %c2, %c0_12] : memref<1x8x8x4xbf16, #tpu.memory_space<vmem>>, vector<1x8x1x4xbf16>
    %30 = vector.shape_cast %29 : vector<1x8x1x4xbf16> to vector<8x4xbf16>
    %31 = vector.shape_cast %28 : vector<8x4xbf16> to vector<1x8x1x4xbf16>
    tpu.vector_store %arg2[%c0_10, %c0_11, %c2, %c0_12], %31 {strides = array<i32>} : memref<1x8x8x4xbf16, #tpu.memory_space<vmem>>, vector<1x8x1x4xbf16>,
    %32 = vector.extract_strided_slice %4 {offsets = [0, 6, 0], sizes = [8, 1, 4], strides = [1, 1, 1]} : vector<8x16x4xf32> to vector<8x1x4xf32>
    %33 = vector.shape_cast %32 : vector<8x1x4xf32> to vector<8x4xf32>
    %34 = vector.extract_strided_slice %4 {offsets = [0, 7, 0], sizes = [8, 1, 4], strides = [1, 1, 1]} : vector<8x16x4xf32> to vector<8x1x4xf32>
    %35 = vector.shape_cast %34 : vector<8x1x4xf32> to vector<8x4xf32>
    %36 = arith.maximumf %33, %35 : vector<8x4xf32>
    %37 = arith.truncf %36 : vector<8x4xf32> to vector<8x4xbf16>
    %c0_13 = arith.constant 0 : index
    %c0_14 = arith.constant 0 : index
    %c3 = arith.constant 3 : index
    %c0_15 = arith.constant 0 : index
    %38 = vector.load %arg2[%c0_13, %c0_14, %c3, %c0_15] : memref<1x8x8x4xbf16, #tpu.memory_space<vmem>>, vector<1x8x1x4xbf16>
    %39 = vector.shape_cast %38 : vector<1x8x1x4xbf16> to vector<8x4xbf16>
    %40 = vector.shape_cast %37 : vector<8x4xbf16> to vector<1x8x1x4xbf16>
    tpu.vector_store %arg2[%c0_13, %c0_14, %c3, %c0_15], %40 {strides = array<i32>} : memref<1x8x8x4xbf16, #tpu.memory_space<vmem>>, vector<1x8x1x4xbf16>,
    %41 = vector.extract_strided_slice %4 {offsets = [0, 8, 0], sizes = [8, 1, 4], strides = [1, 1, 1]} : vector<8x16x4xf32> to vector<8x1x4xf32>
    %42 = vector.shape_cast %41 : vector<8x1x4xf32> to vector<8x4xf32>
    %43 = vector.extract_strided_slice %4 {offsets = [0, 9, 0], sizes = [8, 1, 4], strides = [1, 1, 1]} : vector<8x16x4xf32> to vector<8x1x4xf32>
    %44 = vector.shape_cast %43 : vector<8x1x4xf32> to vector<8x4xf32>
    %45 = arith.maximumf %42, %44 : vector<8x4xf32>
    %46 = arith.truncf %45 : vector<8x4xf32> to vector<8x4xbf16>
    %c0_16 = arith.constant 0 : index
    %c0_17 = arith.constant 0 : index
    %c4 = arith.constant 4 : index
    %c0_18 = arith.constant 0 : index
    %47 = vector.load %arg2[%c0_16, %c0_17, %c4, %c0_18] : memref<1x8x8x4xbf16, #tpu.memory_space<vmem>>, vector<1x8x1x4xbf16>
    %48 = vector.shape_cast %47 : vector<1x8x1x4xbf16> to vector<8x4xbf16>
    %49 = vector.shape_cast %46 : vector<8x4xbf16> to vector<1x8x1x4xbf16>
    tpu.vector_store %arg2[%c0_16, %c0_17, %c4, %c0_18], %49 {strides = array<i32>} : memref<1x8x8x4xbf16, #tpu.memory_space<vmem>>, vector<1x8x1x4xbf16>,
    %50 = vector.extract_strided_slice %4 {offsets = [0, 10, 0], sizes = [8, 1, 4], strides = [1, 1, 1]} : vector<8x16x4xf32> to vector<8x1x4xf32>
    %51 = vector.shape_cast %50 : vector<8x1x4xf32> to vector<8x4xf32>
    %52 = vector.extract_strided_slice %4 {offsets = [0, 11, 0], sizes = [8, 1, 4], strides = [1, 1, 1]} : vector<8x16x4xf32> to vector<8x1x4xf32>
    %53 = vector.shape_cast %52 : vector<8x1x4xf32> to vector<8x4xf32>
    %54 = arith.maximumf %51, %53 : vector<8x4xf32>
    %55 = arith.truncf %54 : vector<8x4xf32> to vector<8x4xbf16>
    %c0_19 = arith.constant 0 : index
    %c0_20 = arith.constant 0 : index
    %c5 = arith.constant 5 : index
    %c0_21 = arith.constant 0 : index
    %56 = vector.load %arg2[%c0_19, %c0_20, %c5, %c0_21] : memref<1x8x8x4xbf16, #tpu.memory_space<vmem>>, vector<1x8x1x4xbf16>
    %57 = vector.shape_cast %56 : vector<1x8x1x4xbf16> to vector<8x4xbf16>
    %58 = vector.shape_cast %55 : vector<8x4xbf16> to vector<1x8x1x4xbf16>
    tpu.vector_store %arg2[%c0_19, %c0_20, %c5, %c0_21], %58 {strides = array<i32>} : memref<1x8x8x4xbf16, #tpu.memory_space<vmem>>, vector<1x8x1x4xbf16>,
    %59 = vector.extract_strided_slice %4 {offsets = [0, 12, 0], sizes = [8, 1, 4], strides = [1, 1, 1]} : vector<8x16x4xf32> to vector<8x1x4xf32>
    %60 = vector.shape_cast %59 : vector<8x1x4xf32> to vector<8x4xf32>
    %61 = vector.extract_strided_slice %4 {offsets = [0, 13, 0], sizes = [8, 1, 4], strides = [1, 1, 1]} : vector<8x16x4xf32> to vector<8x1x4xf32>
    %62 = vector.shape_cast %61 : vector<8x1x4xf32> to vector<8x4xf32>
    %63 = arith.maximumf %60, %62 : vector<8x4xf32>
    %64 = arith.truncf %63 : vector<8x4xf32> to vector<8x4xbf16>
    %c0_22 = arith.constant 0 : index
    %c0_23 = arith.constant 0 : index
    %c6 = arith.constant 6 : index
    %c0_24 = arith.constant 0 : index
    %65 = vector.load %arg2[%c0_22, %c0_23, %c6, %c0_24] : memref<1x8x8x4xbf16, #tpu.memory_space<vmem>>, vector<1x8x1x4xbf16>
    %66 = vector.shape_cast %65 : vector<1x8x1x4xbf16> to vector<8x4xbf16>
    %67 = vector.shape_cast %64 : vector<8x4xbf16> to vector<1x8x1x4xbf16>
    tpu.vector_store %arg2[%c0_22, %c0_23, %c6, %c0_24], %67 {strides = array<i32>} : memref<1x8x8x4xbf16, #tpu.memory_space<vmem>>, vector<1x8x1x4xbf16>,
    %68 = vector.extract_strided_slice %4 {offsets = [0, 14, 0], sizes = [8, 1, 4], strides = [1, 1, 1]} : vector<8x16x4xf32> to vector<8x1x4xf32>
    %69 = vector.shape_cast %68 : vector<8x1x4xf32> to vector<8x4xf32>
    %70 = vector.extract_strided_slice %4 {offsets = [0, 15, 0], sizes = [8, 1, 4], strides = [1, 1, 1]} : vector<8x16x4xf32> to vector<8x1x4xf32>
    %71 = vector.shape_cast %70 : vector<8x1x4xf32> to vector<8x4xf32>
    %72 = arith.maximumf %69, %71 : vector<8x4xf32>
    %73 = arith.truncf %72 : vector<8x4xf32> to vector<8x4xbf16>
    %c0_25 = arith.constant 0 : index
    %c0_26 = arith.constant 0 : index
    %c7 = arith.constant 7 : index
    %c0_27 = arith.constant 0 : index
    %74 = vector.load %arg2[%c0_25, %c0_26, %c7, %c0_27] : memref<1x8x8x4xbf16, #tpu.memory_space<vmem>>, vector<1x8x1x4xbf16>
    %75 = vector.shape_cast %74 : vector<1x8x1x4xbf16> to vector<8x4xbf16>
    %76 = vector.shape_cast %73 : vector<8x4xbf16> to vector<1x8x1x4xbf16>
    tpu.vector_store %arg2[%c0_25, %c0_26, %c7, %c0_27], %76 {strides = array<i32>} : memref<1x8x8x4xbf16, #tpu.memory_space<vmem>>, vector<1x8x1x4xbf16>,
    return
  }
  func.func @transform_0(%arg0: i32) -> (i32, i32, i32, i32) {
    %c0_i32 = arith.constant 0 : i32
    %c0_i32_0 = arith.constant 0 : i32
    %c0_i32_1 = arith.constant 0 : i32
    %c0_i32_2 = arith.constant 0 : i32
    return %arg0, %c0_i32, %c0_i32_0, %c0_i32_1 : i32, i32, i32, i32
  }
  func.func @transform_1(%arg0: i32) -> (i32, i32, i32, i32) {
    %c0_i32 = arith.constant 0 : i32
    %c0_i32_0 = arith.constant 0 : i32
    %c0_i32_1 = arith.constant 0 : i32
    %c0_i32_2 = arith.constant 0 : i32
    return %arg0, %c0_i32, %c0_i32_0, %c0_i32_1 : i32, i32, i32, i32
  }
}

module attributes {stable_mosaic.version = 11 : i64} {
  func.func @_bn_stats_kernel(%arg0: i32, %arg1: memref<64x128xf32, #tpu.memory_space<vmem>>, %arg2: memref<1x128xf32, #tpu.memory_space<vmem>>, %arg3: memref<1x128xf32, #tpu.memory_space<vmem>>) attributes {dimension_semantics = [#tpu.dimension_semantics<arbitrary>], iteration_bounds = array<i64: 2>, scalar_prefetch = 0 : i64, scratch_operands = 0 : i64, tpu.core_type = #tpu.core_type<tc>, window_params = [{transform_indices = @transform_0, window_bounds = array<i64: 64, 128>}, {pipeline_mode = #tpu.pipeline_mode<synchronous>, transform_indices = @transform_1, window_bounds = array<i64: 1, 128>}, {pipeline_mode = #tpu.pipeline_mode<synchronous>, transform_indices = @transform_2, window_bounds = array<i64: 1, 128>}]} {
    %c0_i32 = arith.constant 0 : i32
    %0 = arith.cmpi eq, %arg0, %c0_i32 : i32
    %1 = arith.extui %0 : i1 to i32
    %c0_i32_0 = arith.constant 0 : i32
    %2 = arith.cmpi ne, %1, %c0_i32_0 : i32
    scf.if %2 {
      %cst_11 = arith.constant 0.000000e+00 : f32
      %15 = vector.broadcast %cst_11 : f32 to vector<1x128xf32>
      %c0_12 = arith.constant 0 : index
      %c0_13 = arith.constant 0 : index
      %16 = vector.load %arg2[%c0_12, %c0_13] : memref<1x128xf32, #tpu.memory_space<vmem>>, vector<1x128xf32>
      tpu.vector_store %arg2[%c0_12, %c0_13], %15 {strides = array<i32>} : memref<1x128xf32, #tpu.memory_space<vmem>>, vector<1x128xf32>,
      %cst_14 = arith.constant 0.000000e+00 : f32
      %17 = vector.broadcast %cst_14 : f32 to vector<1x128xf32>
      %c0_15 = arith.constant 0 : index
      %c0_16 = arith.constant 0 : index
      %18 = vector.load %arg3[%c0_15, %c0_16] : memref<1x128xf32, #tpu.memory_space<vmem>>, vector<1x128xf32>
      tpu.vector_store %arg3[%c0_15, %c0_16], %17 {strides = array<i32>} : memref<1x128xf32, #tpu.memory_space<vmem>>, vector<1x128xf32>,
    } else {
    }
    %c0 = arith.constant 0 : index
    %c0_1 = arith.constant 0 : index
    %3 = vector.load %arg1[%c0, %c0_1] : memref<64x128xf32, #tpu.memory_space<vmem>>, vector<64x128xf32>
    %c0_2 = arith.constant 0 : index
    %c0_3 = arith.constant 0 : index
    %4 = vector.load %arg2[%c0_2, %c0_3] : memref<1x128xf32, #tpu.memory_space<vmem>>, vector<1x128xf32>
    %cst = arith.constant dense<0.000000e+00> : vector<128xf32>
    %5 = vector.multi_reduction <add>, %3, %cst [0] : vector<64x128xf32> to vector<128xf32>
    %6 = vector.shape_cast %5 : vector<128xf32> to vector<1x128xf32>
    %7 = arith.addf %4, %6 : vector<1x128xf32>
    %c0_4 = arith.constant 0 : index
    %c0_5 = arith.constant 0 : index
    %8 = vector.load %arg2[%c0_4, %c0_5] : memref<1x128xf32, #tpu.memory_space<vmem>>, vector<1x128xf32>
    tpu.vector_store %arg2[%c0_4, %c0_5], %7 {strides = array<i32>} : memref<1x128xf32, #tpu.memory_space<vmem>>, vector<1x128xf32>,
    %c0_6 = arith.constant 0 : index
    %c0_7 = arith.constant 0 : index
    %9 = vector.load %arg3[%c0_6, %c0_7] : memref<1x128xf32, #tpu.memory_space<vmem>>, vector<1x128xf32>
    %10 = arith.mulf %3, %3 : vector<64x128xf32>
    %cst_8 = arith.constant dense<0.000000e+00> : vector<128xf32>
    %11 = vector.multi_reduction <add>, %10, %cst_8 [0] : vector<64x128xf32> to vector<128xf32>
    %12 = vector.shape_cast %11 : vector<128xf32> to vector<1x128xf32>
    %13 = arith.addf %9, %12 : vector<1x128xf32>
    %c0_9 = arith.constant 0 : index
    %c0_10 = arith.constant 0 : index
    %14 = vector.load %arg3[%c0_9, %c0_10] : memref<1x128xf32, #tpu.memory_space<vmem>>, vector<1x128xf32>
    tpu.vector_store %arg3[%c0_9, %c0_10], %13 {strides = array<i32>} : memref<1x128xf32, #tpu.memory_space<vmem>>, vector<1x128xf32>,
    return
  }
  func.func @transform_0(%arg0: i32) -> (i32, i32) {
    %c0_i32 = arith.constant 0 : i32
    %c0_i32_0 = arith.constant 0 : i32
    return %arg0, %c0_i32 : i32, i32
  }
  func.func @transform_1(%arg0: i32) -> (i32, i32) {
    %c0_i32 = arith.constant 0 : i32
    %c0_i32_0 = arith.constant 0 : i32
    %c0_i32_1 = arith.constant 0 : i32
    return %c0_i32, %c0_i32_0 : i32, i32
  }
  func.func @transform_2(%arg0: i32) -> (i32, i32) {
    %c0_i32 = arith.constant 0 : i32
    %c0_i32_0 = arith.constant 0 : i32
    %c0_i32_1 = arith.constant 0 : i32
    return %c0_i32, %c0_i32_0 : i32, i32
  }
}

module attributes {stable_mosaic.version = 11 : i64} {
  func.func @_conv3x3_kernel(%arg0: i32, %arg1: i32, %arg2: memref<1x10x10x4xbf16, #tpu.memory_space<vmem>>, %arg3: memref<3x3x4x128xbf16, #tpu.memory_space<vmem>>, %arg4: memref<1x128xf32, #tpu.memory_space<vmem>>, %arg5: memref<1x8x8x128xf32, #tpu.memory_space<vmem>>) attributes {dimension_semantics = [#tpu.dimension_semantics<parallel>, #tpu.dimension_semantics<parallel>], iteration_bounds = array<i64: 2, 1>, scalar_prefetch = 0 : i64, scratch_operands = 0 : i64, tpu.core_type = #tpu.core_type<tc>, window_params = [{transform_indices = @transform_0, window_bounds = array<i64: 1, 10, 10, 4>}, {transform_indices = @transform_1, window_bounds = array<i64: 3, 3, 4, 128>}, {transform_indices = @transform_2, window_bounds = array<i64: 1, 128>}, {transform_indices = @transform_3, window_bounds = array<i64: 1, 8, 8, 128>}]} {
    %c0 = arith.constant 0 : index
    %c0_0 = arith.constant 0 : index
    %c0_1 = arith.constant 0 : index
    %c0_2 = arith.constant 0 : index
    %0 = vector.load %arg3[%c0, %c0_0, %c0_1, %c0_2] : memref<3x3x4x128xbf16, #tpu.memory_space<vmem>>, vector<3x3x4x128xbf16>
    %cst = arith.constant 0.000000e+00 : f32
    %1 = vector.broadcast %cst : f32 to vector<64x128xf32>
    %c0_3 = arith.constant 0 : index
    %c0_4 = arith.constant 0 : index
    %c0_5 = arith.constant 0 : index
    %c0_6 = arith.constant 0 : index
    %2 = vector.load %arg2[%c0_3, %c0_4, %c0_5, %c0_6] : memref<1x10x10x4xbf16, #tpu.memory_space<vmem>>, vector<1x8x8x4xbf16>
    %3 = vector.shape_cast %2 : vector<1x8x8x4xbf16> to vector<8x8x4xbf16>
    %4 = vector.shape_cast %3 : vector<8x8x4xbf16> to vector<64x4xbf16>
    %5 = vector.extract_strided_slice %0 {offsets = [0, 0, 0, 0], sizes = [1, 1, 4, 128], strides = [1, 1, 1, 1]} : vector<3x3x4x128xbf16> to vector<1x1x4x128xbf16>
    %6 = vector.shape_cast %5 : vector<1x1x4x128xbf16> to vector<4x128xbf16>
    %cst_7 = arith.constant dense<0.000000e+00> : vector<64x128xf32>
    %7 = tpu.matmul %4, %6, %cst_7 {dimension_numbers = #tpu.dot_dimension_numbers<[1], [0], [0], [1], [0, 0, 1, 1], [], []>} : vector<64x4xbf16>, vector<4x128xbf16>, vector<64x128xf32> -> vector<64x128xf32>
    %8 = arith.addf %1, %7 : vector<64x128xf32>
    %c0_8 = arith.constant 0 : index
    %c0_9 = arith.constant 0 : index
    %c1 = arith.constant 1 : index
    %c0_10 = arith.constant 0 : index
    %9 = vector.load %arg2[%c0_8, %c0_9, %c1, %c0_10] : memref<1x10x10x4xbf16, #tpu.memory_space<vmem>>, vector<1x8x8x4xbf16>
    %10 = vector.shape_cast %9 : vector<1x8x8x4xbf16> to vector<8x8x4xbf16>
    %11 = vector.shape_cast %10 : vector<8x8x4xbf16> to vector<64x4xbf16>
    %12 = vector.extract_strided_slice %0 {offsets = [0, 1, 0, 0], sizes = [1, 1, 4, 128], strides = [1, 1, 1, 1]} : vector<3x3x4x128xbf16> to vector<1x1x4x128xbf16>
    %13 = vector.shape_cast %12 : vector<1x1x4x128xbf16> to vector<4x128xbf16>
    %cst_11 = arith.constant dense<0.000000e+00> : vector<64x128xf32>
    %14 = tpu.matmul %11, %13, %cst_11 {dimension_numbers = #tpu.dot_dimension_numbers<[1], [0], [0], [1], [0, 0, 1, 1], [], []>} : vector<64x4xbf16>, vector<4x128xbf16>, vector<64x128xf32> -> vector<64x128xf32>
    %15 = arith.addf %8, %14 : vector<64x128xf32>
    %c0_12 = arith.constant 0 : index
    %c0_13 = arith.constant 0 : index
    %c2 = arith.constant 2 : index
    %c0_14 = arith.constant 0 : index
    %16 = vector.load %arg2[%c0_12, %c0_13, %c2, %c0_14] : memref<1x10x10x4xbf16, #tpu.memory_space<vmem>>, vector<1x8x8x4xbf16>
    %17 = vector.shape_cast %16 : vector<1x8x8x4xbf16> to vector<8x8x4xbf16>
    %18 = vector.shape_cast %17 : vector<8x8x4xbf16> to vector<64x4xbf16>
    %19 = vector.extract_strided_slice %0 {offsets = [0, 2, 0, 0], sizes = [1, 1, 4, 128], strides = [1, 1, 1, 1]} : vector<3x3x4x128xbf16> to vector<1x1x4x128xbf16>
    %20 = vector.shape_cast %19 : vector<1x1x4x128xbf16> to vector<4x128xbf16>
    %cst_15 = arith.constant dense<0.000000e+00> : vector<64x128xf32>
    %21 = tpu.matmul %18, %20, %cst_15 {dimension_numbers = #tpu.dot_dimension_numbers<[1], [0], [0], [1], [0, 0, 1, 1], [], []>} : vector<64x4xbf16>, vector<4x128xbf16>, vector<64x128xf32> -> vector<64x128xf32>
    %22 = arith.addf %15, %21 : vector<64x128xf32>
    %c0_16 = arith.constant 0 : index
    %c1_17 = arith.constant 1 : index
    %c0_18 = arith.constant 0 : index
    %c0_19 = arith.constant 0 : index
    %23 = vector.load %arg2[%c0_16, %c1_17, %c0_18, %c0_19] : memref<1x10x10x4xbf16, #tpu.memory_space<vmem>>, vector<1x8x8x4xbf16>
    %24 = vector.shape_cast %23 : vector<1x8x8x4xbf16> to vector<8x8x4xbf16>
    %25 = vector.shape_cast %24 : vector<8x8x4xbf16> to vector<64x4xbf16>
    %26 = vector.extract_strided_slice %0 {offsets = [1, 0, 0, 0], sizes = [1, 1, 4, 128], strides = [1, 1, 1, 1]} : vector<3x3x4x128xbf16> to vector<1x1x4x128xbf16>
    %27 = vector.shape_cast %26 : vector<1x1x4x128xbf16> to vector<4x128xbf16>
    %cst_20 = arith.constant dense<0.000000e+00> : vector<64x128xf32>
    %28 = tpu.matmul %25, %27, %cst_20 {dimension_numbers = #tpu.dot_dimension_numbers<[1], [0], [0], [1], [0, 0, 1, 1], [], []>} : vector<64x4xbf16>, vector<4x128xbf16>, vector<64x128xf32> -> vector<64x128xf32>
    %29 = arith.addf %22, %28 : vector<64x128xf32>
    %c0_21 = arith.constant 0 : index
    %c1_22 = arith.constant 1 : index
    %c1_23 = arith.constant 1 : index
    %c0_24 = arith.constant 0 : index
    %30 = vector.load %arg2[%c0_21, %c1_22, %c1_23, %c0_24] : memref<1x10x10x4xbf16, #tpu.memory_space<vmem>>, vector<1x8x8x4xbf16>
    %31 = vector.shape_cast %30 : vector<1x8x8x4xbf16> to vector<8x8x4xbf16>
    %32 = vector.shape_cast %31 : vector<8x8x4xbf16> to vector<64x4xbf16>
    %33 = vector.extract_strided_slice %0 {offsets = [1, 1, 0, 0], sizes = [1, 1, 4, 128], strides = [1, 1, 1, 1]} : vector<3x3x4x128xbf16> to vector<1x1x4x128xbf16>
    %34 = vector.shape_cast %33 : vector<1x1x4x128xbf16> to vector<4x128xbf16>
    %cst_25 = arith.constant dense<0.000000e+00> : vector<64x128xf32>
    %35 = tpu.matmul %32, %34, %cst_25 {dimension_numbers = #tpu.dot_dimension_numbers<[1], [0], [0], [1], [0, 0, 1, 1], [], []>} : vector<64x4xbf16>, vector<4x128xbf16>, vector<64x128xf32> -> vector<64x128xf32>
    %36 = arith.addf %29, %35 : vector<64x128xf32>
    %c0_26 = arith.constant 0 : index
    %c1_27 = arith.constant 1 : index
    %c2_28 = arith.constant 2 : index
    %c0_29 = arith.constant 0 : index
    %37 = vector.load %arg2[%c0_26, %c1_27, %c2_28, %c0_29] : memref<1x10x10x4xbf16, #tpu.memory_space<vmem>>, vector<1x8x8x4xbf16>
    %38 = vector.shape_cast %37 : vector<1x8x8x4xbf16> to vector<8x8x4xbf16>
    %39 = vector.shape_cast %38 : vector<8x8x4xbf16> to vector<64x4xbf16>
    %40 = vector.extract_strided_slice %0 {offsets = [1, 2, 0, 0], sizes = [1, 1, 4, 128], strides = [1, 1, 1, 1]} : vector<3x3x4x128xbf16> to vector<1x1x4x128xbf16>
    %41 = vector.shape_cast %40 : vector<1x1x4x128xbf16> to vector<4x128xbf16>
    %cst_30 = arith.constant dense<0.000000e+00> : vector<64x128xf32>
    %42 = tpu.matmul %39, %41, %cst_30 {dimension_numbers = #tpu.dot_dimension_numbers<[1], [0], [0], [1], [0, 0, 1, 1], [], []>} : vector<64x4xbf16>, vector<4x128xbf16>, vector<64x128xf32> -> vector<64x128xf32>
    %43 = arith.addf %36, %42 : vector<64x128xf32>
    %c0_31 = arith.constant 0 : index
    %c2_32 = arith.constant 2 : index
    %c0_33 = arith.constant 0 : index
    %c0_34 = arith.constant 0 : index
    %44 = vector.load %arg2[%c0_31, %c2_32, %c0_33, %c0_34] : memref<1x10x10x4xbf16, #tpu.memory_space<vmem>>, vector<1x8x8x4xbf16>
    %45 = vector.shape_cast %44 : vector<1x8x8x4xbf16> to vector<8x8x4xbf16>
    %46 = vector.shape_cast %45 : vector<8x8x4xbf16> to vector<64x4xbf16>
    %47 = vector.extract_strided_slice %0 {offsets = [2, 0, 0, 0], sizes = [1, 1, 4, 128], strides = [1, 1, 1, 1]} : vector<3x3x4x128xbf16> to vector<1x1x4x128xbf16>
    %48 = vector.shape_cast %47 : vector<1x1x4x128xbf16> to vector<4x128xbf16>
    %cst_35 = arith.constant dense<0.000000e+00> : vector<64x128xf32>
    %49 = tpu.matmul %46, %48, %cst_35 {dimension_numbers = #tpu.dot_dimension_numbers<[1], [0], [0], [1], [0, 0, 1, 1], [], []>} : vector<64x4xbf16>, vector<4x128xbf16>, vector<64x128xf32> -> vector<64x128xf32>
    %50 = arith.addf %43, %49 : vector<64x128xf32>
    %c0_36 = arith.constant 0 : index
    %c2_37 = arith.constant 2 : index
    %c1_38 = arith.constant 1 : index
    %c0_39 = arith.constant 0 : index
    %51 = vector.load %arg2[%c0_36, %c2_37, %c1_38, %c0_39] : memref<1x10x10x4xbf16, #tpu.memory_space<vmem>>, vector<1x8x8x4xbf16>
    %52 = vector.shape_cast %51 : vector<1x8x8x4xbf16> to vector<8x8x4xbf16>
    %53 = vector.shape_cast %52 : vector<8x8x4xbf16> to vector<64x4xbf16>
    %54 = vector.extract_strided_slice %0 {offsets = [2, 1, 0, 0], sizes = [1, 1, 4, 128], strides = [1, 1, 1, 1]} : vector<3x3x4x128xbf16> to vector<1x1x4x128xbf16>
    %55 = vector.shape_cast %54 : vector<1x1x4x128xbf16> to vector<4x128xbf16>
    %cst_40 = arith.constant dense<0.000000e+00> : vector<64x128xf32>
    %56 = tpu.matmul %53, %55, %cst_40 {dimension_numbers = #tpu.dot_dimension_numbers<[1], [0], [0], [1], [0, 0, 1, 1], [], []>} : vector<64x4xbf16>, vector<4x128xbf16>, vector<64x128xf32> -> vector<64x128xf32>
    %57 = arith.addf %50, %56 : vector<64x128xf32>
    %c0_41 = arith.constant 0 : index
    %c2_42 = arith.constant 2 : index
    %c2_43 = arith.constant 2 : index
    %c0_44 = arith.constant 0 : index
    %58 = vector.load %arg2[%c0_41, %c2_42, %c2_43, %c0_44] : memref<1x10x10x4xbf16, #tpu.memory_space<vmem>>, vector<1x8x8x4xbf16>
    %59 = vector.shape_cast %58 : vector<1x8x8x4xbf16> to vector<8x8x4xbf16>
    %60 = vector.shape_cast %59 : vector<8x8x4xbf16> to vector<64x4xbf16>
    %61 = vector.extract_strided_slice %0 {offsets = [2, 2, 0, 0], sizes = [1, 1, 4, 128], strides = [1, 1, 1, 1]} : vector<3x3x4x128xbf16> to vector<1x1x4x128xbf16>
    %62 = vector.shape_cast %61 : vector<1x1x4x128xbf16> to vector<4x128xbf16>
    %cst_45 = arith.constant dense<0.000000e+00> : vector<64x128xf32>
    %63 = tpu.matmul %60, %62, %cst_45 {dimension_numbers = #tpu.dot_dimension_numbers<[1], [0], [0], [1], [0, 0, 1, 1], [], []>} : vector<64x4xbf16>, vector<4x128xbf16>, vector<64x128xf32> -> vector<64x128xf32>
    %64 = arith.addf %57, %63 : vector<64x128xf32>
    %c0_46 = arith.constant 0 : index
    %c0_47 = arith.constant 0 : index
    %65 = vector.load %arg4[%c0_46, %c0_47] : memref<1x128xf32, #tpu.memory_space<vmem>>, vector<1x128xf32>
    %66 = vector.broadcast %65 : vector<1x128xf32> to vector<64x128xf32>
    %67 = arith.addf %64, %66 : vector<64x128xf32>
    %68 = vector.shape_cast %67 : vector<64x128xf32> to vector<1x8x8x128xf32>
    %c0_48 = arith.constant 0 : index
    %c0_49 = arith.constant 0 : index
    %c0_50 = arith.constant 0 : index
    %c0_51 = arith.constant 0 : index
    %69 = vector.load %arg5[%c0_48, %c0_49, %c0_50, %c0_51] : memref<1x8x8x128xf32, #tpu.memory_space<vmem>>, vector<1x8x8x128xf32>
    tpu.vector_store %arg5[%c0_48, %c0_49, %c0_50, %c0_51], %68 {strides = array<i32>} : memref<1x8x8x128xf32, #tpu.memory_space<vmem>>, vector<1x8x8x128xf32>,
    return
  }
  func.func @transform_0(%arg0: i32, %arg1: i32) -> (i32, i32, i32, i32) {
    %c0_i32 = arith.constant 0 : i32
    %c0_i32_0 = arith.constant 0 : i32
    %c0_i32_1 = arith.constant 0 : i32
    %c0_i32_2 = arith.constant 0 : i32
    return %arg0, %c0_i32, %c0_i32_0, %c0_i32_1 : i32, i32, i32, i32
  }
  func.func @transform_1(%arg0: i32, %arg1: i32) -> (i32, i32, i32, i32) {
    %c0_i32 = arith.constant 0 : i32
    %c0_i32_0 = arith.constant 0 : i32
    %c0_i32_1 = arith.constant 0 : i32
    %c0_i32_2 = arith.constant 0 : i32
    return %c0_i32, %c0_i32_0, %c0_i32_1, %arg1 : i32, i32, i32, i32
  }
  func.func @transform_2(%arg0: i32, %arg1: i32) -> (i32, i32) {
    %c0_i32 = arith.constant 0 : i32
    %c0_i32_0 = arith.constant 0 : i32
    return %c0_i32, %arg1 : i32, i32
  }
  func.func @transform_3(%arg0: i32, %arg1: i32) -> (i32, i32, i32, i32) {
    %c0_i32 = arith.constant 0 : i32
    %c0_i32_0 = arith.constant 0 : i32
    %c0_i32_1 = arith.constant 0 : i32
    return %arg0, %c0_i32, %c0_i32_0, %arg1 : i32, i32, i32, i32
  }
}

module attributes {stable_mosaic.version = 11 : i64} {
  func.func @_bn_apply_relu_kernel(%arg0: i32, %arg1: memref<64x128xf32, #tpu.memory_space<vmem>>, %arg2: memref<1x128xf32, #tpu.memory_space<vmem>>, %arg3: memref<1x128xf32, #tpu.memory_space<vmem>>, %arg4: memref<64x128xbf16, #tpu.memory_space<vmem>>) attributes {dimension_semantics = [#tpu.dimension_semantics<parallel>], iteration_bounds = array<i64: 2>, scalar_prefetch = 0 : i64, scratch_operands = 0 : i64, tpu.core_type = #tpu.core_type<tc>, window_params = [{transform_indices = @transform_0, window_bounds = array<i64: 64, 128>}, {pipeline_mode = #tpu.pipeline_mode<synchronous>, transform_indices = @transform_1, window_bounds = array<i64: 1, 128>}, {pipeline_mode = #tpu.pipeline_mode<synchronous>, transform_indices = @transform_2, window_bounds = array<i64: 1, 128>}, {transform_indices = @transform_3, window_bounds = array<i64: 64, 128>}]} {
    %c0 = arith.constant 0 : index
    %c0_0 = arith.constant 0 : index
    %0 = vector.load %arg1[%c0, %c0_0] : memref<64x128xf32, #tpu.memory_space<vmem>>, vector<64x128xf32>
    %c0_1 = arith.constant 0 : index
    %c0_2 = arith.constant 0 : index
    %1 = vector.load %arg2[%c0_1, %c0_2] : memref<1x128xf32, #tpu.memory_space<vmem>>, vector<1x128xf32>
    %2 = vector.broadcast %1 : vector<1x128xf32> to vector<64x128xf32>
    %3 = arith.mulf %0, %2 : vector<64x128xf32>
    %c0_3 = arith.constant 0 : index
    %c0_4 = arith.constant 0 : index
    %4 = vector.load %arg3[%c0_3, %c0_4] : memref<1x128xf32, #tpu.memory_space<vmem>>, vector<1x128xf32>
    %5 = vector.broadcast %4 : vector<1x128xf32> to vector<64x128xf32>
    %6 = arith.addf %3, %5 : vector<64x128xf32>
    %cst = arith.constant 0.000000e+00 : f32
    %7 = vector.broadcast %cst : f32 to vector<64x128xf32>
    %8 = arith.maximumf %6, %7 : vector<64x128xf32>
    %9 = arith.truncf %8 : vector<64x128xf32> to vector<64x128xbf16>
    %c0_5 = arith.constant 0 : index
    %c0_6 = arith.constant 0 : index
    %10 = vector.load %arg4[%c0_5, %c0_6] : memref<64x128xbf16, #tpu.memory_space<vmem>>, vector<64x128xbf16>
    tpu.vector_store %arg4[%c0_5, %c0_6], %9 {strides = array<i32>} : memref<64x128xbf16, #tpu.memory_space<vmem>>, vector<64x128xbf16>,
    return
  }
  func.func @transform_0(%arg0: i32) -> (i32, i32) {
    %c0_i32 = arith.constant 0 : i32
    %c0_i32_0 = arith.constant 0 : i32
    return %arg0, %c0_i32 : i32, i32
  }
  func.func @transform_1(%arg0: i32) -> (i32, i32) {
    %c0_i32 = arith.constant 0 : i32
    %c0_i32_0 = arith.constant 0 : i32
    %c0_i32_1 = arith.constant 0 : i32
    return %c0_i32, %c0_i32_0 : i32, i32
  }
  func.func @transform_2(%arg0: i32) -> (i32, i32) {
    %c0_i32 = arith.constant 0 : i32
    %c0_i32_0 = arith.constant 0 : i32
    %c0_i32_1 = arith.constant 0 : i32
    return %c0_i32, %c0_i32_0 : i32, i32
  }
  func.func @transform_3(%arg0: i32) -> (i32, i32) {
    %c0_i32 = arith.constant 0 : i32
    %c0_i32_0 = arith.constant 0 : i32
    return %arg0, %c0_i32 : i32, i32
  }
}

module attributes {stable_mosaic.version = 11 : i64} {
  func.func @_conv3x3_kernel(%arg0: i32, %arg1: i32, %arg2: memref<1x10x10x128xbf16, #tpu.memory_space<vmem>>, %arg3: memref<3x3x128x128xbf16, #tpu.memory_space<vmem>>, %arg4: memref<1x128xf32, #tpu.memory_space<vmem>>, %arg5: memref<1x8x8x128xf32, #tpu.memory_space<vmem>>) attributes {dimension_semantics = [#tpu.dimension_semantics<parallel>, #tpu.dimension_semantics<parallel>], iteration_bounds = array<i64: 2, 1>, scalar_prefetch = 0 : i64, scratch_operands = 0 : i64, tpu.core_type = #tpu.core_type<tc>, window_params = [{transform_indices = @transform_0, window_bounds = array<i64: 1, 10, 10, 128>}, {transform_indices = @transform_1, window_bounds = array<i64: 3, 3, 128, 128>}, {transform_indices = @transform_2, window_bounds = array<i64: 1, 128>}, {transform_indices = @transform_3, window_bounds = array<i64: 1, 8, 8, 128>}]} {
    %c0 = arith.constant 0 : index
    %c0_0 = arith.constant 0 : index
    %c0_1 = arith.constant 0 : index
    %c0_2 = arith.constant 0 : index
    %0 = vector.load %arg3[%c0, %c0_0, %c0_1, %c0_2] : memref<3x3x128x128xbf16, #tpu.memory_space<vmem>>, vector<3x3x128x128xbf16>
    %cst = arith.constant 0.000000e+00 : f32
    %1 = vector.broadcast %cst : f32 to vector<64x128xf32>
    %c0_3 = arith.constant 0 : index
    %c0_4 = arith.constant 0 : index
    %c0_5 = arith.constant 0 : index
    %c0_6 = arith.constant 0 : index
    %2 = vector.load %arg2[%c0_3, %c0_4, %c0_5, %c0_6] : memref<1x10x10x128xbf16, #tpu.memory_space<vmem>>, vector<1x8x8x128xbf16>
    %3 = vector.shape_cast %2 : vector<1x8x8x128xbf16> to vector<8x8x128xbf16>
    %4 = vector.shape_cast %3 : vector<8x8x128xbf16> to vector<64x128xbf16>
    %5 = vector.extract_strided_slice %0 {offsets = [0, 0, 0, 0], sizes = [1, 1, 128, 128], strides = [1, 1, 1, 1]} : vector<3x3x128x128xbf16> to vector<1x1x128x128xbf16>
    %6 = vector.shape_cast %5 : vector<1x1x128x128xbf16> to vector<128x128xbf16>
    %cst_7 = arith.constant dense<0.000000e+00> : vector<64x128xf32>
    %7 = tpu.matmul %4, %6, %cst_7 {dimension_numbers = #tpu.dot_dimension_numbers<[1], [0], [0], [1], [0, 0, 1, 1], [], []>} : vector<64x128xbf16>, vector<128x128xbf16>, vector<64x128xf32> -> vector<64x128xf32>
    %8 = arith.addf %1, %7 : vector<64x128xf32>
    %c0_8 = arith.constant 0 : index
    %c0_9 = arith.constant 0 : index
    %c1 = arith.constant 1 : index
    %c0_10 = arith.constant 0 : index
    %9 = vector.load %arg2[%c0_8, %c0_9, %c1, %c0_10] : memref<1x10x10x128xbf16, #tpu.memory_space<vmem>>, vector<1x8x8x128xbf16>
    %10 = vector.shape_cast %9 : vector<1x8x8x128xbf16> to vector<8x8x128xbf16>
    %11 = vector.shape_cast %10 : vector<8x8x128xbf16> to vector<64x128xbf16>
    %12 = vector.extract_strided_slice %0 {offsets = [0, 1, 0, 0], sizes = [1, 1, 128, 128], strides = [1, 1, 1, 1]} : vector<3x3x128x128xbf16> to vector<1x1x128x128xbf16>
    %13 = vector.shape_cast %12 : vector<1x1x128x128xbf16> to vector<128x128xbf16>
    %cst_11 = arith.constant dense<0.000000e+00> : vector<64x128xf32>
    %14 = tpu.matmul %11, %13, %cst_11 {dimension_numbers = #tpu.dot_dimension_numbers<[1], [0], [0], [1], [0, 0, 1, 1], [], []>} : vector<64x128xbf16>, vector<128x128xbf16>, vector<64x128xf32> -> vector<64x128xf32>
    %15 = arith.addf %8, %14 : vector<64x128xf32>
    %c0_12 = arith.constant 0 : index
    %c0_13 = arith.constant 0 : index
    %c2 = arith.constant 2 : index
    %c0_14 = arith.constant 0 : index
    %16 = vector.load %arg2[%c0_12, %c0_13, %c2, %c0_14] : memref<1x10x10x128xbf16, #tpu.memory_space<vmem>>, vector<1x8x8x128xbf16>
    %17 = vector.shape_cast %16 : vector<1x8x8x128xbf16> to vector<8x8x128xbf16>
    %18 = vector.shape_cast %17 : vector<8x8x128xbf16> to vector<64x128xbf16>
    %19 = vector.extract_strided_slice %0 {offsets = [0, 2, 0, 0], sizes = [1, 1, 128, 128], strides = [1, 1, 1, 1]} : vector<3x3x128x128xbf16> to vector<1x1x128x128xbf16>
    %20 = vector.shape_cast %19 : vector<1x1x128x128xbf16> to vector<128x128xbf16>
    %cst_15 = arith.constant dense<0.000000e+00> : vector<64x128xf32>
    %21 = tpu.matmul %18, %20, %cst_15 {dimension_numbers = #tpu.dot_dimension_numbers<[1], [0], [0], [1], [0, 0, 1, 1], [], []>} : vector<64x128xbf16>, vector<128x128xbf16>, vector<64x128xf32> -> vector<64x128xf32>
    %22 = arith.addf %15, %21 : vector<64x128xf32>
    %c0_16 = arith.constant 0 : index
    %c1_17 = arith.constant 1 : index
    %c0_18 = arith.constant 0 : index
    %c0_19 = arith.constant 0 : index
    %23 = vector.load %arg2[%c0_16, %c1_17, %c0_18, %c0_19] : memref<1x10x10x128xbf16, #tpu.memory_space<vmem>>, vector<1x8x8x128xbf16>
    %24 = vector.shape_cast %23 : vector<1x8x8x128xbf16> to vector<8x8x128xbf16>
    %25 = vector.shape_cast %24 : vector<8x8x128xbf16> to vector<64x128xbf16>
    %26 = vector.extract_strided_slice %0 {offsets = [1, 0, 0, 0], sizes = [1, 1, 128, 128], strides = [1, 1, 1, 1]} : vector<3x3x128x128xbf16> to vector<1x1x128x128xbf16>
    %27 = vector.shape_cast %26 : vector<1x1x128x128xbf16> to vector<128x128xbf16>
    %cst_20 = arith.constant dense<0.000000e+00> : vector<64x128xf32>
    %28 = tpu.matmul %25, %27, %cst_20 {dimension_numbers = #tpu.dot_dimension_numbers<[1], [0], [0], [1], [0, 0, 1, 1], [], []>} : vector<64x128xbf16>, vector<128x128xbf16>, vector<64x128xf32> -> vector<64x128xf32>
    %29 = arith.addf %22, %28 : vector<64x128xf32>
    %c0_21 = arith.constant 0 : index
    %c1_22 = arith.constant 1 : index
    %c1_23 = arith.constant 1 : index
    %c0_24 = arith.constant 0 : index
    %30 = vector.load %arg2[%c0_21, %c1_22, %c1_23, %c0_24] : memref<1x10x10x128xbf16, #tpu.memory_space<vmem>>, vector<1x8x8x128xbf16>
    %31 = vector.shape_cast %30 : vector<1x8x8x128xbf16> to vector<8x8x128xbf16>
    %32 = vector.shape_cast %31 : vector<8x8x128xbf16> to vector<64x128xbf16>
    %33 = vector.extract_strided_slice %0 {offsets = [1, 1, 0, 0], sizes = [1, 1, 128, 128], strides = [1, 1, 1, 1]} : vector<3x3x128x128xbf16> to vector<1x1x128x128xbf16>
    %34 = vector.shape_cast %33 : vector<1x1x128x128xbf16> to vector<128x128xbf16>
    %cst_25 = arith.constant dense<0.000000e+00> : vector<64x128xf32>
    %35 = tpu.matmul %32, %34, %cst_25 {dimension_numbers = #tpu.dot_dimension_numbers<[1], [0], [0], [1], [0, 0, 1, 1], [], []>} : vector<64x128xbf16>, vector<128x128xbf16>, vector<64x128xf32> -> vector<64x128xf32>
    %36 = arith.addf %29, %35 : vector<64x128xf32>
    %c0_26 = arith.constant 0 : index
    %c1_27 = arith.constant 1 : index
    %c2_28 = arith.constant 2 : index
    %c0_29 = arith.constant 0 : index
    %37 = vector.load %arg2[%c0_26, %c1_27, %c2_28, %c0_29] : memref<1x10x10x128xbf16, #tpu.memory_space<vmem>>, vector<1x8x8x128xbf16>
    %38 = vector.shape_cast %37 : vector<1x8x8x128xbf16> to vector<8x8x128xbf16>
    %39 = vector.shape_cast %38 : vector<8x8x128xbf16> to vector<64x128xbf16>
    %40 = vector.extract_strided_slice %0 {offsets = [1, 2, 0, 0], sizes = [1, 1, 128, 128], strides = [1, 1, 1, 1]} : vector<3x3x128x128xbf16> to vector<1x1x128x128xbf16>
    %41 = vector.shape_cast %40 : vector<1x1x128x128xbf16> to vector<128x128xbf16>
    %cst_30 = arith.constant dense<0.000000e+00> : vector<64x128xf32>
    %42 = tpu.matmul %39, %41, %cst_30 {dimension_numbers = #tpu.dot_dimension_numbers<[1], [0], [0], [1], [0, 0, 1, 1], [], []>} : vector<64x128xbf16>, vector<128x128xbf16>, vector<64x128xf32> -> vector<64x128xf32>
    %43 = arith.addf %36, %42 : vector<64x128xf32>
    %c0_31 = arith.constant 0 : index
    %c2_32 = arith.constant 2 : index
    %c0_33 = arith.constant 0 : index
    %c0_34 = arith.constant 0 : index
    %44 = vector.load %arg2[%c0_31, %c2_32, %c0_33, %c0_34] : memref<1x10x10x128xbf16, #tpu.memory_space<vmem>>, vector<1x8x8x128xbf16>
    %45 = vector.shape_cast %44 : vector<1x8x8x128xbf16> to vector<8x8x128xbf16>
    %46 = vector.shape_cast %45 : vector<8x8x128xbf16> to vector<64x128xbf16>
    %47 = vector.extract_strided_slice %0 {offsets = [2, 0, 0, 0], sizes = [1, 1, 128, 128], strides = [1, 1, 1, 1]} : vector<3x3x128x128xbf16> to vector<1x1x128x128xbf16>
    %48 = vector.shape_cast %47 : vector<1x1x128x128xbf16> to vector<128x128xbf16>
    %cst_35 = arith.constant dense<0.000000e+00> : vector<64x128xf32>
    %49 = tpu.matmul %46, %48, %cst_35 {dimension_numbers = #tpu.dot_dimension_numbers<[1], [0], [0], [1], [0, 0, 1, 1], [], []>} : vector<64x128xbf16>, vector<128x128xbf16>, vector<64x128xf32> -> vector<64x128xf32>
    %50 = arith.addf %43, %49 : vector<64x128xf32>
    %c0_36 = arith.constant 0 : index
    %c2_37 = arith.constant 2 : index
    %c1_38 = arith.constant 1 : index
    %c0_39 = arith.constant 0 : index
    %51 = vector.load %arg2[%c0_36, %c2_37, %c1_38, %c0_39] : memref<1x10x10x128xbf16, #tpu.memory_space<vmem>>, vector<1x8x8x128xbf16>
    %52 = vector.shape_cast %51 : vector<1x8x8x128xbf16> to vector<8x8x128xbf16>
    %53 = vector.shape_cast %52 : vector<8x8x128xbf16> to vector<64x128xbf16>
    %54 = vector.extract_strided_slice %0 {offsets = [2, 1, 0, 0], sizes = [1, 1, 128, 128], strides = [1, 1, 1, 1]} : vector<3x3x128x128xbf16> to vector<1x1x128x128xbf16>
    %55 = vector.shape_cast %54 : vector<1x1x128x128xbf16> to vector<128x128xbf16>
    %cst_40 = arith.constant dense<0.000000e+00> : vector<64x128xf32>
    %56 = tpu.matmul %53, %55, %cst_40 {dimension_numbers = #tpu.dot_dimension_numbers<[1], [0], [0], [1], [0, 0, 1, 1], [], []>} : vector<64x128xbf16>, vector<128x128xbf16>, vector<64x128xf32> -> vector<64x128xf32>
    %57 = arith.addf %50, %56 : vector<64x128xf32>
    %c0_41 = arith.constant 0 : index
    %c2_42 = arith.constant 2 : index
    %c2_43 = arith.constant 2 : index
    %c0_44 = arith.constant 0 : index
    %58 = vector.load %arg2[%c0_41, %c2_42, %c2_43, %c0_44] : memref<1x10x10x128xbf16, #tpu.memory_space<vmem>>, vector<1x8x8x128xbf16>
    %59 = vector.shape_cast %58 : vector<1x8x8x128xbf16> to vector<8x8x128xbf16>
    %60 = vector.shape_cast %59 : vector<8x8x128xbf16> to vector<64x128xbf16>
    %61 = vector.extract_strided_slice %0 {offsets = [2, 2, 0, 0], sizes = [1, 1, 128, 128], strides = [1, 1, 1, 1]} : vector<3x3x128x128xbf16> to vector<1x1x128x128xbf16>
    %62 = vector.shape_cast %61 : vector<1x1x128x128xbf16> to vector<128x128xbf16>
    %cst_45 = arith.constant dense<0.000000e+00> : vector<64x128xf32>
    %63 = tpu.matmul %60, %62, %cst_45 {dimension_numbers = #tpu.dot_dimension_numbers<[1], [0], [0], [1], [0, 0, 1, 1], [], []>} : vector<64x128xbf16>, vector<128x128xbf16>, vector<64x128xf32> -> vector<64x128xf32>
    %64 = arith.addf %57, %63 : vector<64x128xf32>
    %c0_46 = arith.constant 0 : index
    %c0_47 = arith.constant 0 : index
    %65 = vector.load %arg4[%c0_46, %c0_47] : memref<1x128xf32, #tpu.memory_space<vmem>>, vector<1x128xf32>
    %66 = vector.broadcast %65 : vector<1x128xf32> to vector<64x128xf32>
    %67 = arith.addf %64, %66 : vector<64x128xf32>
    %68 = vector.shape_cast %67 : vector<64x128xf32> to vector<1x8x8x128xf32>
    %c0_48 = arith.constant 0 : index
    %c0_49 = arith.constant 0 : index
    %c0_50 = arith.constant 0 : index
    %c0_51 = arith.constant 0 : index
    %69 = vector.load %arg5[%c0_48, %c0_49, %c0_50, %c0_51] : memref<1x8x8x128xf32, #tpu.memory_space<vmem>>, vector<1x8x8x128xf32>
    tpu.vector_store %arg5[%c0_48, %c0_49, %c0_50, %c0_51], %68 {strides = array<i32>} : memref<1x8x8x128xf32, #tpu.memory_space<vmem>>, vector<1x8x8x128xf32>,
    return
  }
  func.func @transform_0(%arg0: i32, %arg1: i32) -> (i32, i32, i32, i32) {
    %c0_i32 = arith.constant 0 : i32
    %c0_i32_0 = arith.constant 0 : i32
    %c0_i32_1 = arith.constant 0 : i32
    %c0_i32_2 = arith.constant 0 : i32
    return %arg0, %c0_i32, %c0_i32_0, %c0_i32_1 : i32, i32, i32, i32
  }
  func.func @transform_1(%arg0: i32, %arg1: i32) -> (i32, i32, i32, i32) {
    %c0_i32 = arith.constant 0 : i32
    %c0_i32_0 = arith.constant 0 : i32
    %c0_i32_1 = arith.constant 0 : i32
    %c0_i32_2 = arith.constant 0 : i32
    return %c0_i32, %c0_i32_0, %c0_i32_1, %arg1 : i32, i32, i32, i32
  }
  func.func @transform_2(%arg0: i32, %arg1: i32) -> (i32, i32) {
    %c0_i32 = arith.constant 0 : i32
    %c0_i32_0 = arith.constant 0 : i32
    return %c0_i32, %arg1 : i32, i32
  }
  func.func @transform_3(%arg0: i32, %arg1: i32) -> (i32, i32, i32, i32) {
    %c0_i32 = arith.constant 0 : i32
    %c0_i32_0 = arith.constant 0 : i32
    %c0_i32_1 = arith.constant 0 : i32
    return %arg0, %c0_i32, %c0_i32_0, %arg1 : i32, i32, i32, i32
  }
}

module attributes {stable_mosaic.version = 11 : i64} {
  func.func @_bn_apply_relu_kernel(%arg0: i32, %arg1: memref<64x128xf32, #tpu.memory_space<vmem>>, %arg2: memref<1x128xf32, #tpu.memory_space<vmem>>, %arg3: memref<1x128xf32, #tpu.memory_space<vmem>>, %arg4: memref<64x128xf32, #tpu.memory_space<vmem>>) attributes {dimension_semantics = [#tpu.dimension_semantics<parallel>], iteration_bounds = array<i64: 2>, scalar_prefetch = 0 : i64, scratch_operands = 0 : i64, tpu.core_type = #tpu.core_type<tc>, window_params = [{transform_indices = @transform_0, window_bounds = array<i64: 64, 128>}, {pipeline_mode = #tpu.pipeline_mode<synchronous>, transform_indices = @transform_1, window_bounds = array<i64: 1, 128>}, {pipeline_mode = #tpu.pipeline_mode<synchronous>, transform_indices = @transform_2, window_bounds = array<i64: 1, 128>}, {transform_indices = @transform_3, window_bounds = array<i64: 64, 128>}]} {
    %c0 = arith.constant 0 : index
    %c0_0 = arith.constant 0 : index
    %0 = vector.load %arg1[%c0, %c0_0] : memref<64x128xf32, #tpu.memory_space<vmem>>, vector<64x128xf32>
    %c0_1 = arith.constant 0 : index
    %c0_2 = arith.constant 0 : index
    %1 = vector.load %arg2[%c0_1, %c0_2] : memref<1x128xf32, #tpu.memory_space<vmem>>, vector<1x128xf32>
    %2 = vector.broadcast %1 : vector<1x128xf32> to vector<64x128xf32>
    %3 = arith.mulf %0, %2 : vector<64x128xf32>
    %c0_3 = arith.constant 0 : index
    %c0_4 = arith.constant 0 : index
    %4 = vector.load %arg3[%c0_3, %c0_4] : memref<1x128xf32, #tpu.memory_space<vmem>>, vector<1x128xf32>
    %5 = vector.broadcast %4 : vector<1x128xf32> to vector<64x128xf32>
    %6 = arith.addf %3, %5 : vector<64x128xf32>
    %cst = arith.constant 0.000000e+00 : f32
    %7 = vector.broadcast %cst : f32 to vector<64x128xf32>
    %8 = arith.maximumf %6, %7 : vector<64x128xf32>
    %c0_5 = arith.constant 0 : index
    %c0_6 = arith.constant 0 : index
    %9 = vector.load %arg4[%c0_5, %c0_6] : memref<64x128xf32, #tpu.memory_space<vmem>>, vector<64x128xf32>
    tpu.vector_store %arg4[%c0_5, %c0_6], %8 {strides = array<i32>} : memref<64x128xf32, #tpu.memory_space<vmem>>, vector<64x128xf32>,
    return
  }
  func.func @transform_0(%arg0: i32) -> (i32, i32) {
    %c0_i32 = arith.constant 0 : i32
    %c0_i32_0 = arith.constant 0 : i32
    return %arg0, %c0_i32 : i32, i32
  }
  func.func @transform_1(%arg0: i32) -> (i32, i32) {
    %c0_i32 = arith.constant 0 : i32
    %c0_i32_0 = arith.constant 0 : i32
    %c0_i32_1 = arith.constant 0 : i32
    return %c0_i32, %c0_i32_0 : i32, i32
  }
  func.func @transform_2(%arg0: i32) -> (i32, i32) {
    %c0_i32 = arith.constant 0 : i32
    %c0_i32_0 = arith.constant 0 : i32
    %c0_i32_1 = arith.constant 0 : i32
    return %c0_i32, %c0_i32_0 : i32, i32
  }
  func.func @transform_3(%arg0: i32) -> (i32, i32) {
    %c0_i32 = arith.constant 0 : i32
    %c0_i32_0 = arith.constant 0 : i32
    return %arg0, %c0_i32 : i32, i32
  }
}

</mosaic_0001>

<bundles_post_ra>
// kernel: down_forward.9
= control target key start
LH: loop header
LB: loop body
LE: loop exit
PB: predicated region body
PF: predicated region fallthrough
CT: control target
= control target key end

     0   :  { %s259_s9 = smov 0   ;;  %s291_s0 = inlined_call_operand.vmem [shape: f32[128,128], index: 0, kind: input, shape index: {}]   ;;  %s292_s1 = inlined_call_operand.vmem [shape: f32[1,128], index: 1, kind: output, shape index: {0}]   ;;  %s293_s2 = inlined_call_operand.vmem [shape: f32[1,128], index: 2, kind: output, shape index: {1}]  }
   0x1 LB: > { %s217_s10 = sadd.s32 4294967295, %s241_s9   ;;  %p220_p0 = scmp.ge.s32.totalorder %s241_s9, 1  ;;  %s241_s9 = sphi %s259_s9, %s13_s9  }
   0x2   : > { %p106_p1 = scmp.lt.s32.totalorder %s241_s9, 3 }
   0x4   : > { %p107_p2 = pnand %p220_p0, %p106_p1 }
   0x5   : > { %s221_s11 = sshll.u32 (!%p107_p2), %s217_s10, 3  ;;  %p223_p4 = scmp.ne.s32.totalorder (!%p107_p2), %s217_s10, 0 }
   0x6   : > { %110 = sbr.rel (%p107_p2) target bundleno = 51 (0x33), region = 24  ;;  %p124_p3 = scmp.lt.s32.totalorder (!%p107_p2), %s221_s11, 15 }
   0xb   : > { %s295_s11 = smov (!%p124_p3, %s221_s11), 15  ;;  %132 = sbr.rel (%p223_p4) target bundleno = 19 (0x13), region = 28 }
   0xc   : > { %s222_s12 = sshll.u32 %s295_s11, 3 }
   0xd   : > { %s127_s15 = scalar_lea.vmem %s291_s0, %s222_s12 }
  0x10   : > { %v243_v0 = vmov 0.0  }
  0x11   : > { %133 = vst [vmem:[%s292_s1] sm:$0x1] %v243_v0 }
  0x12   : > { %134 = vst [vmem:[%s293_s2] sm:$0x1] %v243_v0 }
  0x13 PF: > { %v135_v1 = vld [vmem:[%s127_s15] sm:$0xff]  ;;  %v136_v2 = vld [vmem:[%s127_s15 + $0x8] sm:$0xff]  ;;  %v137_v3 = vld [vmem:[%s127_s15 + $0x10] sm:$0xff] }
  0x14   : > { %v138_v4 = vld [vmem:[%s127_s15 + $0x18] sm:$0xff]  ;;  %v144_v5 = vadd.f32 %v136_v2, %v135_v1  ;;  %v160_v6 = vmul.f32 %v135_v1, %v135_v1  ;;  %v161_v7 = vmul.f32 %v136_v2, %v136_v2  ;;  %v162_v8 = vmul.f32 %v137_v3, %v137_v3  ;;  %v139_v9 = vld [vmem:[%s127_s15 + $0x20] sm:$0xff]  ;;  %v140_v13 = vld [vmem:[%s127_s15 + $0x28] sm:$0xff] }
  0x15   : > { %v163_v11 = vmul.f32 %v138_v4, %v138_v4  ;;  %v164_v15 = vmul.f32 %v139_v9, %v139_v9  ;;  %v141_v17 = vld [vmem:[%s127_s15 + $0x30] sm:$0xff]  ;;  %v165_v19 = vmul.f32 %v140_v13, %v140_v13  ;;  %v142_v21 = vld [vmem:[%s127_s15 + $0x38] sm:$0xff] }
  0x16   : > { %v145_v10 = vadd.f32 %v144_v5, %v137_v3  ;;  %v168_v12 = vadd.f32 %v161_v7, %v160_v6  ;;  %v166_v23 = vmul.f32 %v141_v17, %v141_v17  ;;  %v167_v26 = vmul.f32 %v142_v21, %v142_v21 }
  0x18   : > { %v146_v14 = vadd.f32 %v145_v10, %v138_v4  ;;  %v169_v16 = vadd.f32 %v168_v12, %v162_v8  ;;  %v143_v40 = vld [vmem:[%s292_s1] sm:$0x1] }
  0x19   : > { %v159_v43 = vld [vmem:[%s293_s2] sm:$0x1] }
  0x1a   : > { %v147_v18 = vadd.f32 %v146_v14, %v139_v9  ;;  %v170_v20 = vadd.f32 %v169_v16, %v163_v11 }
  0x1c   : > { %v148_v22 = vadd.f32 %v147_v18, %v140_v13  ;;  %v171_v24 = vadd.f32 %v170_v20, %v164_v15 }
  0x1e   : > { %v149_v25 = vadd.f32 %v148_v22, %v141_v17  ;;  %v172_v27 = vadd.f32 %v171_v24, %v165_v19 }
  0x20   : > { %v150_v28 = vadd.f32 %v149_v25, %v142_v21  ;;  %v173_v29 = vadd.f32 %v172_v27, %v166_v23 }
  0x22   : > { %v151_v30 = vrot.slane %v150_v28, 4  ;;  %v174_v31 = vadd.f32 %v173_v29, %v167_v26 }
  0x24   : > { %v152_v32 = vadd.f32 %v151_v30, %v150_v28  ;;  %v175_v33 = vrot.slane %v174_v31, 4 }
  0x26   : > { %v153_v34 = vrot.slane %v152_v32, 2  ;;  %v176_v35 = vadd.f32 %v175_v33, %v174_v31 }
  0x28   : > { %v154_v36 = vadd.f32 %v153_v34, %v152_v32  ;;  %v177_v37 = vrot.slane %v176_v35, 2 }
  0x2a   : > { %v155_v38 = vrot.slane %v154_v36, 1  ;;  %v178_v39 = vadd.f32 %v177_v37, %v176_v35 }
  0x2c   : > { %v156_v41 = vadd.f32 %v155_v38, %v154_v36  ;;  %v179_v42 = vrot.slane %v178_v39, 1 }
  0x2e   : > { %v157_v44 = vadd.f32 %v156_v41, %v143_v40  ;;  %v180_v45 = vadd.f32 %v179_v42, %v178_v39 }
  0x30   : > { %158 = vst [vmem:[%s292_s1] sm:$0x1] %v157_v44  ;;  %v181_v46 = vadd.f32 %v180_v45, %v159_v43 }
  0x32   : > { %182 = vst [vmem:[%s293_s2] sm:$0x1] %v181_v46 }
  0x33 PF: > { %s13_s9 = sadd.s32 1, %s241_s9  }
  0x34   : > { %p10_p5 = scmp.ge.s32.totalorder %s13_s9, 4  }
  0x36   :  { %12 = sbr.rel (!%p10_p5) target bundleno = 1 (0x1), region = 62 }

// kernel: down_forward.10
= control target key start
LH: loop header
LB: loop body
LE: loop exit
PB: predicated region body
PF: predicated region fallthrough
CT: control target
= control target key end

     0   :  { %s358_s12 = smov 0   ;;  %s385_s0 = inlined_call_operand.vmem [shape: f32[128,128], index: 0, kind: input, shape index: {}]   ;;  %s386_s1 = inlined_call_operand.vmem [shape: f32[1,128], index: 1, kind: input, shape index: {}]   ;;  %s387_s2 = inlined_call_operand.vmem [shape: f32[1,128], index: 2, kind: input, shape index: {}]   ;;  %s388_s3 = inlined_call_operand.vmem [shape: bf16[128,128], index: 3, kind: output, shape index: {}]  }
   0x1 LB: > { %s286_s13 = sadd.s32 4294967295, %s336_s12   ;;  %p290_p0 = scmp.ge.s32.totalorder %s336_s12, 1  ;;  %s336_s12 = sphi %s358_s12, %s13_s12  }
   0x2   : > { %p138_p1 = scmp.lt.s32.totalorder %s336_s12, 3 }
   0x4   : > { %p139_p2 = pnand %p290_p0, %p138_p1 }
   0x5   : > { %s291_s14 = sshll.u32 (!%p139_p2), %s286_s13, 3 }
   0x6   : > { %142 = sbr.rel (%p139_p2) target bundleno = 27 (0x1b), region = 32  ;;  %p163_p3 = scmp.lt.s32.totalorder (!%p139_p2), %s291_s14, 15 }
   0xb   : > { %s390_s14 = smov (!%p163_p3, %s291_s14), 15  ;;  %v328_v0 = vld [vmem:[%s386_s1] ss:$0 sm:$0xff] }
   0xc   : > { %s292_s17 = sshll.u32 %s390_s14, 3  ;;  %v329_v1 = vld [vmem:[%s387_s2] ss:$0 sm:$0xff]  ;;  %s294_s23 = sshll.u32 %s390_s14, 2 }
   0xd   : > { %s166_s20 = scalar_lea.vmem %s385_s0, %s292_s17  ;;  %s172_s26 = scalar_lea.vmem %s388_s3, %s294_s23 }
   0xe   : > { %v174_v2 = vld [vmem:[%s166_s20] sm:$0xff]  ;;  %v175_v3 = vld [vmem:[%s166_s20 + $0x8] sm:$0xff]  ;;  %v176_v4 = vld [vmem:[%s166_s20 + $0x10] sm:$0xff] }
   0xf   : > { %v186_v5 = vmul.f32 %v328_v0, %v174_v2  ;;  %v187_v6 = vmul.f32 %v328_v0, %v175_v3  ;;  %v177_v7 = vld [vmem:[%s166_s20 + $0x18] sm:$0xff]  ;;  %v188_v8 = vmul.f32 %v328_v0, %v176_v4  ;;  %v178_v9 = vld [vmem:[%s166_s20 + $0x20] sm:$0xff]  ;;  %v179_v10 = vld [vmem:[%s166_s20 + $0x28] sm:$0xff] }
  0x10   : > { %v189_v11 = vmul.f32 %v328_v0, %v177_v7  ;;  %v190_v12 = vmul.f32 %v328_v0, %v178_v9  ;;  %v191_v13 = vmul.f32 %v328_v0, %v179_v10  ;;  %v180_v14 = vld [vmem:[%s166_s20 + $0x30] sm:$0xff]  ;;  %v181_v15 = vld [vmem:[%s166_s20 + $0x38] sm:$0xff] }
  0x11   : > { %v198_v16 = vadd.f32 %v329_v1, %v186_v5  ;;  %v199_v17 = vadd.f32 %v329_v1, %v187_v6  ;;  %v200_v18 = vadd.f32 %v329_v1, %v188_v8  ;;  %v192_v19 = vmul.f32 %v328_v0, %v180_v14 }
  0x12   : > { %v201_v20 = vadd.f32 %v329_v1, %v189_v11  ;;  %v202_v21 = vadd.f32 %v329_v1, %v190_v12  ;;  %v203_v22 = vadd.f32 %v329_v1, %v191_v13  ;;  %v193_v23 = vmul.f32 %v328_v0, %v181_v15 }
  0x13   : > { %v206_v24 = vmax.f32 %v198_v16, 0.0  ;;  %v207_v25 = vmax.f32 %v199_v17, 0.0  ;;  %v208_v26 = vmax.f32 %v200_v18, 0.0  ;;  %v204_v27 = vadd.f32 %v329_v1, %v192_v19 }
  0x14   : > { %v209_v28 = vmax.f32 %v201_v20, 0.0  ;;  %v210_v29 = vmax.f32 %v202_v21, 0.0  ;;  %v211_v30 = vmax.f32 %v203_v22, 0.0  ;;  %v205_v31 = vadd.f32 %v329_v1, %v193_v23 }
  0x15   : > { %v300_v32 = vpack.c.bf16 %v207_v25, %v206_v24  ;;  %v212_v33 = vmax.f32 %v204_v27, 0.0 }
  0x16   : > { %v305_v34 = vpack.c.bf16 %v209_v28, %v208_v26  ;;  %v310_v35 = vpack.c.bf16 %v211_v30, %v210_v29  ;;  %v213_v36 = vmax.f32 %v205_v31, 0.0 }
  0x17   : > { %301 = vst [vmem:[%s172_s26] sm:$0xff] %v300_v32  }
  0x18   : > { %317 = vst [vmem:[%s172_s26 + $0x8] sm:$0xff] %v305_v34   ;;  %v315_v37 = vpack.c.bf16 %v213_v36, %v212_v33 }
  0x19   : > { %318 = vst [vmem:[%s172_s26 + $0x10] sm:$0xff] %v310_v35  }
  0x1a   : > { %319 = vst [vmem:[%s172_s26 + $0x18] sm:$0xff] %v315_v37  }
  0x1b PF: > { %s13_s12 = sadd.s32 1, %s336_s12  }
  0x1c   : > { %p10_p4 = scmp.ge.s32.totalorder %s13_s12, 4  }
  0x1e   :  { %12 = sbr.rel (!%p10_p4) target bundleno = 1 (0x1), region = 62 }

// kernel: down_forward.7
= control target key start
LH: loop header
LB: loop body
LE: loop exit
PB: predicated region body
PF: predicated region fallthrough
CT: control target
= control target key end

     0   :  { %s911_s6 = smov 0   ;;  %s1480_s0 = inlined_call_operand.vmem [shape: bf16[2,16,16,4], index: 0, kind: input, shape index: {}]   ;;  %s1481_s1 = inlined_call_operand.vmem [shape: bf16[2,8,8,4], index: 1, kind: output, shape index: {}]  }
   0x1 LB: > { %s769_s7 = sadd.s32 4294967295, %s899_s6   ;;  %p773_p0 = scmp.ge.s32.totalorder %s899_s6, 1  ;;  %s899_s6 = sphi %s911_s6, %s11_s6  }
   0x2   : > { %p87_p1 = scmp.lt.s32.totalorder %s899_s6, 3 }
   0x4   : > { %p88_p2 = pnand %p773_p0, %p87_p1 }
   0x5   : > { %p107_p3 = scmp.lt.s32.totalorder (!%p88_p2), %s769_s7, 1 }
   0x6   : > { %91 = sbr.rel (%p88_p2) target bundleno = 100 (0x64), region = 24 }
   0xb   : > { %s1499_s7 = smov (!%p107_p3, %s769_s7), 1  ;;  %vm181_vm0 = vcmask 31744   ;;  %vm270_vm1 = vcmask 24576   ;;  %vm271_vm2 = vsmask.f32 256  ;;  %vm403_vm4 = vcmask 25601  }
   0xc   : > { %s804_s8 = sshll.u32 %s1499_s7, 7  ;;  %s805_s12 = sshll.u32 %s1499_s7, 5  ;;  %vm984_vm3 = vmand %vm270_vm1, %vm271_vm2  ;;  %vm404_vm5 = vsmask.f32 1280  ;;  %vm544_vm7 = vcmask 26626   ;;  %vm653_vm11 = vcmask 27651  }
   0xd   : > { %s925_s11 = scalar_lea.vmem %s1480_s0, %s804_s8  ;;  %s970_s15 = scalar_lea.vmem %s1481_s1, %s805_s12  ;;  %vm1067_vm6 = vmand %vm403_vm4, %vm404_vm5  ;;  %vm545_vm8 = vsmask.f32 2304  ;;  %vm345_vm10 = vsmask.f32 7938  ;;  %vm654_vm12 = vsmask.f32 3328 }
   0xe   : > { %v928_v0 = vld [vmem:[%s925_s11] sm:$0xff]   ;;  %v931_v1 = vld [vmem:[%s925_s11 + $0x8] sm:$0xff]   ;;  %v936_v4 = vld [vmem:[%s925_s11 + $0x10] sm:$0xff]   ;;  %vm454_vm14 = vsmask.f32 7942 }
   0xf   : > { %v808_v2 = vunpack.c.l.bf16 %v928_v0  ;;  %v812_v3 = vunpack.c.l.bf16 %v931_v1  ;;  %v939_v5 = vld [vmem:[%s925_s11 + $0x18] sm:$0xff]   ;;  %v816_v6 = vunpack.c.l.bf16 %v936_v4  ;;  %v944_v8 = vld [vmem:[%s925_s11 + $0x20] sm:$0xff]   ;;  %v947_v9 = vld [vmem:[%s925_s11 + $0x28] sm:$0xff]   ;;  %v809_v40 = vunpack.c.h.bf16 %v928_v0 }
  0x10   : > { %v820_v7 = vunpack.c.l.bf16 %v939_v5  ;;  %v824_v12 = vunpack.c.l.bf16 %v944_v8  ;;  %v954_v13 = vld [vmem:[%s925_s11 + $0x30] sm:$0xff]   ;;  %v957_v14 = vld [vmem:[%s925_s11 + $0x38] sm:$0xff]   ;;  %v828_v18 = vunpack.c.l.bf16 %v947_v9  ;;  %v965_v22 = vld [vmem:[%s925_s11 + $0x40] sm:$0xff]   ;;  %v813_v50 = vunpack.c.h.bf16 %v931_v1 }
  0x11   : > { %v182_v10 = vsel %vm181_vm0, %v808_v2, -inf  ;;  %v183_v11 = vsel %vm181_vm0, %v812_v3, -inf  ;;  %v188_v16 = vsel %vm181_vm0, %v816_v6, -inf  ;;  %v832_v21 = vunpack.c.l.bf16 %v954_v13  ;;  %v975_v26 = vld [vmem:[%s925_s11 + $0x48] sm:$0xff]   ;;  %v979_v30 = vld [vmem:[%s925_s11 + $0x50] sm:$0xff]   ;;  %v1000_v49 = vld [vmem:[%s925_s11 + $0x58] sm:$0xff]  }
  0x12   : > { %v184_v15 = vmax.f32 %v182_v10, %v183_v11  ;;  %v189_v17 = vsel %vm181_vm0, %v820_v7, -inf  ;;  %v194_v20 = vsel %vm181_vm0, %v824_v12, -inf  ;;  %v195_v24 = vsel %vm181_vm0, %v828_v18, -inf  ;;  %v273_v35 = vld [vmem:[%s970_s15] sm:$0x1]  ;;  %v1019_v60 = vld [vmem:[%s925_s11 + $0x68] sm:$0xff]   ;;  %vm1168_vm9 = vmand %vm544_vm7, %vm545_vm8 }
  0x13   : > { %v190_v19 = vmax.f32 %v188_v16, %v189_v17  ;;  %v836_v25 = vunpack.c.l.bf16 %v957_v14  ;;  %v196_v28 = vmax.f32 %v194_v20, %v195_v24  ;;  %v200_v29 = vsel %vm181_vm0, %v832_v21, -inf  ;;  %v276_v42 = vld [vmem:[%s970_s15 + $0x4] sm:$0x1]  ;;  %v279_v53 = vld [vmem:[%s970_s15 + $0x8] sm:$0x1]  ;;  %v1034_v12 = vld [vmem:[%s925_s11 + $0x70] sm:$0xff]  }
  0x14   : > { %v238_v23 = vrot.slane %v184_v15, 1  ;;  %v840_v33 = vunpack.c.l.bf16 %v965_v22  ;;  %v844_v39 = vunpack.c.l.bf16 %v975_v26  ;;  %v848_v44 = vunpack.c.l.bf16 %v979_v30  ;;  %v1009_v55 = vld [vmem:[%s925_s11 + $0x60] sm:$0xff]   ;;  %v282_v62 = vld [vmem:[%s970_s15 + $0xc] sm:$0x1]  ;;  %v285_v24 = vld [vmem:[%s970_s15 + $0x10] sm:$0x1] }
  0x15   : > { %v239_v27 = vrot.slane %v190_v19, 1  ;;  %v201_v32 = vsel %vm181_vm0, %v836_v25, -inf  ;;  %v240_v37 = vrot.slane %v196_v28, 1  ;;  %v817_v52 = vunpack.c.h.bf16 %v936_v4  ;;  %vm1225_vm13 = vmand %vm653_vm11, %vm654_vm12 }
  0x16   : > { %v254_v31 = vmax.f32 %v184_v15, %v238_v23  ;;  %v202_v38 = vmax.f32 %v200_v29, %v201_v32  ;;  %v206_v43 = vsel %vm181_vm0, %v840_v33, -inf  ;;  %v207_v48 = vsel %vm181_vm0, %v844_v39, -inf  ;;  %vm1282_vm15 = vmand %vm270_vm1, %vm345_vm10 }
  0x17   : > { %v255_v36 = vmax.f32 %v190_v19, %v239_v27  ;;  %v256_v46 = vmax.f32 %v196_v28, %v240_v37  ;;  %v208_v54 = vmax.f32 %v206_v43, %v207_v48  ;;  %v821_v56 = vunpack.c.h.bf16 %v939_v5  ;;  %v1041_v19 = vld [vmem:[%s925_s11 + $0x78] sm:$0xff]   ;;  %v406_v37 = vld [vmem:[%s970_s15] sm:$0x2]  ;;  %v288_v43 = vld [vmem:[%s970_s15 + $0x14] sm:$0x1] }
  0x18   : > { %v991_v41 = vpack.c.bf16 %v254_v31, %v254_v31  ;;  %v241_v47 = vrot.slane %v202_v38, 1  ;;  %v825_v61 = vunpack.c.h.bf16 %v944_v8  ;;  %v852_v2 = vunpack.c.l.bf16 %v1000_v49  ;;  %v412_v48 = vld [vmem:[%s970_s15 + $0x8] sm:$0x2]  ;;  %vm1330_vm1 = vmand %vm403_vm4, %vm454_vm14 }
  0x19   : > { %v996_v45 = vpack.c.bf16 %v255_v36, %v255_v36  ;;  %v1016_v58 = vpack.c.bf16 %v256_v46, %v256_v46  ;;  %v242_v63 = vrot.slane %v208_v54, 1  ;;  %v212_v3 = vsel %vm181_vm0, %v848_v44, -inf }
  0x1a   : > { %v274_v51 = vsel %vm984_vm3, %v991_v41, %v273_v35  ;;  %v257_v59 = vmax.f32 %v202_v38, %v241_v47  ;;  %v829_v6 = vunpack.c.h.bf16 %v947_v9  ;;  %v856_v11 = vunpack.c.l.bf16 %v1009_v55  ;;  %v409_v47 = vld [vmem:[%s970_s15 + $0x4] sm:$0x2] }
  0x1b   : > { %275 = vst [vmem:[%s970_s15] sm:$0x1] %v274_v51  ;;  %v277_v57 = vsel %vm984_vm3, %v996_v45, %v276_v42  ;;  %v280_v7 = vsel %vm984_vm3, %v1016_v58, %v279_v53  ;;  %v833_v15 = vunpack.c.h.bf16 %v954_v13  ;;  %v258_v16 = vmax.f32 %v208_v54, %v242_v63 }
  0x1c   : > { %278 = vst [vmem:[%s970_s15 + $0x4] sm:$0x1] %v277_v57  ;;  %v1030_v10 = vpack.c.bf16 %v257_v59, %v257_v59  ;;  %v213_v17 = vsel %vm181_vm0, %v852_v2, -inf  ;;  %v860_v18 = vunpack.c.l.bf16 %v1019_v60  ;;  %v837_v20 = vunpack.c.h.bf16 %v957_v14 }
  0x1d   : > { %281 = vst [vmem:[%s970_s15 + $0x8] sm:$0x1] %v280_v7  ;;  %v841_v23 = vunpack.c.h.bf16 %v965_v22  ;;  %v214_v25 = vmax.f32 %v212_v3, %v213_v17  ;;  %v1050_v27 = vpack.c.bf16 %v258_v16, %v258_v16  ;;  %v218_v28 = vsel %vm181_vm0, %v856_v11, -inf  ;;  %v415_v3 = vld [vmem:[%s970_s15 + $0xc] sm:$0x2] }
  0x1e   : > { %v283_v21 = vsel %vm984_vm3, %v1030_v10, %v282_v62  ;;  %v219_v29 = vsel %vm181_vm0, %v860_v18, -inf  ;;  %v864_v31 = vunpack.c.l.bf16 %v1034_v12  ;;  %v845_v32 = vunpack.c.h.bf16 %v975_v26 }
  0x1f   : > { %284 = vst [vmem:[%s970_s15 + $0xc] sm:$0x1] %v283_v21  ;;  %v243_v33 = vrot.slane %v214_v25, 1  ;;  %v220_v35 = vmax.f32 %v218_v28, %v219_v29  ;;  %v868_v36 = vunpack.c.l.bf16 %v1041_v19  ;;  %v286_v38 = vsel %vm984_vm3, %v1050_v27, %v285_v24  ;;  %v291_v21 = vld [vmem:[%s970_s15 + $0x18] sm:$0x1] }
  0x20   : > { %v849_v39 = vunpack.c.h.bf16 %v979_v30  ;;  %v853_v42 = vunpack.c.h.bf16 %v1000_v49  ;;  %v224_v44 = vsel %vm181_vm0, %v864_v31, -inf  ;;  %287 = vst [vmem:[%s970_s15 + $0x10] sm:$0x1] %v286_v38  ;;  %v786_v57 = vrot.slane %v991_v41, 9  ;;  %v418_v29 = vld [vmem:[%s970_s15 + $0x10] sm:$0x2] }
  0x21   : > { %v259_v51 = vmax.f32 %v214_v25, %v243_v33  ;;  %v244_v53 = vrot.slane %v220_v35, 1  ;;  %v225_v54 = vsel %vm181_vm0, %v868_v36, -inf  ;;  %v787_v62 = vrot.slane %v996_v45, 9  ;;  %v294_v36 = vld [vmem:[%s970_s15 + $0x1c] sm:$0x1] }
  0x22   : > { %v226_v59 = vmax.f32 %v224_v44, %v225_v54  ;;  %v788_v63 = vrot.slane %v1016_v58, 9  ;;  %v789_v2 = vrot.slane %v1030_v10, 9  ;;  %v407_v16 = vsel %vm1067_vm6, %v786_v57, %v406_v37  ;;  %v421_v38 = vld [vmem:[%s970_s15 + $0x14] sm:$0x2]  ;;  %v424_v54 = vld [vmem:[%s970_s15 + $0x18] sm:$0x2] }
  0x23   : > { %v1080_v7 = vpack.c.bf16 %v259_v51, %v259_v51  ;;  %v260_v11 = vmax.f32 %v220_v35, %v244_v53  ;;  %v790_v17 = vrot.slane %v1050_v27, 9  ;;  %v857_v18 = vunpack.c.h.bf16 %v1009_v55  ;;  %408 = vst [vmem:[%s970_s15] sm:$0x2] %v407_v16 }
  0x24   : > { %v245_v24 = vrot.slane %v226_v59, 1  ;;  %v410_v25 = vsel %vm1067_vm6, %v787_v62, %v409_v47  ;;  %v413_v28 = vsel %vm1067_vm6, %v788_v63, %v412_v48  ;;  %v861_v33 = vunpack.c.h.bf16 %v1019_v60 }
  0x25   : > { %v289_v31 = vsel %vm984_vm3, %v1080_v7, %v288_v43  ;;  %v1097_v35 = vpack.c.bf16 %v260_v11, %v260_v11  ;;  %411 = vst [vmem:[%s970_s15 + $0x4] sm:$0x2] %v410_v25  ;;  %v416_v37 = vsel %vm1067_vm6, %v789_v2, %v415_v3  ;;  %v791_v47 = vrot.slane %v1080_v7, 9 }
  0x26   : > { %290 = vst [vmem:[%s970_s15 + $0x14] sm:$0x1] %v289_v31  ;;  %v261_v44 = vmax.f32 %v226_v59, %v245_v24  ;;  %v185_v43 = vsel %vm181_vm0, %v809_v40, -inf  ;;  %v186_v60 = vsel %vm181_vm0, %v813_v50, -inf  ;;  %v419_v51 = vsel %vm1067_vm6, %v790_v17, %v418_v29  ;;  %v427_v50 = vld [vmem:[%s970_s15 + $0x1c] sm:$0x2] }
  0x27   : > { %v292_v48 = vsel %vm984_vm3, %v1097_v35, %v291_v21  ;;  %414 = vst [vmem:[%s970_s15 + $0x8] sm:$0x2] %v413_v28  ;;  %v792_v53 = vrot.slane %v1097_v35, 9  ;;  %v187_v57 = vmax.f32 %v185_v43, %v186_v60  ;;  %v865_v0 = vunpack.c.h.bf16 %v1034_v12  ;;  %v550_v31 = vld [vmem:[%s970_s15 + $0x4] sm:$0x4] }
  0x28   : > { %293 = vst [vmem:[%s970_s15 + $0x18] sm:$0x1] %v292_v48  ;;  %v869_v1 = vunpack.c.h.bf16 %v1041_v19  ;;  %v1123_v40 = vpack.c.bf16 %v261_v44, %v261_v44  ;;  %v422_v59 = vsel %vm1067_vm6, %v791_v47, %v421_v38  ;;  %v191_v63 = vsel %vm181_vm0, %v817_v52, -inf  ;;  %v556_v48 = vld [vmem:[%s970_s15 + $0xc] sm:$0x4] }
  0x29   : > { %417 = vst [vmem:[%s970_s15 + $0xc] sm:$0x2] %v416_v37  ;;  %v488_v62 = vrot.slane %v187_v57, 1  ;;  %v425_v19 = vsel %vm1067_vm6, %v792_v53, %v424_v54  ;;  %v192_v3 = vsel %vm181_vm0, %v821_v56, -inf  ;;  %v197_v34 = vsel %vm181_vm0, %v825_v61, -inf }
  0x2a   : > { %v295_v12 = vsel %vm984_vm3, %v1123_v40, %v294_v36  ;;  %420 = vst [vmem:[%s970_s15 + $0x10] sm:$0x2] %v419_v51  ;;  %v793_v2 = vrot.slane %v1123_v40, 9  ;;  %v193_v52 = vmax.f32 %v191_v63, %v192_v3  ;;  %v198_v11 = vsel %vm181_vm0, %v829_v6, -inf  ;;  %v547_v61 = vld [vmem:[%s970_s15] sm:$0x4] }
  0x2b   : > { %296 = vst [vmem:[%s970_s15 + $0x1c] sm:$0x1] %v295_v12  ;;  %v504_v4 = vmax.f32 %v187_v57, %v488_v62  ;;  %v199_v17 = vmax.f32 %v197_v34, %v198_v11  ;;  %v203_v5 = vsel %vm181_vm0, %v833_v15, -inf  ;;  %v204_v56 = vsel %vm181_vm0, %v837_v20, -inf  ;;  %v562_v62 = vld [vmem:[%s970_s15 + $0x14] sm:$0x4] }
  0x2c   : > { %423 = vst [vmem:[%s970_s15 + $0x14] sm:$0x2] %v422_v59  ;;  %v428_v16 = vsel %vm1067_vm6, %v793_v2, %v427_v50  ;;  %v489_v9 = vrot.slane %v193_v52, 1  ;;  %v205_v21 = vmax.f32 %v203_v5, %v204_v56  ;;  %v209_v6 = vsel %vm181_vm0, %v841_v23, -inf  ;;  %v559_v59 = vld [vmem:[%s970_s15 + $0x10] sm:$0x4] }
  0x2d   : > { %426 = vst [vmem:[%s970_s15 + $0x18] sm:$0x2] %v425_v19  ;;  %v1159_v8 = vpack.c.bf16 %v504_v4, %v504_v4  ;;  %v490_v14 = vrot.slane %v199_v17, 1  ;;  %v210_v15 = vsel %vm181_vm0, %v845_v32, -inf  ;;  %v215_v22 = vsel %vm181_vm0, %v849_v39, -inf }
  0x2e   : > { %429 = vst [vmem:[%s970_s15 + $0x1c] sm:$0x2] %v428_v16  ;;  %v216_v20 = vsel %vm181_vm0, %v853_v42, -inf  ;;  %v505_v46 = vmax.f32 %v193_v52, %v489_v9  ;;  %v491_v24 = vrot.slane %v205_v21, 1  ;;  %v211_v25 = vmax.f32 %v209_v6, %v210_v15  ;;  %v656_v3 = vld [vmem:[%s970_s15] sm:$0x8] }
  0x2f   : > { %v528_v23 = vrot.slane %v1159_v8, 6  ;;  %v506_v28 = vmax.f32 %v199_v17, %v490_v14  ;;  %v217_v26 = vmax.f32 %v215_v22, %v216_v20  ;;  %v221_v32 = vsel %vm181_vm0, %v857_v18, -inf  ;;  %v659_v5 = vld [vmem:[%s970_s15 + $0x4] sm:$0x8]  ;;  %v568_v9 = vld [vmem:[%s970_s15 + $0x1c] sm:$0x4] }
  0x30   : > { %v222_v30 = vsel %vm181_vm0, %v861_v33, -inf  ;;  %v1188_v49 = vpack.c.bf16 %v505_v46, %v505_v46  ;;  %v507_v42 = vmax.f32 %v205_v21, %v491_v24  ;;  %v492_v29 = vrot.slane %v211_v25, 1  ;;  %v553_v33 = vld [vmem:[%s970_s15 + $0x8] sm:$0x4] }
  0x31   : > { %v548_v39 = vsel %vm1168_vm9, %v528_v23, %v547_v61  ;;  %v1192_v36 = vpack.c.bf16 %v506_v28, %v506_v28  ;;  %v493_v37 = vrot.slane %v217_v26, 1  ;;  %v223_v38 = vmax.f32 %v221_v32, %v222_v30  ;;  %v565_v61 = vld [vmem:[%s970_s15 + $0x18] sm:$0x4]  ;;  %v662_v23 = vld [vmem:[%s970_s15 + $0x8] sm:$0x8] }
  0x32   : > { %549 = vst [vmem:[%s970_s15] sm:$0x4] %v548_v39  ;;  %v227_v55 = vsel %vm181_vm0, %v865_v0, -inf  ;;  %v529_v18 = vrot.slane %v1188_v49, 6  ;;  %v1197_v44 = vpack.c.bf16 %v507_v42, %v507_v42  ;;  %v508_v47 = vmax.f32 %v211_v25, %v492_v29  ;;  %v665_v28 = vld [vmem:[%s970_s15 + $0xc] sm:$0x8] }
  0x33   : > { %v228_v43 = vsel %vm181_vm0, %v869_v1, -inf  ;;  %v530_v60 = vrot.slane %v1192_v36, 6  ;;  %v509_v51 = vmax.f32 %v217_v26, %v493_v37  ;;  %v494_v53 = vrot.slane %v223_v38, 1  ;;  %v668_v42 = vld [vmem:[%s970_s15 + $0x10] sm:$0x8] }
  0x34   : > { %v229_v54 = vmax.f32 %v227_v55, %v228_v43  ;;  %v551_v57 = vsel %vm1168_vm9, %v529_v18, %v550_v31  ;;  %v531_v0 = vrot.slane %v1197_v44, 6  ;;  %v1205_v50 = vpack.c.bf16 %v508_v47, %v508_v47  ;;  %v674_v43 = vld [vmem:[%s970_s15 + $0x18] sm:$0x8] }
  0x35   : > { %v637_v1 = vrot.slane %v1159_v8, 7  ;;  %552 = vst [vmem:[%s970_s15 + $0x4] sm:$0x4] %v551_v57  ;;  %v554_v63 = vsel %vm1168_vm9, %v530_v60, %v553_v33  ;;  %v1213_v12 = vpack.c.bf16 %v509_v51, %v509_v51  ;;  %v510_v19 = vmax.f32 %v223_v38, %v494_v53  ;;  %v671_v38 = vld [vmem:[%s970_s15 + $0x14] sm:$0x8] }
  0x36   : > { %v495_v2 = vrot.slane %v229_v54, 1  ;;  %555 = vst [vmem:[%s970_s15 + $0x8] sm:$0x4] %v554_v63  ;;  %v557_v4 = vsel %vm1168_vm9, %v531_v0, %v556_v48  ;;  %v532_v52 = vrot.slane %v1205_v50, 6  ;;  %v638_v6 = vrot.slane %v1188_v49, 7 }
  0x37   : > { %558 = vst [vmem:[%s970_s15 + $0xc] sm:$0x4] %v557_v4  ;;  %v533_v34 = vrot.slane %v1213_v12, 6  ;;  %v1222_v11 = vpack.c.bf16 %v510_v19, %v510_v19  ;;  %v657_v21 = vsel %vm1225_vm13, %v637_v1, %v656_v3  ;;  %v639_v14 = vrot.slane %v1192_v36, 7  ;;  %v347_v57 = vld [vmem:[%s970_s15] sm:$0x1] }
  0x38   : > { %v511_v16 = vmax.f32 %v229_v54, %v495_v2  ;;  %v560_v56 = vsel %vm1168_vm9, %v532_v52, %v559_v59  ;;  %v640_v46 = vrot.slane %v1197_v44, 7  ;;  %v298_v24 = vshll.u32 %v991_v41, 16  ;;  %658 = vst [vmem:[%s970_s15] sm:$0x8] %v657_v21  ;;  %v350_v1 = vld [vmem:[%s970_s15 + $0x4] sm:$0x1] }
  0x39   : > { %561 = vst [vmem:[%s970_s15 + $0x10] sm:$0x4] %v560_v56  ;;  %v563_v15 = vsel %vm1168_vm9, %v533_v34, %v562_v62  ;;  %v534_v22 = vrot.slane %v1222_v11, 6  ;;  %v660_v25 = vsel %vm1225_vm13, %v638_v6, %v659_v5  ;;  %v641_v26 = vrot.slane %v1205_v50, 7  ;;  %v353_v2 = vld [vmem:[%s970_s15 + $0x8] sm:$0x1] }
  0x3a   : > { %v1242_v20 = vpack.c.bf16 %v511_v16, %v511_v16  ;;  %564 = vst [vmem:[%s970_s15 + $0x14] sm:$0x4] %v563_v15  ;;  %v303_v32 = vshll.u32 %v996_v45, 16  ;;  %v642_v29 = vrot.slane %v1213_v12, 7  ;;  %v308_v31 = vshll.u32 %v1016_v58, 16 }
  0x3b   : > { %v566_v30 = vsel %vm1168_vm9, %v534_v22, %v565_v61  ;;  %v663_v37 = vsel %vm1225_vm13, %v639_v14, %v662_v23  ;;  %v643_v55 = vrot.slane %v1222_v11, 7  ;;  %v313_v18 = vshll.u32 %v1030_v10, 16  ;;  %661 = vst [vmem:[%s970_s15 + $0x4] sm:$0x8] %v660_v25  ;;  %v677_v10 = vld [vmem:[%s970_s15 + $0x1c] sm:$0x8] }
  0x3c   : > { %v535_v39 = vrot.slane %v1242_v20, 6  ;;  %567 = vst [vmem:[%s970_s15 + $0x18] sm:$0x4] %v566_v30  ;;  %v666_v47 = vsel %vm1225_vm13, %v640_v46, %v665_v28  ;;  %v644_v60 = vrot.slane %v1242_v20, 7  ;;  %v318_v48 = vshll.u32 %v1050_v27, 16 }
  0x3d   : > { %v669_v51 = vsel %vm1225_vm13, %v641_v26, %v668_v42  ;;  %v778_v13 = vrot.slane %v298_v24, 9  ;;  %v323_v54 = vshll.u32 %v1080_v7, 16  ;;  %664 = vst [vmem:[%s970_s15 + $0x8] sm:$0x8] %v663_v37  ;;  %v672_v27 = vsel %vm1225_vm13, %v642_v29, %v671_v38  ;;  %v356_v4 = vld [vmem:[%s970_s15 + $0xc] sm:$0x1] }
  0x3e   : > { %v569_v33 = vsel %vm1168_vm9, %v535_v39, %v568_v9  ;;  %v779_v0 = vrot.slane %v303_v32, 9  ;;  %v328_v59 = vshll.u32 %v1097_v35, 16  ;;  %667 = vst [vmem:[%s970_s15 + $0xc] sm:$0x8] %v666_v47  ;;  %v675_v62 = vsel %vm1225_vm13, %v643_v55, %v674_v43  ;;  %v359_v34 = vld [vmem:[%s970_s15 + $0x10] sm:$0x1] }
  0x3f   : > { %570 = vst [vmem:[%s970_s15 + $0x1c] sm:$0x4] %v569_v33  ;;  %v780_v7 = vrot.slane %v308_v31, 9  ;;  %v333_v63 = vshll.u32 %v1123_v40, 16  ;;  %v678_v19 = vsel %vm1225_vm13, %v644_v60, %v677_v10  ;;  %v781_v35 = vrot.slane %v313_v18, 9 }
  0x40   : > { %670 = vst [vmem:[%s970_s15 + $0x10] sm:$0x8] %v669_v51  ;;  %v348_v3 = vsel %vm1282_vm15, %v778_v13, %v347_v57  ;;  %v782_v52 = vrot.slane %v318_v48, 9  ;;  %v351_v40 = vsel %vm1282_vm15, %v779_v0, %v350_v1  ;;  %v783_v16 = vrot.slane %v323_v54, 9  ;;  %v362_v5 = vld [vmem:[%s970_s15 + $0x14] sm:$0x1] }
  0x41   : > { %673 = vst [vmem:[%s970_s15 + $0x14] sm:$0x8] %v672_v27  ;;  %vm611_vm0 = vsmask.f32 7946  ;;  %v354_v17 = vsel %vm1282_vm15, %v780_v7, %v353_v2  ;;  %v784_v56 = vrot.slane %v328_v59, 9  ;;  %v357_v61 = vsel %vm1282_vm15, %v781_v35, %v356_v4 }
  0x42   : > { %676 = vst [vmem:[%s970_s15 + $0x18] sm:$0x8] %v675_v62  ;;  %v365_v9 = vld [vmem:[%s970_s15 + $0x18] sm:$0x1]  ;;  %v785_v21 = vrot.slane %v333_v63, 9  ;;  %v360_v14 = vsel %vm1282_vm15, %v782_v52, %v359_v34  ;;  %v794_v22 = vrot.slane %v298_v24, 10  ;;  %v363_v46 = vsel %vm1282_vm15, %v783_v16, %v362_v5  ;;  %vm1378_vm3 = vmand %vm544_vm7, %vm611_vm0 }
  0x43   : > { %679 = vst [vmem:[%s970_s15 + $0x1c] sm:$0x8] %v678_v19  ;;  %v456_v6 = vld [vmem:[%s970_s15] sm:$0x2]  ;;  %v368_v15 = vld [vmem:[%s970_s15 + $0x1c] sm:$0x1]  ;;  %v366_v41 = vsel %vm1282_vm15, %v784_v56, %v365_v9 }
  0x44   : > { %349 = vst [vmem:[%s970_s15] sm:$0x1] %v348_v3  ;;  %v795_v25 = vrot.slane %v303_v32, 10  ;;  %v459_v28 = vld [vmem:[%s970_s15 + $0x4] sm:$0x2]  ;;  %v796_v24 = vrot.slane %v308_v31, 10  ;;  %v369_v30 = vsel %vm1282_vm15, %v785_v21, %v368_v15  ;;  %v797_v39 = vrot.slane %v313_v18, 10 }
  0x45   : > { %352 = vst [vmem:[%s970_s15 + $0x4] sm:$0x1] %v351_v40  ;;  %v462_v26 = vld [vmem:[%s970_s15 + $0x8] sm:$0x2]  ;;  %v465_v45 = vld [vmem:[%s970_s15 + $0xc] sm:$0x2]  ;;  %v457_v32 = vsel %vm1330_vm1, %v794_v22, %v456_v6 }
  0x46   : > { %355 = vst [vmem:[%s970_s15 + $0x8] sm:$0x1] %v354_v17  ;;  %v798_v42 = vrot.slane %v318_v48, 10  ;;  %v468_v29 = vld [vmem:[%s970_s15 + $0x10] sm:$0x2]  ;;  %v572_v58 = vshll.u32 %v1159_v8, 16  ;;  %v460_v31 = vsel %vm1330_vm1, %v795_v25, %v459_v28  ;;  %v463_v18 = vsel %vm1330_vm1, %v796_v24, %v462_v26 }
  0x47   : > { %358 = vst [vmem:[%s970_s15 + $0xc] sm:$0x1] %v357_v61  ;;  %v799_v37 = vrot.slane %v323_v54, 10  ;;  %v471_v38 = vld [vmem:[%s970_s15 + $0x14] sm:$0x2]  ;;  %v576_v55 = vshll.u32 %v1188_v49, 16  ;;  %v466_v60 = vsel %vm1330_vm1, %v797_v39, %v465_v45 }
  0x48   : > { %361 = vst [vmem:[%s970_s15 + $0x10] sm:$0x1] %v360_v14  ;;  %v800_v33 = vrot.slane %v328_v59, 10  ;;  %v474_v47 = vld [vmem:[%s970_s15 + $0x18] sm:$0x2]  ;;  %v580_v43 = vshll.u32 %v1192_v36, 16  ;;  %v469_v13 = vsel %vm1330_vm1, %v798_v42, %v468_v29 }
  0x49   : > { %364 = vst [vmem:[%s970_s15 + $0x14] sm:$0x1] %v363_v46  ;;  %v801_v48 = vrot.slane %v333_v63, 10  ;;  %v477_v51 = vld [vmem:[%s970_s15 + $0x1c] sm:$0x2]  ;;  %v584_v10 = vshll.u32 %v1197_v44, 16  ;;  %v472_v44 = vsel %vm1330_vm1, %v799_v37, %v471_v38 }
  0x4a   : > { %367 = vst [vmem:[%s970_s15 + $0x18] sm:$0x1] %v366_v41  ;;  %vm688_vm2 = vsmask.f32 7950  ;;  %v574_v53 = vrot.slane %v572_v58, 7  ;;  %v588_v54 = vshll.u32 %v1205_v50, 16  ;;  %v475_v50 = vsel %vm1330_vm1, %v800_v33, %v474_v47 }
  0x4b   : > { %370 = vst [vmem:[%s970_s15 + $0x1c] sm:$0x1] %v369_v30  ;;  %v613_v57 = vld [vmem:[%s970_s15] sm:$0x4]  ;;  %v578_v0 = vrot.slane %v576_v55, 7  ;;  %v592_v59 = vshll.u32 %v1213_v12, 16  ;;  %v478_v63 = vsel %vm1330_vm1, %v801_v48, %v477_v51  ;;  %vm1423_vm4 = vmand %vm653_vm11, %vm688_vm2 }
  0x4c   : > { %458 = vst [vmem:[%s970_s15] sm:$0x2] %v457_v32  ;;  %v616_v62 = vld [vmem:[%s970_s15 + $0x4] sm:$0x4]  ;;  %v582_v1 = vrot.slane %v580_v43, 7  ;;  %v596_v7 = vshll.u32 %v1222_v11, 16  ;;  %v586_v12 = vrot.slane %v584_v10, 7  ;;  %v614_v35 = vsel %vm1378_vm3, %v574_v53, %v613_v57 }
  0x4d   : > { %461 = vst [vmem:[%s970_s15 + $0x4] sm:$0x2] %v460_v31  ;;  %v619_v19 = vld [vmem:[%s970_s15 + $0x8] sm:$0x4]  ;;  %v600_v2 = vshll.u32 %v1242_v20, 16  ;;  %v590_v4 = vrot.slane %v588_v54, 7  ;;  %v617_v11 = vsel %vm1378_vm3, %v578_v0, %v616_v62 }
  0x4e   : > { %464 = vst [vmem:[%s970_s15 + $0x8] sm:$0x2] %v463_v18  ;;  %v622_v3 = vld [vmem:[%s970_s15 + $0xc] sm:$0x4]  ;;  %v625_v52 = vld [vmem:[%s970_s15 + $0x10] sm:$0x4]  ;;  %v620_v20 = vsel %vm1378_vm3, %v582_v1, %v619_v19 }
  0x4f   : > { %467 = vst [vmem:[%s970_s15 + $0xc] sm:$0x2] %v466_v60  ;;  %v594_v40 = vrot.slane %v592_v59, 7  ;;  %v628_v34 = vld [vmem:[%s970_s15 + $0x14] sm:$0x4]  ;;  %v598_v16 = vrot.slane %v596_v7, 7  ;;  %v623_v17 = vsel %vm1378_vm3, %v586_v12, %v622_v3  ;;  %v626_v61 = vsel %vm1378_vm3, %v590_v4, %v625_v52 }
  0x50   : > { %470 = vst [vmem:[%s970_s15 + $0x10] sm:$0x2] %v469_v13  ;;  %v631_v5 = vld [vmem:[%s970_s15 + $0x18] sm:$0x4]  ;;  %v602_v56 = vrot.slane %v600_v2, 7 }
  0x51   : > { %473 = vst [vmem:[%s970_s15 + $0x14] sm:$0x2] %v472_v44  ;;  %v634_v9 = vld [vmem:[%s970_s15 + $0x1c] sm:$0x4]  ;;  %v629_v6 = vsel %vm1378_vm3, %v594_v40, %v628_v34  ;;  %v690_v14 = vld [vmem:[%s970_s15] sm:$0x8]  ;;  %v632_v15 = vsel %vm1378_vm3, %v598_v16, %v631_v5 }
  0x52   : > { %476 = vst [vmem:[%s970_s15 + $0x18] sm:$0x2] %v475_v50  ;;  %v693_v22 = vld [vmem:[%s970_s15 + $0x4] sm:$0x8]  ;;  %v635_v23 = vsel %vm1378_vm3, %v602_v56, %v634_v9  ;;  %v696_v46 = vld [vmem:[%s970_s15 + $0x8] sm:$0x8]  ;;  %v691_v25 = vsel %vm1423_vm4, %v572_v58, %v690_v14 }
  0x53   : > { %479 = vst [vmem:[%s970_s15 + $0x1c] sm:$0x2] %v478_v63  ;;  %v699_v28 = vld [vmem:[%s970_s15 + $0xc] sm:$0x8]  ;;  %v694_v41 = vsel %vm1423_vm4, %v576_v55, %v693_v22  ;;  %v702_v24 = vld [vmem:[%s970_s15 + $0x10] sm:$0x8]  ;;  %v697_v8 = vsel %vm1423_vm4, %v580_v43, %v696_v46 }
  0x54   : > { %615 = vst [vmem:[%s970_s15] sm:$0x4] %v614_v35  ;;  %v705_v26 = vld [vmem:[%s970_s15 + $0x14] sm:$0x8]  ;;  %v700_v30 = vsel %vm1423_vm4, %v584_v10, %v699_v28  ;;  %v708_v49 = vld [vmem:[%s970_s15 + $0x18] sm:$0x8]  ;;  %v703_v39 = vsel %vm1423_vm4, %v588_v54, %v702_v24 }
  0x55   : > { %618 = vst [vmem:[%s970_s15 + $0x4] sm:$0x4] %v617_v11  ;;  %v711_v45 = vld [vmem:[%s970_s15 + $0x1c] sm:$0x8]  ;;  %v706_v36 = vsel %vm1423_vm4, %v592_v59, %v705_v26  ;;  %v709_v32 = vsel %vm1423_vm4, %v596_v7, %v708_v49 }
  0x56   : > { %621 = vst [vmem:[%s970_s15 + $0x8] sm:$0x4] %v620_v20  ;;  %v712_v42 = vsel %vm1423_vm4, %v600_v2, %v711_v45 }
  0x57   : > { %624 = vst [vmem:[%s970_s15 + $0xc] sm:$0x4] %v623_v17 }
  0x58   : > { %627 = vst [vmem:[%s970_s15 + $0x10] sm:$0x4] %v626_v61 }
  0x59   : > { %630 = vst [vmem:[%s970_s15 + $0x14] sm:$0x4] %v629_v6 }
  0x5a   : > { %633 = vst [vmem:[%s970_s15 + $0x18] sm:$0x4] %v632_v15 }
  0x5b   : > { %636 = vst [vmem:[%s970_s15 + $0x1c] sm:$0x4] %v635_v23 }
  0x5c   : > { %692 = vst [vmem:[%s970_s15] sm:$0x8] %v691_v25 }
  0x5d   : > { %695 = vst [vmem:[%s970_s15 + $0x4] sm:$0x8] %v694_v41 }
  0x5e   : > { %698 = vst [vmem:[%s970_s15 + $0x8] sm:$0x8] %v697_v8 }
  0x5f   : > { %701 = vst [vmem:[%s970_s15 + $0xc] sm:$0x8] %v700_v30 }
  0x60   : > { %704 = vst [vmem:[%s970_s15 + $0x10] sm:$0x8] %v703_v39 }
  0x61   : > { %707 = vst [vmem:[%s970_s15 + $0x14] sm:$0x8] %v706_v36 }
  0x62   : > { %710 = vst [vmem:[%s970_s15 + $0x18] sm:$0x8] %v709_v32 }
  0x63   : > { %713 = vst [vmem:[%s970_s15 + $0x1c] sm:$0x8] %v712_v42 }
  0x64 PF: > { %s11_s6 = sadd.s32 1, %s899_s6  }
  0x65   : > { %p8_p4 = scmp.ge.s32.totalorder %s11_s6, 4  }
  0x67   :  { %10 = sbr.rel (!%p8_p4) target bundleno = 1 (0x1), region = 54 }

// kernel: down_forward.8
= control target key start
LH: loop header
LB: loop body
LE: loop exit
PB: predicated region body
PF: predicated region fallthrough
CT: control target
= control target key end

     0   :  { %s1789_s12 = smov 0   ;;  %s1791_s13 = smov 0   ;;  %s2246_s0 = inlined_call_operand.vmem [shape: bf16[2,10,10,4], index: 0, kind: input, shape index: {}]   ;;  %s2247_s1 = inlined_call_operand.vmem [shape: bf16[3,3,4,128], index: 1, kind: input, shape index: {}]   ;;  %s2248_s2 = inlined_call_operand.vmem [shape: f32[1,128], index: 2, kind: input, shape index: {}]   ;;  %s2249_s3 = inlined_call_operand.vmem [shape: f32[2,8,8,128], index: 3, kind: output, shape index: {}]  }
   0x1   :  { %s1793_s14 = smov 0  }
   0x2 LB: > { %s25_s15 = sadd.s32 1, %s1763_s13  ;;  %p1525_p0 = scmp.ge.s32.totalorder %s1767_s14, 1  ;;  %s1767_s14 = sphi %s1793_s14, %s13_s14   ;;  %s1763_s13 = sphi %s1791_s13, %s2255_s13   ;;  %s1759_s12 = sphi %s1789_s12, %s2254_s12  }
   0x3   : > { %p27_p1 = scmp.ge.s32.totalorder %s25_s15, 2  ;;  %p168_p2 = scmp.lt.s32.totalorder %s1767_s14, 3 }
   0x5   : > { %s2257_s15 = smov (%p27_p1, %s25_s15), 0  ;;  %p169_p3 = pnand %p1525_p0, %p168_p2 }
   0x6   : > { %p202_p4 = scmp.lt.s32.totalorder (!%p169_p3), %s1759_s12, 1 }
   0x7   : > { %172 = sbr.rel (%p169_p3) target bundleno = 316 (0x13c), region = 32 }
   0xc   : > { %v224_v0 = vld [vmem:[%s2247_s1 + $0x2] sm:$0x3]  ;;  %vm388_vm0 = vcmask 1041408   ;;  %v225_v2 = vld [vmem:[%s2247_s1 + $0x4] sm:$0x3]  ;;  %s2259_s12 = smov (!%p202_p4, %s1759_s12), 1 }
   0xd   : > { %v390_v1 = vsel %vm388_vm0, %v224_v0, 0  ;;  %v569_v3 = vsel %vm388_vm0, %v225_v2, 0  ;;  %s1719_s20 = smul.u32 80, %s2259_s12  ;;  %v226_v4 = vld [vmem:[%s2247_s1 + $0x6] sm:$0x3]  ;;  %vm375_vm3 = vcmask 31744  }
   0xe   : > { %1716 = vmatpush.bf16.msra.mxu1 %v390_v1  ;;  %1717 = vmatpush.bf16.msra.mxu2 %v390_v1  ;;  %v223_v5 = vld [vmem:[%s2247_s1] sm:$0x3]  ;;  %v650_v6 = vsel %vm388_vm0, %v226_v4, 0  ;;  %v227_v8 = vld [vmem:[%s2247_s1 + $0x8] sm:$0x3]  ;;  %vm509_vm5 = vcmask 1042432  }
   0xf   : > { %1718 = vmatpush.bf16.msra.mxu3 %v390_v1  ;;  %399 = vmatpush.bf16.msra.mxu0 %v390_v1  ;;  %v454_v7 = vsel %vm388_vm0, %v223_v5, 0  ;;  %s1832_s29 = scalar_lea.vmem %s2246_s0, %s1719_s20  ;;  %vm248_vm1 = vsmask.f32 3328  ;;  %vm249_vm2 = vsmask.f32 7440  ;;  %v842_v9 = vsel %vm388_vm0, %v227_v8, 0 }
  0x10   : > { %v234_v10 = vld [vmem:[%s1832_s29 + $0x10] sm:$0xf]  ;;  %v235_v11 = vld [vmem:[%s1832_s29 + $0x18] sm:$0xf]  ;;  %v1838_v12 = vld [vmem:[%s1832_s29 + $0x14] sm:$0x1] }
  0x11   : > { %v1841_v13 = vld [vmem:[%s1832_s29 + $0x1c] sm:$0x1]  ;;  %v280_v14 = vshrl.u32 %v234_v10, 16  ;;  %v283_v15 = vshll.u32 %v234_v10, 16  ;;  %v289_v16 = vshll.u32 %v1838_v12, 16  ;;  %v294_v17 = vshrl.u32 %v235_v11, 16  ;;  %vm1857_vm4 = vmor %vm248_vm1, %vm249_vm2 }
  0x12   : > { %578 = vmatpush.bf16.msrb.mxu2 %v569_v3  ;;  %463 = vmatpush.bf16.msrb.mxu1 %v454_v7  ;;  %v297_v18 = vshll.u32 %v235_v11, 16  ;;  %v303_v19 = vshll.u32 %v1841_v13, 16  ;;  %v236_v20 = vld [vmem:[%s1832_s29 + $0x20] sm:$0xf]  ;;  %v237_v21 = vld [vmem:[%s1832_s29 + $0x28] sm:$0xf] }
  0x13   : > { %659 = vmatpush.bf16.msrb.mxu3 %v650_v6  ;;  %851 = vmatpush.bf16.msrb.mxu0 %v842_v9  ;;  %v282_v22 = vrot.slane %v280_v14, 4  ;;  %v285_v23 = vrot.slane %v283_v15, 5  ;;  %v291_v24 = vrot.slane %v289_v16, 5  ;;  %v296_v25 = vrot.slane %v294_v17, 4  ;;  %v1848_v26 = vld [vmem:[%s1832_s29 + $0x24] sm:$0x1] }
  0x14   : > { %v299_v27 = vrot.slane %v297_v18, 5  ;;  %v305_v28 = vrot.slane %v303_v19, 5  ;;  %v1851_v29 = vld [vmem:[%s1832_s29 + $0x2c] sm:$0x1]  ;;  %v308_v30 = vshrl.u32 %v236_v20, 16  ;;  %v311_v31 = vshll.u32 %v236_v20, 16 }
  0x15   : > { %v286_v32 = vor.u32 %v285_v23, %v282_v22  ;;  %v317_v33 = vshll.u32 %v1848_v26, 16  ;;  %v322_v34 = vshrl.u32 %v237_v21, 16  ;;  %v325_v35 = vshll.u32 %v237_v21, 16  ;;  %v238_v36 = vld [vmem:[%s1832_s29 + $0x30] sm:$0xf]  ;;  %s1703_s11 = sshll.u32 %s2259_s12, 6 }
  0x16   : > { %v300_v38 = vor.u32 %v299_v27, %v296_v25  ;;  %v310_v39 = vrot.slane %v308_v30, 4  ;;  %v313_v40 = vrot.slane %v311_v31, 5  ;;  %v331_v41 = vshll.u32 %v1851_v29, 16  ;;  %v1863_v46 = vld [vmem:[%s1832_s29 + $0x34] sm:$0x1]  ;;  %s2199_s20 = scalar_lea.vmem %s2249_s3, %s1703_s11 }
  0x17   : > { %v287_v42 = vrot.slane %v286_v32, 4  ;;  %v319_v43 = vrot.slane %v317_v33, 5  ;;  %v324_v44 = vrot.slane %v322_v34, 4  ;;  %v327_v45 = vrot.slane %v325_v35, 5  ;;  %v239_v53 = vld [vmem:[%s1832_s29 + $0x38] sm:$0xf] }
  0x18   : > { %v301_v47 = vrot.slane %v300_v38, 4  ;;  %v314_v48 = vor.u32 %v313_v40, %v310_v39  ;;  %v333_v49 = vrot.slane %v331_v41, 5  ;;  %v336_v50 = vshrl.u32 %v238_v36, 16  ;;  %v1869_v54 = vld [vmem:[%s1832_s29 + $0x3c] sm:$0x1] }
  0x19   : > { %vm510_vm6 = vcmask 1046532   ;;  %v292_v51 = vsel %vm1857_vm4, %v287_v42, %v291_v24  ;;  %v328_v52 = vor.u32 %v327_v45, %v324_v44  ;;  %v339_v55 = vshll.u32 %v238_v36, 16  ;;  %v232_v1 = vld [vmem:[%s1832_s29] sm:$0xf]  ;;  %v240_v6 = vld [vmem:[%s1832_s29 + $0x4] sm:$0x1] }
  0x1a   : > { %v345_v56 = vshll.u32 %v1863_v46, 16  ;;  %v306_v57 = vsel %vm1857_vm4, %v301_v47, %v305_v28  ;;  %v365_v58 = vunpack.c.l.b16 %v292_v51  ;;  %v315_v59 = vrot.slane %v314_v48, 4  ;;  %v233_v11 = vld [vmem:[%s1832_s29 + $0x8] sm:$0xf]  ;;  %v241_v24 = vld [vmem:[%s1832_s29 + $0xc] sm:$0x1]  ;;  %vm1891_vm7 = vmor %vm509_vm5, %vm510_vm6 }
  0x1b   : > { %v338_v60 = vrot.slane %v336_v50, 4  ;;  %v366_v61 = vunpack.c.l.b16 %v306_v57  ;;  %v329_v62 = vrot.slane %v328_v52, 4  ;;  %v341_v63 = vrot.slane %v339_v55, 5  ;;  %v485_v33 = vld [vmem:[%s1832_s29] sm:$0xe] }
  0x1c   : > { %v347_v0 = vrot.slane %v345_v56, 5  ;;  %v320_v2 = vsel %vm1857_vm4, %v315_v59, %v319_v43  ;;  %v350_v3 = vshrl.u32 %v239_v53, 16  ;;  %v353_v4 = vshll.u32 %v239_v53, 16  ;;  %v486_v39 = vld [vmem:[%s1832_s29 + $0x8] sm:$0xe] }
  0x1d   : > { %v359_v5 = vshll.u32 %v1869_v54, 16  ;;  %v372_v7 = vpack.c.b16 %v366_v61, %v365_v58  ;;  %v334_v8 = vsel %vm1857_vm4, %v329_v62, %v333_v49  ;;  %v367_v9 = vunpack.c.l.b16 %v320_v2  ;;  %v229_v45 = vld [vmem:[%s2247_s1 + $0xc] sm:$0x3]  ;;  %v1593_v55 = vld [vmem:[%s1832_s29 + $0x8] sm:$0xf] }
  0x1e   : > { %v342_v10 = vor.u32 %v341_v63, %v338_v60  ;;  %v368_v14 = vunpack.c.l.b16 %v334_v8  ;;  %v352_v15 = vrot.slane %v350_v3, 4  ;;  %v355_v16 = vrot.slane %v353_v4, 5  ;;  %v1595_v59 = vld [vmem:[%s1832_s29 + $0x10] sm:$0xf]  ;;  %v1910_v63 = vld [vmem:[%s1832_s29 + $0xc] sm:$0x1] }
  0x1f   : > { %v361_v17 = vrot.slane %v359_v5, 5  ;;  %1530 = vmatmul.msk.bf16.vlgmr.msra.gmra.mxu1 %vm375_vm3, %v372_v7  ;;  %v252_v19 = vshrl.u32 %v232_v1, 16  ;;  %v255_v20 = vshll.u32 %v232_v1, 16  ;;  %v261_v21 = vshll.u32 %v240_v6, 16  ;;  %v1535_v3 = vld [vmem:[%s1832_s29] sm:$0xf] }
  0x20   : > { %v343_v18 = vrot.slane %v342_v10, 4  ;;  %v373_v22 = vpack.c.b16 %v368_v14, %v367_v9  ;;  %v356_v23 = vor.u32 %v355_v16, %v352_v15  ;;  %v266_v25 = vshrl.u32 %v233_v11, 16  ;;  %v1704_v4 = vld [vmem:[%s1832_s29 + $0x4] sm:$0xf0] }
  0x21   : > { %v269_v27 = vshll.u32 %v233_v11, 16  ;;  %v254_v30 = vrot.slane %v252_v19, 4  ;;  %v257_v31 = vrot.slane %v255_v20, 5  ;;  %v263_v32 = vrot.slane %v261_v21, 5  ;;  %v230_v11 = vld [vmem:[%s2247_s1 + $0xe] sm:$0x3] }
  0x22   : > { %v348_v28 = vsel %vm1857_vm4, %v343_v18, %v347_v0  ;;  %1531 = vmatmul.msk.bf16.vlgmr.msra.gmra.mxu2 %vm375_vm3, %v373_v22  ;;  %v357_v34 = vrot.slane %v356_v23, 4  ;;  %v268_v36 = vrot.slane %v266_v25, 4  ;;  %v275_v41 = vshll.u32 %v241_v24, 16  ;;  %v1913_v0 = vld [vmem:[%s1832_s29 + $0x14] sm:$0x1] }
  0x23   : > { %v369_v35 = vunpack.c.l.b16 %v348_v28  ;;  %v271_v38 = vrot.slane %v269_v27, 5  ;;  %v258_v40 = vor.u32 %v257_v31, %v254_v30  ;;  %v514_v42 = vrot.slane %v240_v6, 5  ;;  %v228_v14 = vld [vmem:[%s2247_s1 + $0xa] sm:$0x3]  ;;  %v231_v19 = vld [vmem:[%s2247_s1 + $0x10] sm:$0x3] }
  0x24   : > { %v518_v43 = vrot.slane %v241_v24, 5  ;;  %v362_v47 = vsel %vm1857_vm4, %v357_v34, %v361_v17  ;;  %v1553_v49 = vrot.slane %v485_v33, 9  ;;  %v277_v52 = vrot.slane %v275_v41, 5  ;;  %v1599_v41 = vld [vmem:[%s1832_s29 + $0x20] sm:$0xf] }
  0x25   : > { %v272_v48 = vor.u32 %v271_v38, %v268_v36  ;;  %v370_v50 = vunpack.c.l.b16 %v362_v47  ;;  %v259_v51 = vrot.slane %v258_v40, 4  ;;  %v1554_v53 = vrot.slane %v486_v39, 9  ;;  %v1597_v38 = vld [vmem:[%s1832_s29 + $0x18] sm:$0xf]  ;;  %v1708_v47 = vld [vmem:[%s1832_s29 + $0xc] sm:$0xf0] }
  0x26   : > { %v515_v57 = vsel %vm1891_vm7, %v1553_v49, %v514_v42  ;;  %v1043_v58 = vsel %vm388_vm0, %v229_v45, 0  ;;  %v706_v6 = vshrl.u32 %v1593_v55, 16  ;;  %v709_v9 = vshll.u32 %v1593_v55, 16  ;;  %v488_v40 = vld [vmem:[%s1832_s29 + $0x18] sm:$0xe] }
  0x27   : > { %v273_v56 = vrot.slane %v272_v48, 4  ;;  %v374_v60 = vpack.c.b16 %v370_v50, %v369_v35  ;;  %v264_v61 = vsel %vm1857_vm4, %v259_v51, %v263_v32  ;;  %v519_v62 = vsel %vm1891_vm7, %v1554_v53, %v518_v43  ;;  %1052 = vmatpush.bf16.msra.mxu2 %v1043_v58  ;;  %v487_v35 = vld [vmem:[%s1832_s29 + $0x10] sm:$0xe]  ;;  %v1575_v45 = vld [vmem:[%s1832_s29 + $0x8] sm:$0xf] }
  0x28   : > { %v363_v2 = vunpack.c.l.b16 %v264_v61  ;;  %v544_v5 = vunpack.c.l.b16 %v515_v57  ;;  %v545_v8 = vunpack.c.l.b16 %v519_v62  ;;  %v720_v10 = vshrl.u32 %v1595_v59, 16 }
  0x29   : > { %v278_v1 = vsel %vm1857_vm4, %v273_v56, %v277_v52  ;;  %1532 = vmatmul.msk.bf16.vlgmr.msra.gmra.mxu3 %vm375_vm3, %v374_v60  ;;  %v708_v15 = vrot.slane %v706_v6, 4  ;;  %v715_v16 = vshll.u32 %v1910_v63, 16  ;;  %v723_v17 = vshll.u32 %v1595_v59, 16  ;;  %v1952_v60 = vld [vmem:[%s1832_s29 + $0x1c] sm:$0x1] }
  0x2a   : > { %v364_v7 = vunpack.c.l.b16 %v278_v1  ;;  %v729_v18 = vshll.u32 %v1913_v0, 16  ;;  %v1536_v21 = vor.u32 %v1704_v4, %v1535_v3  ;;  %v711_v22 = vrot.slane %v709_v9, 5  ;;  %v1957_v4 = vld [vmem:[%s1832_s29 + $0x24] sm:$0x1] }
  0x2b   : > { %v722_v23 = vrot.slane %v720_v10, 4  ;;  %v725_v24 = vrot.slane %v723_v17, 5  ;;  %v1235_v27 = vsel %vm388_vm0, %v230_v11, 0  ;;  %v962_v28 = vsel %vm388_vm0, %v228_v14, 0  ;;  %v1601_v17 = vld [vmem:[%s1832_s29 + $0x28] sm:$0xf] }
  0x2c   : > { %v371_v20 = vpack.c.b16 %v364_v7, %v363_v2  ;;  %v712_v25 = vor.u32 %v711_v22, %v708_v15  ;;  %v1355_v30 = vsel %vm388_vm0, %v231_v19, 0  ;;  %v552_v31 = vpack.c.b16 %v545_v8, %v544_v5  ;;  %1244 = vmatpush.bf16.msra.mxu3 %v1235_v27  ;;  %971 = vmatpush.bf16.msra.mxu1 %v962_v28  ;;  %v1705_v5 = vld [vmem:[%s1832_s29 + $0x14] sm:$0xf0]  ;;  %v1603_v22 = vld [vmem:[%s1832_s29 + $0x30] sm:$0xf] }
  0x2d   : > { %v717_v32 = vrot.slane %v715_v16, 5  ;;  %v726_v33 = vor.u32 %v725_v24, %v722_v23  ;;  %v731_v34 = vrot.slane %v729_v18, 5  ;;  %v1555_v42 = vrot.slane %v487_v35, 9  ;;  %v489_v23 = vld [vmem:[%s1832_s29 + $0x20] sm:$0xe] }
  0x2e   : > { %1529 = vmatmul.msk.bf16.vlgmr.msra.gmra.mxu0 %vm375_vm3, %v371_v20  ;;  %v713_v36 = vrot.slane %v712_v25, 4  ;;  %v522_v43 = vrot.slane %v1838_v12, 5  ;;  %v734_v50 = vshrl.u32 %v1597_v38, 16  ;;  %v737_v51 = vshll.u32 %v1597_v38, 16  ;;  %v490_v24 = vld [vmem:[%s1832_s29 + $0x28] sm:$0xe] }
  0x2f   : > { %1549 = vmatmul.msk.bf16.vlgmr.msrb.gmra.mxu1 %vm375_vm3, %v1536_v21  ;;  %1364 = vmatpush.bf16.msra.mxu0 %v1355_v30  ;;  %v727_v39 = vrot.slane %v726_v33, 4  ;;  %v1556_v52 = vrot.slane %v488_v40, 9  ;;  %v526_v53 = vrot.slane %v1841_v13, 5  ;;  %v748_v12 = vshrl.u32 %v1599_v41, 16  ;;  %v1539_v13 = vld [vmem:[%s1832_s29 + $0x10] sm:$0xf] }
  0x30   : > { %v718_v48 = vsel %vm1857_vm4, %v713_v36, %v717_v32  ;;  %v751_v55 = vshll.u32 %v1599_v41, 16  ;;  %v1576_v56 = vor.u32 %v1708_v47, %v1575_v45  ;;  %v523_v59 = vsel %vm1891_vm7, %v1555_v42, %v522_v43  ;;  %v1579_v28 = vld [vmem:[%s1832_s29 + $0x18] sm:$0xf]  ;;  %v1709_v30 = vld [vmem:[%s1832_s29 + $0x1c] sm:$0xf0] }
  0x31   : > { %v732_v49 = vsel %vm1857_vm4, %v727_v39, %v731_v34  ;;  %v817_v57 = vunpack.c.l.b16 %v718_v48  ;;  %v736_v61 = vrot.slane %v734_v50, 4  ;;  %v739_v62 = vrot.slane %v737_v51, 5  ;;  %v1980_v47 = vld [vmem:[%s1832_s29 + $0x2c] sm:$0x1] }
  0x32   : > { %1561 = vmatmul.msk.bf16.vlgmr.msrb.gmra.mxu2 %vm375_vm3, %v552_v31  ;;  %v818_v58 = vunpack.c.l.b16 %v732_v49  ;;  %v750_v1 = vrot.slane %v748_v12, 4  ;;  %v753_v2 = vrot.slane %v751_v55, 5  ;;  %v527_v3 = vsel %vm1891_vm7, %v1556_v52, %v526_v53  ;;  %v1543_v52 = vld [vmem:[%s1832_s29 + $0x20] sm:$0xf] }
  0x33   : > { %v546_v7 = vunpack.c.l.b16 %v523_v59  ;;  %v743_v8 = vshll.u32 %v1952_v60, 16  ;;  %v547_v9 = vunpack.c.l.b16 %v527_v3  ;;  %v740_v10 = vor.u32 %v739_v62, %v736_v61 }
  0x34   : > { %v825_v6 = vpack.c.b16 %v818_v58, %v817_v57  ;;  %v754_v11 = vor.u32 %v753_v2, %v750_v1  ;;  %v757_v14 = vshll.u32 %v1957_v4, 16  ;;  %v1540_v15 = vor.u32 %v1705_v5, %v1539_v13  ;;  %v491_v2 = vld [vmem:[%s1832_s29 + $0x30] sm:$0xe] }
  0x35   : > { %v745_v16 = vrot.slane %v743_v8, 5  ;;  %v553_v18 = vpack.c.b16 %v547_v9, %v546_v7  ;;  %v741_v19 = vrot.slane %v740_v10, 4  ;;  %v762_v25 = vshrl.u32 %v1601_v17, 16  ;;  %v1605_v7 = vld [vmem:[%s1832_s29 + $0x38] sm:$0xf] }
  0x36   : > { %v755_v20 = vrot.slane %v754_v11, 4  ;;  %v759_v21 = vrot.slane %v757_v14, 5  ;;  %v765_v27 = vshll.u32 %v1601_v17, 16  ;;  %v776_v33 = vshrl.u32 %v1603_v22, 16  ;;  %v1607_v8 = vld [vmem:[%s1832_s29 + $0x40] sm:$0xf] }
  0x37   : > { %v746_v31 = vsel %vm1857_vm4, %v741_v19, %v745_v16  ;;  %v779_v34 = vshll.u32 %v1603_v22, 16  ;;  %v1557_v35 = vrot.slane %v489_v23, 9  ;;  %v530_v36 = vrot.slane %v1848_v26, 5  ;;  %v1987_v26 = vld [vmem:[%s1832_s29 + $0x34] sm:$0x1] }
  0x38   : > { %v760_v32 = vsel %vm1857_vm4, %v755_v20, %v759_v21  ;;  %v1558_v38 = vrot.slane %v490_v24, 9  ;;  %v534_v39 = vrot.slane %v1851_v29, 5  ;;  %v764_v40 = vrot.slane %v762_v25, 4  ;;  %v1706_v29 = vld [vmem:[%s1832_s29 + $0x24] sm:$0xf0] }
  0x39   : > { %1589 = vmatmul.msk.bf16.vlgmr.msrb.gmra.mxu3 %vm375_vm3, %v1576_v56  ;;  %v767_v41 = vrot.slane %v765_v27, 5  ;;  %v1580_v42 = vor.u32 %v1709_v30, %v1579_v28  ;;  %v819_v43 = vunpack.c.l.b16 %v746_v31  ;;  %v820_v45 = vunpack.c.l.b16 %v760_v32  ;;  %v1583_v9 = vld [vmem:[%s1832_s29 + $0x28] sm:$0xf]  ;;  %v1710_v14 = vld [vmem:[%s1832_s29 + $0x2c] sm:$0xf0] }
  0x3a   : > { %v778_v48 = vrot.slane %v776_v33, 4  ;;  %v781_v49 = vrot.slane %v779_v34, 5  ;;  %v531_v50 = vsel %vm1891_vm7, %v1557_v35, %v530_v36  ;;  %v535_v51 = vsel %vm1891_vm7, %v1558_v38, %v534_v39  ;;  %v2014_v27 = vld [vmem:[%s1832_s29 + $0x3c] sm:$0x1]  ;;  %v2017_v28 = vld [vmem:[%s1832_s29 + $0x44] sm:$0x1] }
  0x3b   : > { %v768_v53 = vor.u32 %v767_v41, %v764_v40  ;;  %v771_v12 = vshll.u32 %v1980_v47, 16  ;;  %v826_v55 = vpack.c.b16 %v820_v45, %v819_v43  ;;  %v548_v56 = vunpack.c.l.b16 %v531_v50  ;;  %v1547_v34 = vld [vmem:[%s1832_s29 + $0x30] sm:$0xf]  ;;  %v1707_v35 = vld [vmem:[%s1832_s29 + $0x34] sm:$0xf0] }
  0x3c   : > { %v549_v57 = vunpack.c.l.b16 %v535_v51  ;;  %v782_v58 = vor.u32 %v781_v49, %v778_v48  ;;  %v785_v59 = vshll.u32 %v1987_v26, 16  ;;  %v1544_v61 = vor.u32 %v1706_v29, %v1543_v52  ;;  %v1663_v49 = vld [vmem:[%s1832_s29 + $0x18] sm:$0xf] }
  0x3d   : > { %v769_v62 = vrot.slane %v768_v53, 4  ;;  %v773_v1 = vrot.slane %v771_v12, 5  ;;  %v538_v11 = vrot.slane %v1863_v46, 5  ;;  %v542_v17 = vrot.slane %v1869_v54, 5  ;;  %v1613_v12 = vld [vmem:[%s1832_s29 + $0x8] sm:$0xe] }
  0x3e   : > { %1609 = vmatmul.msk.bf16.vlgmr.msrb.gmra.mxu0 %vm375_vm3, %v825_v6  ;;  %v554_v3 = vpack.c.b16 %v549_v57, %v548_v56  ;;  %v783_v13 = vrot.slane %v782_v58, 4  ;;  %v787_v5 = vrot.slane %v785_v59, 5  ;;  %v492_v6 = vld [vmem:[%s1832_s29 + $0x38] sm:$0xe]  ;;  %v793_v20 = vshll.u32 %v1605_v7, 16 }
  0x3f   : > { %1550 = vmatmul.msk.bf16.gmra.mxu1 %vm375_vm3, %v1540_v15  ;;  %v774_v10 = vsel %vm1857_vm4, %v769_v62, %v773_v1  ;;  %v1559_v15 = vrot.slane %v491_v2, 9  ;;  %v1560_v16 = vrot.slane %v492_v6, 9  ;;  %v804_v21 = vshrl.u32 %v1607_v8, 16  ;;  %v1587_v6 = vld [vmem:[%s1832_s29 + $0x38] sm:$0xf] }
  0x40   : > { %v788_v19 = vsel %vm1857_vm4, %v783_v13, %v787_v5  ;;  %v807_v22 = vshll.u32 %v1607_v8, 16  ;;  %v1584_v23 = vor.u32 %v1710_v14, %v1583_v9  ;;  %v821_v46 = vunpack.c.l.b16 %v774_v10  ;;  %v1662_v5 = vld [vmem:[%s1832_s29 + $0x14] sm:$0x1] }
  0x41   : > { %v822_v24 = vunpack.c.l.b16 %v788_v19  ;;  %v539_v25 = vsel %vm1891_vm7, %v1559_v15, %v538_v11  ;;  %v543_v54 = vsel %vm1891_vm7, %v1560_v16, %v542_v17  ;;  %v795_v31 = vrot.slane %v793_v20, 5 }
  0x42   : > { %1562 = vmatmul.msk.bf16.gmra.mxu2 %vm375_vm3, %v553_v18  ;;  %v790_v18 = vshrl.u32 %v1605_v7, 16  ;;  %v806_v32 = vrot.slane %v804_v21, 4  ;;  %v809_v33 = vrot.slane %v807_v22, 5  ;;  %v550_v36 = vunpack.c.l.b16 %v539_v25  ;;  %v1711_v7 = vld [vmem:[%s1832_s29 + $0x3c] sm:$0xf0] }
  0x43   : > { %v827_v38 = vpack.c.b16 %v822_v24, %v821_v46  ;;  %v551_v39 = vunpack.c.l.b16 %v543_v54  ;;  %v799_v40 = vshll.u32 %v2014_v27, 16  ;;  %v813_v41 = vshll.u32 %v2017_v28, 16  ;;  %v1643_v54 = vld [vmem:[%s1832_s29 + $0x10] sm:$0xf] }
  0x44   : > { %v792_v30 = vrot.slane %v790_v18, 4  ;;  %v810_v45 = vor.u32 %v809_v33, %v806_v32  ;;  %v1548_v48 = vor.u32 %v1707_v35, %v1547_v34  ;;  %v1113_v58 = vshrl.u32 %v1663_v49, 16  ;;  %v1712_v32 = vld [vmem:[%s1832_s29 + $0x14] sm:$0xf0]  ;;  %v1665_v35 = vld [vmem:[%s1832_s29 + $0x20] sm:$0xf] }
  0x45   : > { %v555_v52 = vpack.c.b16 %v551_v39, %v550_v36  ;;  %v801_v29 = vrot.slane %v799_v40, 5  ;;  %v815_v53 = vrot.slane %v813_v41, 5  ;;  %v1116_v59 = vshll.u32 %v1663_v49, 16 }
  0x46   : > { %v796_v43 = vor.u32 %v795_v31, %v792_v30  ;;  %v811_v57 = vrot.slane %v810_v45, 4  ;;  %v911_v62 = vrot.slane %v1913_v0, 5  ;;  %v1621_v1 = vrot.slane %v1613_v12, 9  ;;  %v1664_v0 = vld [vmem:[%s1832_s29 + $0x1c] sm:$0x1] }
  0x47   : > { %v1118_v10 = vrot.slane %v1116_v59, 5  ;;  %v1108_v16 = vshll.u32 %v1662_v5, 16  ;;  %v1588_v17 = vor.u32 %v1711_v7, %v1587_v6  ;;  %v1122_v21 = vshll.u32 %v1664_v0, 16  ;;  %v1681_v30 = vld [vmem:[%s1832_s29 + $0x10] sm:$0xe] }
  0x48   : > { %v797_v56 = vrot.slane %v796_v43, 4  ;;  %v816_v9 = vsel %vm1857_vm4, %v811_v57, %v815_v53  ;;  %v1682_v31 = vld [vmem:[%s1832_s29 + $0x18] sm:$0xe]  ;;  %v1689_v40 = vrot.slane %v1681_v30, 9  ;;  %v1300_v41 = vrot.slane %v1662_v5, 5 }
  0x49   : > { %1590 = vmatmul.msk.bf16.gmra.mxu3 %vm375_vm3, %v1580_v42  ;;  %v1661_v42 = vld [vmem:[%s1832_s29 + $0x10] sm:$0xf]  ;;  %v824_v19 = vunpack.c.l.b16 %v816_v9  ;;  %v1110_v24 = vrot.slane %v1108_v16, 5  ;;  %v1124_v34 = vrot.slane %v1122_v21, 5  ;;  %v1644_v43 = vor.u32 %v1712_v32, %v1643_v54  ;;  %v1615_v45 = vld [vmem:[%s1832_s29 + $0x18] sm:$0xe] }
  0x4a   : > { %v1099_v50 = vshrl.u32 %v1661_v42, 16  ;;  %v1102_v51 = vshll.u32 %v1661_v42, 16  ;;  %v802_v8 = vsel %vm1857_vm4, %v797_v56, %v801_v29  ;;  %v1690_v42 = vrot.slane %v1682_v31, 9  ;;  %v1668_v6 = vld [vmem:[%s1832_s29 + $0x2c] sm:$0x1] }
  0x4b   : > { %v823_v18 = vunpack.c.l.b16 %v802_v8  ;;  %v1127_v49 = vshrl.u32 %v1665_v35, 16  ;;  %v915_v56 = vrot.slane %v1952_v60, 5  ;;  %v1647_v16 = vld [vmem:[%s1832_s29 + $0x20] sm:$0xf]  ;;  %v1669_v21 = vld [vmem:[%s1832_s29 + $0x30] sm:$0xf] }
  0x4c   : > { %v1104_v13 = vrot.slane %v1102_v51, 5  ;;  %v1671_v54 = vld [vmem:[%s1832_s29 + $0x38] sm:$0xf]  ;;  %v1155_v31 = vshrl.u32 %v1669_v21, 16  ;;  %v1158_v32 = vshll.u32 %v1669_v21, 16 }
  0x4d   : > { %v828_v25 = vpack.c.b16 %v824_v19, %v823_v18 }
  0x4e   : > { %1610 = vmatmul.msk.bf16.gmra.mxu0 %vm375_vm3, %v826_v55  ;;  %v1614_v55 = vld [vmem:[%s1832_s29 + $0x10] sm:$0xe] }
  0x4f   : > { %1551 = vmatmul.msk.bf16.gmra.mxu1 %vm375_vm3, %v1544_v61  ;;  %v907_v61 = vrot.slane %v1910_v63, 5  ;;  %v1622_v2 = vrot.slane %v1614_v55, 9  ;;  %v1115_v63 = vrot.slane %v1113_v58, 4  ;;  %v1623_v55 = vrot.slane %v1615_v45, 9 }
  0x50   : > { %v919_v58 = vrot.slane %v1957_v4, 5  ;;  %v923_v45 = vrot.slane %v1980_v47, 5  ;;  %v1672_v47 = vld [vmem:[%s1832_s29 + $0x3c] sm:$0x1] }
  0x51   : > { %v908_v11 = vsel %vm1891_vm7, %v1621_v1, %v907_v61  ;;  %v912_v14 = vsel %vm1891_vm7, %v1622_v2, %v911_v62  ;;  %v1119_v20 = vor.u32 %v1118_v10, %v1115_v63  ;;  %v1301_v61 = vsel %vm1891_vm7, %v1689_v40, %v1300_v41 }
  0x52   : > { %1563 = vmatmul.msk.bf16.gmra.mxu2 %vm375_vm3, %v554_v3  ;;  %v1101_v3 = vrot.slane %v1099_v50, 4  ;;  %v937_v22 = vunpack.c.l.b16 %v908_v11  ;;  %v1130_v50 = vshll.u32 %v1665_v35, 16  ;;  %v1129_v62 = vrot.slane %v1127_v49, 4 }
  0x53   : > { %v1120_v33 = vrot.slane %v1119_v20, 4  ;;  %v1330_v60 = vunpack.c.l.b16 %v1301_v61  ;;  %v916_v4 = vsel %vm1891_vm7, %v1623_v55, %v915_v56  ;;  %v1150_v11 = vshll.u32 %v1668_v6, 16  ;;  %v1683_v20 = vld [vmem:[%s1832_s29 + $0x20] sm:$0xe] }
  0x54   : > { %v1105_v15 = vor.u32 %v1104_v13, %v1101_v3  ;;  %v1132_v1 = vrot.slane %v1130_v50, 5  ;;  %v1666_v3 = vld [vmem:[%s1832_s29 + $0x24] sm:$0x1]  ;;  %v1691_v30 = vrot.slane %v1683_v20, 9  ;;  %v1312_v41 = vrot.slane %v1668_v6, 5 }
  0x55   : > { %v1125_v51 = vsel %vm1857_vm4, %v1120_v33, %v1124_v34  ;;  %v1136_v10 = vshll.u32 %v1666_v3, 16  ;;  %v1308_v35 = vrot.slane %v1666_v3, 5 }
  0x56   : > { %v1106_v46 = vrot.slane %v1105_v15, 4  ;;  %v1211_v59 = vunpack.c.l.b16 %v1125_v51  ;;  %v1133_v63 = vor.u32 %v1132_v1, %v1129_v62  ;;  %v1157_v51 = vrot.slane %v1155_v31, 4 }
  0x57   : > { %v1138_v19 = vrot.slane %v1136_v10, 5  ;;  %v1309_v55 = vsel %vm1891_vm7, %v1691_v30, %v1308_v35  ;;  %v1686_v10 = vld [vmem:[%s1832_s29 + $0x38] sm:$0xe]  ;;  %v1320_v30 = vrot.slane %v1672_v47, 5  ;;  %v931_v35 = vrot.slane %v2014_v27, 5 }
  0x58   : > { %v1111_v39 = vsel %vm1857_vm4, %v1106_v46, %v1110_v24  ;;  %v1134_v18 = vrot.slane %v1133_v63, 4  ;;  %v1152_v46 = vrot.slane %v1150_v11, 5  ;;  %v1684_v24 = vld [vmem:[%s1832_s29 + $0x28] sm:$0xe]  ;;  %v1685_v63 = vld [vmem:[%s1832_s29 + $0x30] sm:$0xe] }
  0x59   : > { %1591 = vmatmul.msk.bf16.gmra.mxu3 %vm375_vm3, %v1584_v23  ;;  %v938_v23 = vunpack.c.l.b16 %v912_v14  ;;  %v1210_v12 = vunpack.c.l.b16 %v1111_v39  ;;  %v939_v14 = vunpack.c.l.b16 %v916_v4  ;;  %v1618_v39 = vld [vmem:[%s1832_s29 + $0x30] sm:$0xe]  ;;  %v1694_v21 = vrot.slane %v1686_v10, 9 }
  0x5a   : > { %v1139_v34 = vsel %vm1857_vm4, %v1134_v18, %v1138_v19  ;;  %v1626_v50 = vrot.slane %v1618_v39, 9  ;;  %v1693_v19 = vrot.slane %v1685_v63, 9 }
  0x5b   : > { %v945_v36 = vpack.c.b16 %v938_v23, %v937_v22  ;;  %v1218_v8 = vpack.c.b16 %v1211_v59, %v1210_v12  ;;  %v1713_v22 = vld [vmem:[%s1832_s29 + $0x24] sm:$0xf0]  ;;  %v1670_v12 = vld [vmem:[%s1832_s29 + $0x34] sm:$0x1] }
  0x5c   : > { %v1648_v33 = vor.u32 %v1713_v22, %v1647_v16  ;;  %v1164_v62 = vshll.u32 %v1670_v12, 16  ;;  %v1316_v20 = vrot.slane %v1670_v12, 5 }
  0x5e   : > { %1611 = vmatmul.msk.bf16.gmra.mxu0 %vm375_vm3, %v827_v38  ;;  %v1667_v38 = vld [vmem:[%s1832_s29 + $0x28] sm:$0xf] }
  0x5f   : > { %1552 = vmatmul.msk.bf16.gmra.mxu1 %vm375_vm3, %v1548_v48  ;;  %v1616_v48 = vld [vmem:[%s1832_s29 + $0x20] sm:$0xe]  ;;  %v1141_v29 = vshrl.u32 %v1667_v38, 16  ;;  %v1144_v53 = vshll.u32 %v1667_v38, 16  ;;  %v1617_v38 = vld [vmem:[%s1832_s29 + $0x28] sm:$0xe] }
  0x60   : > { %v1624_v57 = vrot.slane %v1616_v48, 9  ;;  %v927_v48 = vrot.slane %v1987_v26, 5  ;;  %v1625_v49 = vrot.slane %v1617_v38, 9  ;;  %v935_v38 = vrot.slane %v2017_v28, 5 }
  0x61   : > { %v1143_v13 = vrot.slane %v1141_v29, 4  ;;  %v1146_v5 = vrot.slane %v1144_v53, 5  ;;  %v1212_v29 = vunpack.c.l.b16 %v1139_v34 }
  0x62   : > { %1564 = vmatmul.msk.bf16.gmra.mxu2 %vm375_vm3, %v555_v52  ;;  %v1304_v52 = vrot.slane %v1664_v0, 5  ;;  %v920_v7 = vsel %vm1891_vm7, %v1624_v57, %v919_v58  ;;  %v924_v26 = vsel %vm1891_vm7, %v1625_v49, %v923_v45  ;;  %v928_v59 = vsel %vm1891_vm7, %v1626_v50, %v927_v48  ;;  %v1674_v45 = vld [vmem:[%s1832_s29 + $0x44] sm:$0x1]  ;;  %v1676_v50 = vld [vmem:[%s1832_s29 + $0x4c] sm:$0x1] }
  0x63   : > { %v1147_v0 = vor.u32 %v1146_v5, %v1143_v13  ;;  %v940_v15 = vunpack.c.l.b16 %v920_v7  ;;  %v1178_v5 = vshll.u32 %v1672_v47, 16  ;;  %v941_v6 = vunpack.c.l.b16 %v924_v26 }
  0x64   : > { %v1305_v2 = vsel %vm1891_vm7, %v1690_v42, %v1304_v52  ;;  %v1169_v42 = vshrl.u32 %v1671_v54, 16  ;;  %v1160_v52 = vrot.slane %v1158_v32, 5  ;;  %v1166_v7 = vrot.slane %v1164_v62, 5 }
  0x65   : > { %v1331_v9 = vunpack.c.l.b16 %v1305_v2  ;;  %v1148_v23 = vrot.slane %v1147_v0, 4  ;;  %v1332_v2 = vunpack.c.l.b16 %v1309_v55  ;;  %v1714_v0 = vld [vmem:[%s1832_s29 + $0x34] sm:$0xf0]  ;;  %v1192_v12 = vshll.u32 %v1674_v45, 16 }
  0x66   : > { %v1171_v57 = vrot.slane %v1169_v42, 4  ;;  %v1161_v61 = vor.u32 %v1160_v52, %v1157_v51  ;;  %v1328_v10 = vrot.slane %v1676_v50, 5 }
  0x67   : > { %v1153_v40 = vsel %vm1857_vm4, %v1148_v23, %v1152_v46  ;;  %v1619_v23 = vld [vmem:[%s1832_s29 + $0x38] sm:$0xe]  ;;  %v1620_v46 = vld [vmem:[%s1832_s29 + $0x40] sm:$0xe] }
  0x68   : > { %v1213_v53 = vunpack.c.l.b16 %v1153_v40  ;;  %v1162_v4 = vrot.slane %v1161_v61, 4  ;;  %v1627_v34 = vrot.slane %v1619_v23, 9  ;;  %v1317_v40 = vsel %vm1891_vm7, %v1693_v19, %v1316_v20 }
  0x69   : > { %1592 = vmatmul.msk.bf16.gmra.mxu3 %vm375_vm3, %v1588_v17  ;;  %v1338_v17 = vpack.c.b16 %v1331_v9, %v1330_v60  ;;  %v942_v60 = vunpack.c.l.b16 %v928_v59  ;;  %v1651_v9 = vld [vmem:[%s1832_s29 + $0x30] sm:$0xf]  ;;  %v1334_v51 = vunpack.c.l.b16 %v1317_v40  ;;  %v1194_v59 = vrot.slane %v1192_v12, 5 }
  0x6a   : > { %v1219_v1 = vpack.c.b16 %v1213_v53, %v1212_v29  ;;  %v1167_v18 = vsel %vm1857_vm4, %v1162_v4, %v1166_v7  ;;  %v1652_v22 = vor.u32 %v1714_v0, %v1651_v9  ;;  %v932_v27 = vsel %vm1891_vm7, %v1627_v34, %v931_v35 }
  0x6b   : > { %v947_v16 = vpack.c.b16 %v942_v60, %v941_v6  ;;  %v1324_v7 = vrot.slane %v1674_v45, 5 }
  0x6e   : > { %1612 = vmatmul.msk.bf16.gmra.mxu0 %vm375_vm3, %v828_v25  ;;  %v946_v25 = vpack.c.b16 %v940_v15, %v939_v14  ;;  %v1180_v14 = vrot.slane %v1178_v5, 5  ;;  %v1673_v15 = vld [vmem:[%s1832_s29 + $0x40] sm:$0xf]  ;;  %v1688_v5 = vld [vmem:[%s1832_s29 + $0x48] sm:$0xe] }
  0x6f   : > { %1629 = vmatmul.msk.bf16.vlgmr.msra.gmra.mxu1 %vm375_vm3, %v945_v36  ;;  %v1692_v36 = vrot.slane %v1684_v24, 9  ;;  %v1183_v24 = vshrl.u32 %v1673_v15, 16  ;;  %v1696_v63 = vrot.slane %v1688_v5, 9 }
  0x71   : > { %v1313_v56 = vsel %vm1891_vm7, %v1692_v36, %v1312_v41  ;;  %v1628_v36 = vrot.slane %v1620_v46, 9  ;;  %v1185_v41 = vrot.slane %v1183_v24, 4 }
  0x72   : > { %1657 = vmatmul.msk.bf16.vlgmr.msra.gmra.mxu2 %vm375_vm3, %v1644_v43  ;;  %v1172_v43 = vshll.u32 %v1671_v54, 16  ;;  %v1333_v3 = vunpack.c.l.b16 %v1313_v56  ;;  %v1206_v56 = vshll.u32 %v1676_v50, 16 }
  0x73   : > { %v936_v28 = vsel %vm1891_vm7, %v1628_v36, %v935_v38 }
  0x74   : > { %v1174_v58 = vrot.slane %v1172_v43, 5  ;;  %v1321_v43 = vsel %vm1891_vm7, %v1694_v21, %v1320_v30  ;;  %v1208_v62 = vrot.slane %v1206_v56, 5 }
  0x75   : > { %v1335_v29 = vunpack.c.l.b16 %v1321_v43 }
  0x76   : > { %v1175_v13 = vor.u32 %v1174_v58, %v1171_v57  ;;  %v943_v57 = vunpack.c.l.b16 %v932_v27  ;;  %v944_v58 = vunpack.c.l.b16 %v936_v28 }
  0x77   : > { %v1340_v47 = vpack.c.b16 %v1335_v29, %v1334_v51 }
  0x78   : > { %v1176_v11 = vrot.slane %v1175_v13, 4  ;;  %v1715_v13 = vld [vmem:[%s1832_s29 + $0x44] sm:$0xf0] }
  0x79   : > { %1677 = vmatmul.msk.bf16.vlgmr.msra.gmra.mxu3 %vm375_vm3, %v1218_v8  ;;  %v1339_v8 = vpack.c.b16 %v1333_v3, %v1332_v2  ;;  %v948_v2 = vpack.c.b16 %v944_v58, %v943_v57  ;;  %v1655_v3 = vld [vmem:[%s1832_s29 + $0x40] sm:$0xf] }
  0x7a   : > { %v1181_v54 = vsel %vm1857_vm4, %v1176_v11, %v1180_v14 }
  0x7b   : > { %v1215_v39 = vunpack.c.l.b16 %v1181_v54 }
  0x7e   : > { %1697 = vmatmul.msk.bf16.vlgmr.msra.gmra.mxu0 %vm375_vm3, %v1338_v17  ;;  %v1675_v17 = vld [vmem:[%s1832_s29 + $0x48] sm:$0xf] }
  0x7f   : > { %1630 = vmatmul.msk.bf16.gmra.mxu1 %vm375_vm3, %v946_v25  ;;  %v1186_v25 = vshll.u32 %v1673_v15, 16  ;;  %v1197_v31 = vshrl.u32 %v1675_v17, 16  ;;  %v1200_v32 = vshll.u32 %v1675_v17, 16  ;;  %v1329_v15 = vsel %vm1891_vm7, %v1696_v63, %v1328_v10 }
  0x80   : > { %v1337_v37 = vunpack.c.l.b16 %v1329_v15 }
  0x81   : > { %v1188_v42 = vrot.slane %v1186_v25, 5  ;;  %v1199_v48 = vrot.slane %v1197_v31, 4  ;;  %v1202_v49 = vrot.slane %v1200_v32, 5 }
  0x82   : > { %1658 = vmatmul.msk.bf16.gmra.mxu2 %vm375_vm3, %v1648_v33  ;;  %v1214_v33 = vunpack.c.l.b16 %v1167_v18 }
  0x83   : > { %v1189_v53 = vor.u32 %v1188_v42, %v1185_v41  ;;  %v1203_v55 = vor.u32 %v1202_v49, %v1199_v48 }
  0x84   : > { %v1220_v52 = vpack.c.b16 %v1215_v39, %v1214_v33 }
  0x85   : > { %v1190_v26 = vrot.slane %v1189_v53, 4  ;;  %v1204_v61 = vrot.slane %v1203_v55, 4 }
  0x87   : > { %v1195_v60 = vsel %vm1857_vm4, %v1190_v26, %v1194_v59  ;;  %v1209_v9 = vsel %vm1857_vm4, %v1204_v61, %v1208_v62 }
  0x88   : > { %v1216_v0 = vunpack.c.l.b16 %v1195_v60  ;;  %v1217_v11 = vunpack.c.l.b16 %v1209_v9 }
  0x89   : > { %1678 = vmatmul.msk.bf16.gmra.mxu3 %vm375_vm3, %v1219_v1  ;;  %v1687_v1 = vld [vmem:[%s1832_s29 + $0x40] sm:$0xe] }
  0x8a   : > { %v1695_v4 = vrot.slane %v1687_v1, 9  ;;  %v1221_v17 = vpack.c.b16 %v1217_v11, %v1216_v0 }
  0x8c   : > { %v1325_v14 = vsel %vm1891_vm7, %v1695_v4, %v1324_v7 }
  0x8d   : > { %v1336_v18 = vunpack.c.l.b16 %v1325_v14  ;;  %v2194_v14 = vld [vmem:[%s2248_s2] ss:$0 sm:$0xff] }
  0x8e   : > { %1698 = vmatmul.msk.bf16.gmra.mxu0 %vm375_vm3, %v1339_v8  ;;  %v1656_v8 = vor.u32 %v1715_v13, %v1655_v3 }
  0x8f   : > { %1631 = vmatmul.msk.bf16.gmra.mxu1 %vm375_vm3, %v947_v16  ;;  %v1341_v20 = vpack.c.b16 %v1337_v37, %v1336_v18 }
  0x92   : > { %1659 = vmatmul.msk.bf16.gmra.mxu2 %vm375_vm3, %v1652_v22 }
  0x99   : > { %1679 = vmatmul.msk.bf16.gmra.mxu3 %vm375_vm3, %v1220_v52 }
  0x9c   : > { %v2134_v6 = vpop.f32.mrf.mxu1 }
  0x9e   : > { %1699 = vmatmul.msk.bf16.gmra.mxu0 %vm375_vm3, %v1340_v47 }
  0x9f   : > { %1632 = vmatmul.msk.bf16.gmra.mxu1 %vm375_vm3, %v948_v2 }
  0xa2   : > { %1660 = vmatmul.msk.bf16.gmra.mxu2 %vm375_vm3, %v1656_v8 }
  0xa4   : > { %v2147_v16 = vpop.f32.mrf.mxu1 }
  0xa5   : > { %v2149_v19 = vpop.f32.mrf.mxu2 }
  0xa9   : > { %1680 = vmatmul.msk.bf16.gmra.mxu3 %vm375_vm3, %v1221_v17 }
  0xab   : > { %v401_v21 = vpop.f32.mrf.mxu0 }
  0xac   : > { %v2152_v22 = vpop.f32.mrf.mxu3  ;;  %v465_v23 = vpop.f32.mrf.mxu1 }
  0xad   : > { %v2155_v46 = vpop.f32.mrf.mxu2  ;;  %v466_v56 = vadd.f32 %v465_v23, %v401_v21 }
  0xae   : > { %1700 = vmatmul.msk.bf16.gmra.mxu0 %vm375_vm3, %v1341_v20 }
  0xb3   : > { %v403_v44 = vpop.f32.mrf.mxu0 }
  0xb4   : > { %v2157_v24 = vpop.f32.mrf.mxu3  ;;  %v467_v25 = vpop.f32.mrf.mxu1 }
  0xb5   : > { %v580_v54 = vpop.f32.mrf.mxu2  ;;  %v468_v62 = vadd.f32 %v467_v25, %v403_v44 }
  0xb6   : > { %v600_v47 = vadd.f32 %v580_v54, %v466_v56 }
  0xbb   : > { %v853_v30 = vpop.f32.mrf.mxu0 }
  0xbc   : > { %v661_v31 = vpop.f32.mrf.mxu3  ;;  %v470_v32 = vpop.f32.mrf.mxu1 }
  0xbd   : > { %v582_v33 = vpop.f32.mrf.mxu2  ;;  %v681_v59 = vadd.f32 %v661_v31, %v600_v47  ;;  %v471_v9 = vadd.f32 %v470_v32, %v2134_v6 }
  0xbe   : > { %v601_v3 = vadd.f32 %v582_v33, %v468_v62 }
  0xbf   : > { %v873_v13 = vadd.f32 %v853_v30, %v681_v59 }
  0xc3   : > { %v855_v34 = vpop.f32.mrf.mxu0 }
  0xc4   : > { %v663_v35 = vpop.f32.mrf.mxu3  ;;  %v472_v36 = vpop.f32.mrf.mxu1 }
  0xc5   : > { %v585_v38 = vpop.f32.mrf.mxu2  ;;  %v682_v4 = vadd.f32 %v663_v35, %v601_v3  ;;  %v473_v44 = vadd.f32 %v472_v36, %v2147_v16 }
  0xc6   : > { %v602_v0 = vadd.f32 %v585_v38, %v471_v9 }
  0xc7   : > { %v874_v15 = vadd.f32 %v855_v34, %v682_v4 }
  0xcb   : > { %v858_v39 = vpop.f32.mrf.mxu0 }
  0xcc   : > { %v666_v40 = vpop.f32.mrf.mxu3  ;;  %v475_v41 = vpop.f32.mrf.mxu1 }
  0xcd   : > { %v587_v42 = vpop.f32.mrf.mxu2  ;;  %v683_v6 = vadd.f32 %v666_v40, %v602_v0  ;;  %v476_v47 = vadd.f32 %v475_v41, %v2149_v19 }
  0xce   : > { %v603_v30 = vadd.f32 %v587_v42, %v473_v44 }
  0xcf   : > { %v875_v32 = vadd.f32 %v858_v39, %v683_v6 }
  0xd3   : > { %v2159_v43 = vpop.f32.mrf.mxu0 }
  0xd4   : > { %v668_v45 = vpop.f32.mrf.mxu3  ;;  %v2161_v48 = vpop.f32.mrf.mxu1 }
  0xd5   : > { %v590_v49 = vpop.f32.mrf.mxu2  ;;  %v684_v38 = vadd.f32 %v668_v45, %v603_v30  ;;  %v478_v19 = vadd.f32 %v2161_v48, %v2155_v46 }
  0xd6   : > { %v604_v16 = vadd.f32 %v590_v49, %v476_v47 }
  0xd7   : > { %v876_v62 = vadd.f32 %v2159_v43, %v684_v38 }
  0xdb   : > { %v2163_v50 = vpop.f32.mrf.mxu0 }
  0xdc   : > { %v2165_v51 = vpop.f32.mrf.mxu3  ;;  %v2167_v27 = vpop.f32.mrf.mxu1 }
  0xdd   : > { %v2169_v28 = vpop.f32.mrf.mxu2  ;;  %v481_v46 = vadd.f32 %v2167_v27, %v2152_v22 }
  0xde   : > { %v605_v49 = vadd.f32 %v2169_v28, %v478_v19 }
  0xe3   : > { %v2171_v52 = vpop.f32.mrf.mxu0 }
  0xe4   : > { %v2173_v29 = vpop.f32.mrf.mxu3  ;;  %v2175_v53 = vpop.f32.mrf.mxu1 }
  0xe5   : > { %v2177_v12 = vpop.f32.mrf.mxu2  ;;  %v483_v22 = vadd.f32 %v2175_v53, %v2157_v24 }
  0xe6   : > { %v606_v28 = vadd.f32 %v2177_v12, %v481_v46 }
  0xeb   : > { %v2179_v55 = vpop.f32.mrf.mxu0 }
  0xec   : > { %v2181_v57 = vpop.f32.mrf.mxu3  ;;  %v973_v58 = vpop.f32.mrf.mxu1 }
  0xed   : > { %v2183_v26 = vpop.f32.mrf.mxu2  ;;  %v993_v60 = vadd.f32 %v973_v58, %v873_v13  ;;  %v685_v13 = vadd.f32 %v2165_v51, %v604_v16  ;;  %v686_v51 = vadd.f32 %v2173_v29, %v605_v49  ;;  %v687_v29 = vadd.f32 %v2181_v57, %v606_v28 }
  0xee   : > { %v607_v12 = vadd.f32 %v2183_v26, %v483_v22 }
  0xef   : > { %v877_v43 = vadd.f32 %v2163_v50, %v685_v13  ;;  %v878_v50 = vadd.f32 %v2171_v52, %v686_v51  ;;  %v879_v52 = vadd.f32 %v2179_v55, %v687_v29 }
  0xf3   : > { %v2185_v61 = vpop.f32.mrf.mxu0 }
  0xf4   : > { %v2187_v1 = vpop.f32.mrf.mxu3  ;;  %v975_v2 = vpop.f32.mrf.mxu1 }
  0xf5   : > { %v1054_v5 = vpop.f32.mrf.mxu2  ;;  %v994_v37 = vadd.f32 %v975_v2, %v874_v15  ;;  %v688_v30 = vadd.f32 %v2187_v1, %v607_v12 }
  0xf6   : > { %v1074_v7 = vadd.f32 %v1054_v5, %v993_v60 }
  0xf7   : > { %v880_v26 = vadd.f32 %v2185_v61, %v688_v30 }
  0xfb   : > { %v1366_v8 = vpop.f32.mrf.mxu0 }
  0xfc   : > { %v1246_v63 = vpop.f32.mrf.mxu3  ;;  %v978_v10 = vpop.f32.mrf.mxu1 }
  0xfd   : > { %v1266_v11 = vadd.f32 %v1246_v63, %v1074_v7  ;;  %v1056_v17 = vpop.f32.mrf.mxu2  ;;  %v995_v35 = vadd.f32 %v978_v10, %v875_v32 }
  0xfe   : > { %v1075_v21 = vadd.f32 %v1056_v17, %v994_v37 }
  0xff   : > { %v1386_v18 = vadd.f32 %v1366_v8, %v1266_v11 }
 0x101   : > { %v1398_v20 = vadd.f32 %v2194_v14, %v1386_v18 }
 0x103   : > { %v1368_v23 = vpop.f32.mrf.mxu0  ;;  %1406 = vst [vmem:[%s2199_s20] sm:$0xff] %v1398_v20 }
 0x104   : > { %v1248_v25 = vpop.f32.mrf.mxu3  ;;  %v980_v54 = vpop.f32.mrf.mxu1 }
 0x105   : > { %v1267_v31 = vadd.f32 %v1248_v25, %v1075_v21  ;;  %v1059_v33 = vpop.f32.mrf.mxu2  ;;  %v996_v3 = vadd.f32 %v980_v54, %v876_v62 }
 0x106   : > { %v1076_v40 = vadd.f32 %v1059_v33, %v995_v35 }
 0x107   : > { %v1387_v34 = vadd.f32 %v1368_v23, %v1267_v31 }
 0x109   : > { %v1399_v56 = vadd.f32 %v2194_v14, %v1387_v34 }
 0x10b   : > { %v1371_v58 = vpop.f32.mrf.mxu0  ;;  %1407 = vst [vmem:[%s2199_s20 + $0x8] sm:$0xff] %v1399_v56 }
 0x10c   : > { %v1251_v59 = vpop.f32.mrf.mxu3  ;;  %v983_v2 = vpop.f32.mrf.mxu1 }
 0x10d   : > { %v1268_v36 = vadd.f32 %v1251_v59, %v1076_v40  ;;  %v1061_v42 = vpop.f32.mrf.mxu2  ;;  %v997_v9 = vadd.f32 %v983_v2, %v877_v43 }
 0x10e   : > { %v1077_v5 = vadd.f32 %v1061_v42, %v996_v3 }
 0x10f   : > { %v1388_v39 = vadd.f32 %v1371_v58, %v1268_v36 }
 0x111   : > { %v1400_v45 = vadd.f32 %v2194_v14, %v1388_v39 }
 0x113   : > { %v1373_v60 = vpop.f32.mrf.mxu0  ;;  %1408 = vst [vmem:[%s2199_s20 + $0x10] sm:$0xff] %v1400_v45 }
 0x114   : > { %v1253_v41 = vpop.f32.mrf.mxu3  ;;  %v985_v63 = vpop.f32.mrf.mxu1 }
 0x115   : > { %v1269_v4 = vadd.f32 %v1253_v41, %v1077_v5  ;;  %v1064_v7 = vpop.f32.mrf.mxu2  ;;  %v998_v37 = vadd.f32 %v985_v63, %v878_v50 }
 0x116   : > { %v1078_v0 = vadd.f32 %v1064_v7, %v997_v9 }
 0x117   : > { %v1389_v8 = vadd.f32 %v1373_v60, %v1269_v4 }
 0x119   : > { %v1401_v10 = vadd.f32 %v2194_v14, %v1389_v8 }
 0x11b   : > { %v1376_v11 = vpop.f32.mrf.mxu0  ;;  %1409 = vst [vmem:[%s2199_s20 + $0x18] sm:$0xff] %v1401_v10 }
 0x11c   : > { %v1256_v48 = vpop.f32.mrf.mxu3  ;;  %v988_v21 = vpop.f32.mrf.mxu1 }
 0x11d   : > { %v1270_v15 = vadd.f32 %v1256_v48, %v1078_v0  ;;  %v1066_v17 = vpop.f32.mrf.mxu2  ;;  %v999_v57 = vadd.f32 %v988_v21, %v879_v52 }
 0x11e   : > { %v1079_v20 = vadd.f32 %v1066_v17, %v998_v37 }
 0x11f   : > { %v1390_v18 = vadd.f32 %v1376_v11, %v1270_v15 }
 0x121   : > { %v1402_v6 = vadd.f32 %v2194_v14, %v1390_v18 }
 0x123   : > { %v1378_v23 = vpop.f32.mrf.mxu0  ;;  %1410 = vst [vmem:[%s2199_s20 + $0x20] sm:$0xff] %v1402_v6 }
 0x124   : > { %v1258_v27 = vpop.f32.mrf.mxu3  ;;  %v990_v33 = vpop.f32.mrf.mxu1 }
 0x125   : > { %v1271_v44 = vadd.f32 %v1258_v27, %v1079_v20  ;;  %v1069_v25 = vpop.f32.mrf.mxu2  ;;  %v1000_v55 = vadd.f32 %v990_v33, %v880_v26 }
 0x126   : > { %v1080_v32 = vadd.f32 %v1069_v25, %v999_v57 }
 0x127   : > { %v1391_v54 = vadd.f32 %v1378_v23, %v1271_v44 }
 0x129   : > { %v1403_v31 = vadd.f32 %v2194_v14, %v1391_v54 }
 0x12b   : > { %1411 = vst [vmem:[%s2199_s20 + $0x28] sm:$0xff] %v1403_v31  ;;  %v1381_v24 = vpop.f32.mrf.mxu0 }
 0x12c   : > { %v1261_v53 = vpop.f32.mrf.mxu3 }
 0x12d   : > { %v1272_v34 = vadd.f32 %v1261_v53, %v1080_v32  ;;  %v1071_v35 = vpop.f32.mrf.mxu2 }
 0x12e   : > { %v1081_v40 = vadd.f32 %v1071_v35, %v1000_v55 }
 0x12f   : > { %v1392_v38 = vadd.f32 %v1381_v24, %v1272_v34 }
 0x131   : > { %v1404_v56 = vadd.f32 %v2194_v14, %v1392_v38 }
 0x133   : > { %1412 = vst [vmem:[%s2199_s20 + $0x30] sm:$0xff] %v1404_v56  ;;  %v1383_v47 = vpop.f32.mrf.mxu0 }
 0x134   : > { %v1263_v58 = vpop.f32.mrf.mxu3 }
 0x135   : > { %v1273_v1 = vadd.f32 %v1263_v58, %v1081_v40 }
 0x137   : > { %v1393_v59 = vadd.f32 %v1383_v47, %v1273_v1 }
 0x139   : > { %v1405_v16 = vadd.f32 %v2194_v14, %v1393_v59 }
 0x13b   : > { %1413 = vst [vmem:[%s2199_s20 + $0x38] sm:$0xff] %v1405_v16 }
 0x13c PF: > { %s13_s14 = sadd.s32 1, %s1767_s14   ;;  %s2254_s12 = smov %s1763_s13 }
 0x13d   : > { %p10_p5 = scmp.ge.s32.totalorder %s13_s14, 4   ;;  %s2255_s13 = smov %s2257_s15 }
 0x13f   :  { %12 = sbr.rel (!%p10_p5) target bundleno = 2 (0x2), region = 70 }

// kernel: down_forward.13
= control target key start
LH: loop header
LB: loop body
LE: loop exit
PB: predicated region body
PF: predicated region fallthrough
CT: control target
= control target key end

     0   :  { %s327_s12 = smov 0   ;;  %s350_s0 = inlined_call_operand.vmem [shape: f32[128,128], index: 0, kind: input, shape index: {}]   ;;  %s351_s1 = inlined_call_operand.vmem [shape: f32[1,128], index: 1, kind: input, shape index: {}]   ;;  %s352_s2 = inlined_call_operand.vmem [shape: f32[1,128], index: 2, kind: input, shape index: {}]   ;;  %s353_s3 = inlined_call_operand.vmem [shape: f32[128,128], index: 3, kind: output, shape index: {}]  }
   0x1 LB: > { %s278_s13 = sadd.s32 4294967295, %s305_s12   ;;  %p282_p0 = scmp.ge.s32.totalorder %s305_s12, 1  ;;  %s305_s12 = sphi %s327_s12, %s13_s12  }
   0x2   : > { %p138_p1 = scmp.lt.s32.totalorder %s305_s12, 3 }
   0x4   : > { %p139_p2 = pnand %p282_p0, %p138_p1 }
   0x5   : > { %s283_s14 = sshll.u32 (!%p139_p2), %s278_s13, 3 }
   0x6   : > { %142 = sbr.rel (%p139_p2) target bundleno = 29 (0x1d), region = 32  ;;  %p163_p3 = scmp.lt.s32.totalorder (!%p139_p2), %s283_s14, 15 }
   0xb   : > { %s355_s14 = smov (!%p163_p3, %s283_s14), 15  ;;  %v297_v0 = vld [vmem:[%s351_s1] ss:$0 sm:$0xff] }
   0xc   : > { %s284_s17 = sshll.u32 %s355_s14, 3  ;;  %v298_v1 = vld [vmem:[%s352_s2] ss:$0 sm:$0xff] }
   0xd   : > { %s166_s20 = scalar_lea.vmem %s350_s0, %s284_s17  ;;  %s172_s25 = scalar_lea.vmem %s353_s3, %s284_s17 }
   0xe   : > { %v174_v2 = vld [vmem:[%s166_s20] sm:$0xff]  ;;  %v175_v3 = vld [vmem:[%s166_s20 + $0x8] sm:$0xff]  ;;  %v176_v4 = vld [vmem:[%s166_s20 + $0x10] sm:$0xff] }
   0xf   : > { %v186_v5 = vmul.f32 %v297_v0, %v174_v2  ;;  %v187_v6 = vmul.f32 %v297_v0, %v175_v3  ;;  %v188_v7 = vmul.f32 %v297_v0, %v176_v4  ;;  %v177_v8 = vld [vmem:[%s166_s20 + $0x18] sm:$0xff]  ;;  %v178_v9 = vld [vmem:[%s166_s20 + $0x20] sm:$0xff]  ;;  %v179_v10 = vld [vmem:[%s166_s20 + $0x28] sm:$0xff] }
  0x10   : > { %v189_v11 = vmul.f32 %v297_v0, %v177_v8  ;;  %v190_v12 = vmul.f32 %v297_v0, %v178_v9  ;;  %v191_v13 = vmul.f32 %v297_v0, %v179_v10  ;;  %v180_v14 = vld [vmem:[%s166_s20 + $0x30] sm:$0xff]  ;;  %v181_v15 = vld [vmem:[%s166_s20 + $0x38] sm:$0xff] }
  0x11   : > { %v198_v16 = vadd.f32 %v298_v1, %v186_v5  ;;  %v199_v17 = vadd.f32 %v298_v1, %v187_v6  ;;  %v200_v18 = vadd.f32 %v298_v1, %v188_v7  ;;  %v192_v19 = vmul.f32 %v297_v0, %v180_v14 }
  0x12   : > { %v201_v20 = vadd.f32 %v298_v1, %v189_v11  ;;  %v202_v21 = vadd.f32 %v298_v1, %v190_v12  ;;  %v203_v22 = vadd.f32 %v298_v1, %v191_v13  ;;  %v193_v23 = vmul.f32 %v297_v0, %v181_v15 }
  0x13   : > { %v206_v24 = vmax.f32 %v198_v16, 0.0  ;;  %v207_v25 = vmax.f32 %v199_v17, 0.0  ;;  %v208_v26 = vmax.f32 %v200_v18, 0.0  ;;  %v204_v27 = vadd.f32 %v298_v1, %v192_v19 }
  0x14   : > { %v209_v28 = vmax.f32 %v201_v20, 0.0  ;;  %v205_v29 = vadd.f32 %v298_v1, %v193_v23  ;;  %v210_v30 = vmax.f32 %v202_v21, 0.0  ;;  %v211_v31 = vmax.f32 %v203_v22, 0.0 }
  0x15   : > { %214 = vst [vmem:[%s172_s25] sm:$0xff] %v206_v24  ;;  %v212_v32 = vmax.f32 %v204_v27, 0.0 }
  0x16   : > { %215 = vst [vmem:[%s172_s25 + $0x8] sm:$0xff] %v207_v25  ;;  %v213_v33 = vmax.f32 %v205_v29, 0.0 }
  0x17   : > { %216 = vst [vmem:[%s172_s25 + $0x10] sm:$0xff] %v208_v26 }
  0x18   : > { %217 = vst [vmem:[%s172_s25 + $0x18] sm:$0xff] %v209_v28 }
  0x19   : > { %218 = vst [vmem:[%s172_s25 + $0x20] sm:$0xff] %v210_v30 }
  0x1a   : > { %219 = vst [vmem:[%s172_s25 + $0x28] sm:$0xff] %v211_v31 }
  0x1b   : > { %220 = vst [vmem:[%s172_s25 + $0x30] sm:$0xff] %v212_v32 }
  0x1c   : > { %221 = vst [vmem:[%s172_s25 + $0x38] sm:$0xff] %v213_v33 }
  0x1d PF: > { %s13_s12 = sadd.s32 1, %s305_s12  }
  0x1e   : > { %p10_p4 = scmp.ge.s32.totalorder %s13_s12, 4  }
  0x20   :  { %12 = sbr.rel (!%p10_p4) target bundleno = 1 (0x1), region = 62 }

// kernel: down_forward.11
= control target key start
LH: loop header
LB: loop body
LE: loop exit
PB: predicated region body
PF: predicated region fallthrough
CT: control target
= control target key end

     0   :  { %s2591_s12 = smov 0   ;;  %s2593_s13 = smov 0   ;;  %s3235_s0 = inlined_call_operand.vmem [shape: bf16[2,10,10,128], index: 0, kind: input, shape index: {}]   ;;  %s3236_s1 = inlined_call_operand.vmem [shape: bf16[3,3,128,128], index: 1, kind: input, shape index: {}]   ;;  %s3237_s2 = inlined_call_operand.vmem [shape: f32[1,128], index: 2, kind: input, shape index: {}]   ;;  %s3238_s3 = inlined_call_operand.vmem [shape: f32[2,8,8,128], index: 3, kind: output, shape index: {}]  }
   0x1   :  { %s2595_s14 = smov 0  }
   0x2 LB: > { %s25_s15 = sadd.s32 1, %s2565_s13  ;;  %p1990_p0 = scmp.ge.s32.totalorder %s2569_s14, 1  ;;  %s2569_s14 = sphi %s2595_s14, %s13_s14   ;;  %s2565_s13 = sphi %s2593_s13, %s3244_s13   ;;  %s2561_s12 = sphi %s2591_s12, %s3243_s12  }
   0x3   : > { %p27_p1 = scmp.ge.s32.totalorder %s25_s15, 2  ;;  %p168_p2 = scmp.lt.s32.totalorder %s2569_s14, 3 }
   0x5   : > { %s3246_s15 = smov (%p27_p1, %s25_s15), 0  ;;  %p169_p3 = pnand %p1990_p0, %p168_p2 }
   0x6   : > { %p202_p4 = scmp.lt.s32.totalorder (!%p169_p3), %s2561_s12, 1 }
   0x7   : > { %172 = sbr.rel (%p169_p3) target bundleno = 333 (0x14d), region = 32 }
   0xc   : > { %v2436_v0 = vld [vmem:[%s3236_s1 + $0x78] sm:$0xff]  ;;  %v2435_v2 = vld [vmem:[%s3236_s1 + $0x70] sm:$0xff]  ;;  %s3248_s12 = smov (!%p202_p4, %s2561_s12), 1  ;;  %v2434_v6 = vld [vmem:[%s3236_s1 + $0x68] sm:$0xff]  ;;  %vm382_vm0 = vsmask.f32 3328 }
   0xd   : > { %v2444_v1 = vld [vmem:[%s3236_s1 + $0xb8] sm:$0xff]  ;;  %2505 = vmatpush.bf16.msra.mxu1 %v2436_v0  ;;  %561 = vmatpush.bf16.msra.mxu0 %v2436_v0  ;;  %v2443_v3 = vld [vmem:[%s3236_s1 + $0xb0] sm:$0xff]  ;;  %s2521_s26 = smul.u32 80, %s3248_s12  ;;  %v2442_v7 = vld [vmem:[%s3236_s1 + $0xa8] sm:$0xff]  ;;  %vm383_vm1 = vsmask.f32 7440 }
   0xe   : > { %814 = vmatpush.bf16.msra.mxu2 %v2444_v1  ;;  %v2452_v4 = vld [vmem:[%s3236_s1 + $0xf8] sm:$0xff]  ;;  %v2451_v5 = vld [vmem:[%s3236_s1 + $0xf0] sm:$0xff]  ;;  %v2433_v11 = vld [vmem:[%s3236_s1 + $0x60] sm:$0xff]  ;;  %vm715_vm2 = vcmask 1042432   ;;  %vm716_vm3 = vcmask 1046532  }
   0xf   : > { %932 = vmatpush.bf16.msra.mxu3 %v2452_v4  ;;  %s2639_s8 = scalar_lea.vmem %s3235_s0, %s2521_s26  ;;  %v2441_v16 = vld [vmem:[%s3236_s1 + $0xa0] sm:$0xff]  ;;  %v2450_v17 = vld [vmem:[%s3236_s1 + $0xe8] sm:$0xff]  ;;  %v2432_v29 = vld [vmem:[%s3236_s1 + $0x58] sm:$0xff] }
  0x10   : > { %v370_v8 = vld [vmem:[%s2639_s8 + $0x20] sm:$0xf]  ;;  %v371_v9 = vld [vmem:[%s2639_s8 + $0x28] sm:$0xf]  ;;  %v2644_v10 = vld [vmem:[%s2639_s8 + $0x24] sm:$0x1] }
  0x11   : > { %2506 = vmatpush.bf16.msra.mxu1 %v2435_v2  ;;  %562 = vmatpush.bf16.msra.mxu0 %v2435_v2  ;;  %v2650_v12 = vld [vmem:[%s2639_s8 + $0x2c] sm:$0x1]  ;;  %v442_v13 = vshrl.u32 %v370_v8, 16  ;;  %v445_v14 = vshll.u32 %v370_v8, 16  ;;  %v456_v15 = vshrl.u32 %v371_v9, 16  ;;  %v459_v18 = vshll.u32 %v371_v9, 16  ;;  %vm2677_vm4 = vmor %vm382_vm0, %vm383_vm1 }
  0x12   : > { %815 = vmatpush.bf16.msra.mxu2 %v2443_v3  ;;  %v366_v19 = vld [vmem:[%s2639_s8] sm:$0xf]  ;;  %v451_v22 = vshll.u32 %v2644_v10, 16  ;;  %v367_v24 = vld [vmem:[%s2639_s8 + $0x8] sm:$0xf]  ;;  %v465_v26 = vshll.u32 %v2650_v12, 16  ;;  %vm2686_vm5 = vmor %vm715_vm2, %vm716_vm3 }
  0x13   : > { %933 = vmatpush.bf16.msra.mxu3 %v2451_v5  ;;  %v444_v20 = vrot.slane %v442_v13, 4  ;;  %v447_v21 = vrot.slane %v445_v14, 5  ;;  %v458_v23 = vrot.slane %v456_v15, 4  ;;  %v461_v25 = vrot.slane %v459_v18, 5  ;;  %v374_v27 = vld [vmem:[%s2639_s8 + $0x4] sm:$0x1] }
  0x14   : > { %v375_v28 = vld [vmem:[%s2639_s8 + $0xc] sm:$0x1]  ;;  %v386_v31 = vshrl.u32 %v366_v19, 16  ;;  %v389_v32 = vshll.u32 %v366_v19, 16  ;;  %v2449_v34 = vld [vmem:[%s3236_s1 + $0xe0] sm:$0xff]  ;;  %v395_v35 = vshll.u32 %v374_v27, 16 }
  0x15   : > { %2507 = vmatpush.bf16.msra.mxu1 %v2434_v6  ;;  %563 = vmatpush.bf16.msra.mxu0 %v2434_v6  ;;  %v448_v30 = vor.u32 %v447_v21, %v444_v20  ;;  %v462_v33 = vor.u32 %v461_v25, %v458_v23  ;;  %v400_v36 = vshrl.u32 %v367_v24, 16  ;;  %v403_v37 = vshll.u32 %v367_v24, 16  ;;  %v691_v38 = vld [vmem:[%s2639_s8] sm:$0xe]  ;;  %v692_v43 = vld [vmem:[%s2639_s8 + $0x8] sm:$0xe] }
  0x16   : > { %816 = vmatpush.bf16.msra.mxu2 %v2442_v7  ;;  %v453_v39 = vrot.slane %v451_v22, 5  ;;  %v388_v40 = vrot.slane %v386_v31, 4  ;;  %v391_v41 = vrot.slane %v389_v32, 5  ;;  %v409_v42 = vshll.u32 %v375_v28, 16  ;;  %v2440_v44 = vld [vmem:[%s3236_s1 + $0x98] sm:$0xff]  ;;  %v2431_v60 = vld [vmem:[%s3236_s1 + $0x50] sm:$0xff] }
  0x17   : > { %934 = vmatpush.bf16.msra.mxu3 %v2450_v17  ;;  %v449_v45 = vrot.slane %v448_v30, 4  ;;  %v467_v46 = vrot.slane %v465_v26, 5  ;;  %v402_v47 = vrot.slane %v400_v36, 4  ;;  %v405_v48 = vrot.slane %v403_v37, 5  ;;  %v2448_v56 = vld [vmem:[%s3236_s1 + $0xd8] sm:$0xff]  ;;  %v2439_v0 = vld [vmem:[%s3236_s1 + $0x90] sm:$0xff] }
  0x18   : > { %v463_v50 = vrot.slane %v462_v33, 4  ;;  %v392_v51 = vor.u32 %v391_v41, %v388_v40  ;;  %v2074_v52 = vrot.slane %v691_v38, 9  ;;  %v720_v53 = vrot.slane %v374_v27, 5  ;;  %v372_v59 = vld [vmem:[%s2639_s8 + $0x30] sm:$0xf]  ;;  %v2430_v14 = vld [vmem:[%s3236_s1 + $0x48] sm:$0xff] }
  0x19   : > { %2508 = vmatpush.bf16.msra.mxu1 %v2433_v11  ;;  %564 = vmatpush.bf16.msra.mxu0 %v2433_v11  ;;  %v397_v54 = vrot.slane %v395_v35, 5  ;;  %v406_v55 = vor.u32 %v405_v48, %v402_v47  ;;  %v2075_v58 = vrot.slane %v692_v43, 9  ;;  %v411_v62 = vrot.slane %v409_v42, 5  ;;  %v373_v3 = vld [vmem:[%s2639_s8 + $0x38] sm:$0xf]  ;;  %v2447_v11 = vld [vmem:[%s3236_s1 + $0xd0] sm:$0xff] }
  0x1a   : > { %817 = vmatpush.bf16.msra.mxu2 %v2441_v16  ;;  %v393_v61 = vrot.slane %v392_v51, 4  ;;  %v724_v63 = vrot.slane %v375_v28, 5  ;;  %v454_v1 = vsel %vm2677_vm4, %v449_v45, %v453_v39  ;;  %v468_v4 = vsel %vm2677_vm4, %v463_v50, %v467_v46  ;;  %v368_v7 = vld [vmem:[%s2639_s8 + $0x10] sm:$0xf]  ;;  %v2438_v19 = vld [vmem:[%s3236_s1 + $0x88] sm:$0xff]  ;;  %v2429_v24 = vld [vmem:[%s3236_s1 + $0x40] sm:$0xff] }
  0x1b   : > { %935 = vmatpush.bf16.msra.mxu3 %v2449_v34  ;;  %v407_v2 = vrot.slane %v406_v55, 4  ;;  %v721_v5 = vsel %vm2686_vm5, %v2074_v52, %v720_v53  ;;  %v470_v6 = vshrl.u32 %v372_v59, 16  ;;  %v473_v13 = vshll.u32 %v372_v59, 16  ;;  %v369_v22 = vld [vmem:[%s2639_s8 + $0x18] sm:$0xf]  ;;  %v2446_v31 = vld [vmem:[%s3236_s1 + $0xc8] sm:$0xff] }
  0x1c   : > { %v398_v8 = vsel %vm2677_vm4, %v393_v61, %v397_v54  ;;  %v725_v9 = vsel %vm2686_vm5, %v2075_v58, %v724_v63  ;;  %v2715_v15 = vunpack.c.l.b16 %v454_v1  ;;  %v484_v17 = vshrl.u32 %v373_v3, 16  ;;  %v2733_v32 = vld [vmem:[%s2639_s8 + $0x34] sm:$0x1]  ;;  %v2736_v36 = vld [vmem:[%s2639_s8 + $0x3c] sm:$0x1]  ;;  %v2437_v42 = vld [vmem:[%s3236_s1 + $0x80] sm:$0xff] }
  0x1d   : > { %2509 = vmatpush.bf16.msra.mxu1 %v2432_v29  ;;  %565 = vmatpush.bf16.msra.mxu0 %v2432_v29  ;;  %v412_v16 = vsel %vm2677_vm4, %v407_v2, %v411_v62  ;;  %v502_v18 = vunpack.c.l.b16 %v468_v4  ;;  %v750_v20 = vunpack.c.l.b16 %v721_v5  ;;  %v487_v21 = vshll.u32 %v373_v3, 16  ;;  %v2428_v29 = vld [vmem:[%s3236_s1 + $0x38] sm:$0xff]  ;;  %v2743_v43 = vld [vmem:[%s2639_s8 + $0x14] sm:$0x1]  ;;  %v2445_v58 = vld [vmem:[%s3236_s1 + $0xc0] sm:$0xff] }
  0x1e   : > { %818 = vmatpush.bf16.msra.mxu2 %v2440_v44  ;;  %v414_v23 = vshrl.u32 %v368_v7, 16  ;;  %v497_v25 = vunpack.c.l.b16 %v398_v8  ;;  %v751_v26 = vunpack.c.l.b16 %v725_v9  ;;  %v472_v27 = vrot.slane %v470_v6, 4  ;;  %v2746_v44 = vld [vmem:[%s2639_s8 + $0x1c] sm:$0x1]  ;;  %v2427_v52 = vld [vmem:[%s3236_s1 + $0x30] sm:$0xff] }
  0x1f   : > { %936 = vmatpush.bf16.msra.mxu3 %v2448_v56  ;;  %v417_v28 = vshll.u32 %v368_v7, 16  ;;  %v498_v30 = vunpack.c.l.b16 %v412_v16  ;;  %v475_v33 = vrot.slane %v473_v13, 5  ;;  %v486_v34 = vrot.slane %v484_v17, 4  ;;  %v2460_v45 = vld [vmem:[%s3236_s1 + $0x138] sm:$0xff]  ;;  %v2124_v63 = vld [vmem:[%s2639_s8 + $0x8] sm:$0xf] }
  0x20   : > { %v489_v35 = vrot.slane %v487_v21, 5  ;;  %v416_v37 = vrot.slane %v414_v23, 4  ;;  %v428_v39 = vshrl.u32 %v369_v22, 16  ;;  %v431_v40 = vshll.u32 %v369_v22, 16  ;;  %v2476_v48 = vld [vmem:[%s3236_s1 + $0x1b8] sm:$0xff]  ;;  %v2459_v1 = vld [vmem:[%s3236_s1 + $0x130] sm:$0xff] }
  0x21   : > { %2510 = vmatpush.bf16.msra.mxu1 %v2431_v60  ;;  %566 = vmatpush.bf16.msra.mxu0 %v2431_v60  ;;  %v419_v38 = vrot.slane %v417_v28, 5  ;;  %v507_v41 = vpack.c.b16 %v502_v18, %v2715_v15  ;;  %v758_v46 = vpack.c.b16 %v751_v26, %v750_v20  ;;  %v479_v47 = vshll.u32 %v2733_v32, 16  ;;  %v2484_v2 = vld [vmem:[%s3236_s1 + $0x1f8] sm:$0xff]  ;;  %v693_v4 = vld [vmem:[%s2639_s8 + $0x10] sm:$0xe]  ;;  %v2474_v26 = vld [vmem:[%s3236_s1 + $0x1a8] sm:$0xff] }
  0x22   : > { %819 = vmatpush.bf16.msra.mxu2 %v2439_v0  ;;  %v430_v50 = vrot.slane %v428_v39, 4  ;;  %v433_v51 = vrot.slane %v431_v40, 5  ;;  %v505_v53 = vpack.c.b16 %v498_v30, %v497_v25  ;;  %v476_v54 = vor.u32 %v475_v33, %v472_v27  ;;  %v2497_v0 = vld [vmem:[%s2639_s8 + $0xc] sm:$0xf0]  ;;  %v694_v5 = vld [vmem:[%s2639_s8 + $0x18] sm:$0xe] }
  0x23   : > { %937 = vmatpush.bf16.msra.mxu3 %v2447_v11  ;;  %v490_v55 = vor.u32 %v489_v35, %v486_v34  ;;  %v493_v56 = vshll.u32 %v2736_v36, 16  ;;  %v420_v59 = vor.u32 %v419_v38, %v416_v37  ;;  %v423_v60 = vshll.u32 %v2743_v43, 16  ;;  %v2475_v6 = vld [vmem:[%s3236_s1 + $0x1b0] sm:$0xff]  ;;  %v2170_v13 = vld [vmem:[%s2639_s8 + $0x8] sm:$0xf]  ;;  %v2425_v37 = vld [vmem:[%s3236_s1 + $0x20] sm:$0xff] }
  0x24   : > { %v434_v61 = vor.u32 %v433_v51, %v430_v50  ;;  %v437_v62 = vshll.u32 %v2746_v44, 16  ;;  %v481_v3 = vrot.slane %v479_v47, 5  ;;  %v477_v7 = vrot.slane %v476_v54, 4  ;;  %v2172_v18 = vld [vmem:[%s2639_s8 + $0x10] sm:$0xf]  ;;  %v2458_v25 = vld [vmem:[%s3236_s1 + $0x128] sm:$0xff] }
  0x25   : > { %2511 = vmatpush.bf16.msra.mxu1 %v2430_v14  ;;  %567 = vmatpush.bf16.msra.mxu0 %v2430_v14  ;;  %v491_v8 = vrot.slane %v490_v55, 4  ;;  %v495_v9 = vrot.slane %v493_v56, 5  ;;  %v2125_v11 = vor.u32 %v2497_v0, %v2124_v63  ;;  %v421_v14 = vrot.slane %v420_v59, 4  ;;  %v2482_v40 = vld [vmem:[%s3236_s1 + $0x1e8] sm:$0xff]  ;;  %v2424_v55 = vld [vmem:[%s3236_s1 + $0x18] sm:$0xff] }
  0x26   : > { %820 = vmatpush.bf16.msra.mxu2 %v2438_v19  ;;  %v425_v15 = vrot.slane %v423_v60, 5  ;;  %v435_v16 = vrot.slane %v434_v61, 4  ;;  %v439_v17 = vrot.slane %v437_v62, 5  ;;  %v2426_v19 = vld [vmem:[%s3236_s1 + $0x28] sm:$0xff]  ;;  %v2076_v20 = vrot.slane %v693_v4, 9 }
  0x27   : > { %938 = vmatpush.bf16.msra.mxu3 %v2446_v31  ;;  %v728_v21 = vrot.slane %v2743_v43, 5  ;;  %v2077_v22 = vrot.slane %v694_v5, 9  ;;  %v732_v23 = vrot.slane %v2746_v44, 5  ;;  %v482_v27 = vsel %vm2677_vm4, %v477_v7, %v481_v3  ;;  %v2457_v43 = vld [vmem:[%s3236_s1 + $0x120] sm:$0xff]  ;;  %v2818_v47 = vld [vmem:[%s2639_s8 + $0xc] sm:$0x1] }
  0x28   : > { %v496_v28 = vsel %vm2677_vm4, %v491_v8, %v495_v9  ;;  %v989_v30 = vshll.u32 %v2170_v13, 16  ;;  %v426_v31 = vsel %vm2677_vm4, %v421_v14, %v425_v15  ;;  %v440_v33 = vsel %vm2677_vm4, %v435_v16, %v439_v17  ;;  %v2473_v44 = vld [vmem:[%s3236_s1 + $0x1a0] sm:$0xff]  ;;  %v2824_v56 = vld [vmem:[%s2639_s8 + $0x14] sm:$0x1]  ;;  %v2128_v62 = vld [vmem:[%s2639_s8 + $0x18] sm:$0xf] }
  0x29   : > { %2512 = vmatpush.bf16.msra.mxu1 %v2429_v24  ;;  %568 = vmatpush.bf16.msra.mxu0 %v2429_v24  ;;  %v2483_v24 = vld [vmem:[%s3236_s1 + $0x1f0] sm:$0xff]  ;;  %v1000_v34 = vshrl.u32 %v2172_v18, 16  ;;  %v1003_v35 = vshll.u32 %v2172_v18, 16  ;;  %v729_v38 = vsel %vm2686_vm5, %v2076_v20, %v728_v21  ;;  %v733_v39 = vsel %vm2686_vm5, %v2077_v22, %v732_v23  ;;  %v2498_v63 = vld [vmem:[%s2639_s8 + $0x1c] sm:$0xf0]  ;;  %v2472_v17 = vld [vmem:[%s3236_s1 + $0x198] sm:$0xff] }
  0x2a   : > { %821 = vmatpush.bf16.msra.mxu2 %v2437_v42  ;;  %v504_v42 = vunpack.c.l.b16 %v496_v28  ;;  %v991_v50 = vrot.slane %v989_v30, 5  ;;  %v752_v51 = vunpack.c.l.b16 %v729_v38  ;;  %v995_v59 = vshll.u32 %v2818_v47, 16  ;;  %v696_v5 = vld [vmem:[%s2639_s8 + $0x28] sm:$0xe]  ;;  %v2455_v7 = vld [vmem:[%s3236_s1 + $0x110] sm:$0xff]  ;;  %v2481_v21 = vld [vmem:[%s3236_s1 + $0x1e0] sm:$0xff] }
  0x2b   : > { %939 = vmatpush.bf16.msra.mxu3 %v2445_v58  ;;  %v1005_v54 = vrot.slane %v1003_v35, 5  ;;  %v2456_v58 = vld [vmem:[%s3236_s1 + $0x118] sm:$0xff]  ;;  %v1009_v4 = vshll.u32 %v2824_v56, 16  ;;  %v2129_v8 = vor.u32 %v2498_v63, %v2128_v62  ;;  %v736_v14 = vrot.slane %v2644_v10, 5  ;;  %v2422_v10 = vld [vmem:[%s3236_s1 + $0x8] sm:$0xff]  ;;  %v2471_v23 = vld [vmem:[%s3236_s1 + $0x190] sm:$0xff] }
  0x2c   : > { %579 = vmatmul.bf16.vlgmr.msra.gmra.mxu1 %v507_v41  ;;  %569 = vmatmul.bf16.vlgmr.msra.gmra.mxu0 %v505_v53  ;;  %v503_v41 = vunpack.c.l.b16 %v482_v27  ;;  %v1002_v53 = vrot.slane %v1000_v34, 4  ;;  %v997_v9 = vrot.slane %v995_v59, 5  ;;  %v2079_v15 = vrot.slane %v696_v5, 9  ;;  %v2174_v20 = vld [vmem:[%s2639_s8 + $0x18] sm:$0xf]  ;;  %v2421_v34 = vld [vmem:[%s3236_s1] sm:$0xff] }
  0x2d   : > { %662 = vmatpush.bf16.msrb.mxu1 %v2428_v29  ;;  %1161 = vmatpush.bf16.msrb.mxu0 %v2460_v45  ;;  %v986_v29 = vshrl.u32 %v2170_v13, 16  ;;  %v499_v45 = vunpack.c.l.b16 %v426_v31  ;;  %v740_v16 = vrot.slane %v2650_v12, 5  ;;  %v2176_v22 = vld [vmem:[%s2639_s8 + $0x20] sm:$0xf]  ;;  %v2454_v12 = vld [vmem:[%s3236_s1 + $0x108] sm:$0xff]  ;;  %v1014_v28 = vshrl.u32 %v2174_v20, 16 }
  0x2e   : > { %1436 = vmatpush.bf16.msrb.mxu2 %v2476_v48  ;;  %940 = vmatmul.bf16.vlgmr.msra.gmra.mxu3 %v2125_v11  ;;  %v508_v60 = vpack.c.b16 %v504_v42, %v503_v41  ;;  %v1006_v3 = vor.u32 %v1005_v54, %v1002_v53  ;;  %v1017_v30 = vshll.u32 %v2174_v20, 16  ;;  %v1028_v31 = vshrl.u32 %v2176_v22, 16  ;;  %v2028_v35 = vld [vmem:[%s2639_s8] sm:$0xf]  ;;  %v2467_v53 = vld [vmem:[%s3236_s1 + $0x170] sm:$0xff] }
  0x2f   : > { %822 = vmatmul.bf16.vlgmr.msra.gmra.mxu2 %v758_v46  ;;  %1665 = vmatpush.bf16.msrb.mxu3 %v2484_v2  ;;  %v500_v46 = vunpack.c.l.b16 %v440_v33  ;;  %v988_v48 = vrot.slane %v986_v29, 4  ;;  %v741_v27 = vsel %vm2686_vm5, %v2079_v15, %v740_v16  ;;  %v1031_v33 = vshll.u32 %v2176_v22, 16  ;;  %v2453_v38 = vld [vmem:[%s3236_s1 + $0x100] sm:$0xff]  ;;  %v2499_v62 = vld [vmem:[%s2639_s8 + $0x2c] sm:$0xf0] }
  0x30   : > { %v1007_v18 = vrot.slane %v1006_v3, 4  ;;  %v2178_v3 = vld [vmem:[%s2639_s8 + $0x28] sm:$0xf]  ;;  %v698_v5 = vld [vmem:[%s2639_s8 + $0x38] sm:$0xe]  ;;  %v744_v20 = vrot.slane %v2733_v32, 5 }
  0x31   : > { %663 = vmatpush.bf16.msrb.mxu1 %v2427_v52  ;;  %1162 = vmatpush.bf16.msrb.mxu0 %v2459_v1  ;;  %v753_v52 = vunpack.c.l.b16 %v733_v39  ;;  %v506_v61 = vpack.c.b16 %v500_v46, %v499_v45  ;;  %v992_v0 = vor.u32 %v991_v50, %v988_v48  ;;  %v695_v1 = vld [vmem:[%s2639_s8 + $0x20] sm:$0xe]  ;;  %v2493_v39 = vld [vmem:[%s2639_s8 + $0x4] sm:$0xf0]  ;;  %v2888_v45 = vld [vmem:[%s3236_s1 + $0x238] sm:$0xff]  ;;  %v1016_v48 = vrot.slane %v1014_v28, 4 }
  0x32   : > { %1437 = vmatpush.bf16.msrb.mxu2 %v2475_v6  ;;  %v2423_v6 = vld [vmem:[%s3236_s1 + $0x10] sm:$0xff]  ;;  %v2078_v11 = vrot.slane %v695_v1, 9  ;;  %v2891_v46 = vld [vmem:[%s2639_s8 + $0x24] sm:$0x1]  ;;  %v1019_v50 = vrot.slane %v1017_v30, 5  ;;  %v2029_v54 = vor.u32 %v2493_v39, %v2028_v35  ;;  %v1042_v15 = vshrl.u32 %v2178_v3, 16 }
  0x33   : > { %1666 = vmatpush.bf16.msrb.mxu3 %v2483_v24  ;;  %v759_v2 = vpack.c.b16 %v753_v52, %v752_v51  ;;  %v993_v13 = vrot.slane %v992_v0, 4  ;;  %v2480_v24 = vld [vmem:[%s3236_s1 + $0x1d8] sm:$0xff]  ;;  %v1030_v51 = vrot.slane %v1028_v31, 4  ;;  %v1033_v52 = vrot.slane %v1031_v33, 5  ;;  %v2904_v1 = vld [vmem:[%s3236_s1 + $0x230] sm:$0xff]  ;;  %v2469_v22 = vld [vmem:[%s3236_s1 + $0x180] sm:$0xff] }
  0x34   : > { %v1037_v59 = vshll.u32 %v2891_v46, 16  ;;  %v1020_v63 = vor.u32 %v1019_v50, %v1016_v48  ;;  %v1045_v16 = vshll.u32 %v2178_v3, 16  ;;  %v2478_v32 = vld [vmem:[%s3236_s1 + $0x1c8] sm:$0xff]  ;;  %v2944_v28 = vld [vmem:[%s3236_s1 + $0x220] sm:$0xff]  ;;  %v2464_v31 = vld [vmem:[%s3236_s1 + $0x158] sm:$0xff] }
  0x35   : > { %664 = vmatpush.bf16.msrb.mxu1 %v2426_v19  ;;  %1163 = vmatpush.bf16.msrb.mxu0 %v2458_v25  ;;  %v1011_v19 = vrot.slane %v1009_v4, 5  ;;  %v998_v25 = vsel %vm2677_vm4, %v993_v13, %v997_v9  ;;  %v1034_v0 = vor.u32 %v1033_v52, %v1030_v51  ;;  %v697_v4 = vld [vmem:[%s2639_s8 + $0x30] sm:$0xe]  ;;  %v2954_v33 = vld [vmem:[%s2639_s8 + $0x2c] sm:$0x1] }
  0x36   : > { %1438 = vmatpush.bf16.msrb.mxu2 %v2474_v26  ;;  %v737_v26 = vsel %vm2686_vm5, %v2078_v11, %v736_v14  ;;  %v1039_v9 = vrot.slane %v1037_v59, 5  ;;  %v2180_v11 = vld [vmem:[%s2639_s8 + $0x30] sm:$0xf]  ;;  %v1021_v13 = vrot.slane %v1020_v63, 4  ;;  %v2957_v39 = vld [vmem:[%s2639_s8 + $0x34] sm:$0x1] }
  0x37   : > { %1667 = vmatpush.bf16.msrb.mxu3 %v2482_v40  ;;  %v1012_v29 = vsel %vm2677_vm4, %v1007_v18, %v1011_v19  ;;  %v1097_v40 = vunpack.c.l.b16 %v998_v25  ;;  %v754_v42 = vunpack.c.l.b16 %v737_v26  ;;  %v1035_v14 = vrot.slane %v1034_v0, 4  ;;  %v2923_v18 = vld [vmem:[%s3236_s1 + $0x228] sm:$0xff]  ;;  %v2324_v51 = vld [vmem:[%s2639_s8 + $0x18] sm:$0xf]  ;;  %v2500_v63 = vld [vmem:[%s2639_s8 + $0x3c] sm:$0xf0] }
  0x38   : > { %v1098_v41 = vunpack.c.l.b16 %v1012_v29  ;;  %v2080_v19 = vrot.slane %v697_v4, 9  ;;  %v1044_v26 = vrot.slane %v1042_v15, 4  ;;  %v1051_v52 = vshll.u32 %v2954_v33, 16  ;;  %v2182_v0 = vld [vmem:[%s2639_s8 + $0x38] sm:$0xf] }
  0x39   : > { %665 = vmatpush.bf16.msrb.mxu1 %v2425_v37  ;;  %1164 = vmatpush.bf16.msrb.mxu0 %v2457_v43  ;;  %v2468_v37 = vld [vmem:[%s3236_s1 + $0x178] sm:$0xff]  ;;  %v755_v43 = vunpack.c.l.b16 %v741_v27  ;;  %v1040_v25 = vsel %vm2677_vm4, %v1035_v14, %v1039_v9  ;;  %v1047_v27 = vrot.slane %v1045_v16, 5  ;;  %v1065_v59 = vshll.u32 %v2957_v39, 16  ;;  %v2184_v16 = vld [vmem:[%s2639_s8 + $0x40] sm:$0xf] }
  0x3a   : > { %1439 = vmatpush.bf16.msrb.mxu2 %v2473_v44  ;;  %v2883_v44 = vld [vmem:[%s2639_s8 + $0x1c] sm:$0x1]  ;;  %v745_v29 = vsel %vm2686_vm5, %v2080_v19, %v744_v20  ;;  %v2477_v19 = vld [vmem:[%s3236_s1 + $0x1c0] sm:$0xff]  ;;  %v1073_v20 = vshll.u32 %v2182_v0, 16 }
  0x3b   : > { %1668 = vmatpush.bf16.msrb.mxu3 %v2481_v21  ;;  %v2081_v21 = vrot.slane %v698_v5, 9  ;;  %v1048_v50 = vor.u32 %v1047_v27, %v1044_v26  ;;  %v2975_v5 = vld [vmem:[%s2639_s8 + $0x14] sm:$0x1]  ;;  %v1067_v15 = vrot.slane %v1065_v59, 5 }
  0x3c   : > { %584 = vmatmul.bf16.gmra.mxu1 %v508_v60  ;;  %574 = vmatmul.bf16.gmra.mxu0 %v506_v61  ;;  %v760_v60 = vpack.c.b16 %v755_v43, %v754_v42  ;;  %v2132_v61 = vld [vmem:[%s2639_s8 + $0x28] sm:$0xf]  ;;  %v2494_v42 = vld [vmem:[%s2639_s8 + $0x14] sm:$0xf0]  ;;  %v756_v43 = vunpack.c.l.b16 %v745_v29  ;;  %v2997_v27 = vld [vmem:[%s3236_s1 + $0x210] sm:$0xff] }
  0x3d   : > { %666 = vmatpush.bf16.msrb.mxu1 %v2424_v55  ;;  %1165 = vmatpush.bf16.msrb.mxu0 %v2456_v58  ;;  %v1105_v55 = vpack.c.b16 %v1098_v41, %v1097_v40  ;;  %v1023_v58 = vshll.u32 %v2883_v44, 16  ;;  %v2322_v40 = vld [vmem:[%s2639_s8 + $0x10] sm:$0xf]  ;;  %v1049_v4 = vrot.slane %v1048_v50, 4  ;;  %v2218_v29 = vld [vmem:[%s2639_s8 + $0x8] sm:$0xe] }
  0x3e   : > { %1440 = vmatpush.bf16.msrb.mxu2 %v2472_v17  ;;  %945 = vmatmul.bf16.gmra.mxu3 %v2129_v8  ;;  %v2479_v17 = vld [vmem:[%s3236_s1 + $0x1d0] sm:$0xff] }
  0x3f   : > { %827 = vmatmul.bf16.gmra.mxu2 %v759_v2  ;;  %1669 = vmatpush.bf16.msrb.mxu3 %v2480_v24  ;;  %v2466_v2 = vld [vmem:[%s3236_s1 + $0x168] sm:$0xff]  ;;  %v1025_v8 = vrot.slane %v1023_v58, 5  ;;  %v1059_v24 = vshll.u32 %v2180_v11, 16  ;;  %v2032_v41 = vld [vmem:[%s2639_s8 + $0x10] sm:$0xf] }
  0x41   : > { %667 = vmatpush.bf16.msrb.mxu1 %v2423_v6  ;;  %1166 = vmatpush.bf16.msrb.mxu0 %v2455_v7  ;;  %v2470_v6 = vld [vmem:[%s3236_s1 + $0x188] sm:$0xff]  ;;  %v2133_v7 = vor.u32 %v2499_v62, %v2132_v61  ;;  %v1061_v35 = vrot.slane %v1059_v24, 5  ;;  %v2033_v61 = vor.u32 %v2494_v42, %v2032_v41  ;;  %v3010_v42 = vld [vmem:[%s2639_s8 + $0x3c] sm:$0x1] }
  0x42   : > { %1441 = vmatpush.bf16.msrb.mxu2 %v2471_v23  ;;  %v1056_v23 = vshrl.u32 %v2180_v11, 16 }
  0x43   : > { %1670 = vmatpush.bf16.msrb.mxu3 %v2479_v17  ;;  %v1070_v17 = vshrl.u32 %v2182_v0, 16 }
  0x45   : > { %668 = vmatpush.bf16.msrb.mxu1 %v2422_v10  ;;  %1167 = vmatpush.bf16.msrb.mxu0 %v2454_v12  ;;  %v748_v10 = vrot.slane %v2736_v36, 5  ;;  %v2465_v12 = vld [vmem:[%s3236_s1 + $0x160] sm:$0xff]  ;;  %v1026_v36 = vsel %vm2677_vm4, %v1021_v13, %v1025_v8 }
  0x46   : > { %1442 = vmatpush.bf16.msrb.mxu2 %v2470_v6  ;;  %v1053_v6 = vrot.slane %v1051_v52, 5 }
  0x47   : > { %v749_v30 = vsel %vm2686_vm5, %v2081_v21, %v748_v10  ;;  %1671 = vmatpush.bf16.msrb.mxu3 %v2478_v32  ;;  %v1499_v10 = vshll.u32 %v2975_v5, 16  ;;  %v1228_v32 = vrot.slane %v2824_v56, 5  ;;  %v1072_v56 = vrot.slane %v1070_v17, 4 }
  0x48   : > { %v757_v48 = vunpack.c.l.b16 %v749_v30 }
  0x49   : > { %669 = vmatpush.bf16.msrb.mxu1 %v2421_v34  ;;  %1168 = vmatpush.bf16.msrb.mxu0 %v2453_v38  ;;  %v1058_v34 = vrot.slane %v1056_v23, 4  ;;  %v1100_v38 = vunpack.c.l.b16 %v1040_v25  ;;  %v1224_v23 = vrot.slane %v2818_v47, 5  ;;  %v1087_v25 = vshll.u32 %v2184_v16, 16 }
  0x4a   : > { %1443 = vmatpush.bf16.msrb.mxu2 %v2469_v22  ;;  %v761_v3 = vpack.c.b16 %v757_v48, %v756_v43  ;;  %v1054_v47 = vsel %vm2677_vm4, %v1049_v4, %v1053_v6  ;;  %v2276_v4 = vld [vmem:[%s2639_s8 + $0x10] sm:$0xf] }
  0x4b   : > { %v1062_v58 = vor.u32 %v1061_v35, %v1058_v34  ;;  %1672 = vmatpush.bf16.msrb.mxu3 %v2477_v19  ;;  %v2219_v34 = vld [vmem:[%s2639_s8 + $0x10] sm:$0xe]  ;;  %v2226_v35 = vrot.slane %v2218_v29, 9  ;;  %v1089_v52 = vrot.slane %v1087_v25, 5 }
  0x4c   : > { %670 = vmatmul.bf16.vlgmr.msrb.gmra.mxu1 %v2029_v54  ;;  %1169 = vmatmul.bf16.vlgmr.msrb.gmra.mxu0 %v1105_v55  ;;  %v1493_v54 = vshll.u32 %v2322_v40, 16  ;;  %v1504_v55 = vshrl.u32 %v2324_v51, 16  ;;  %v2227_v41 = vrot.slane %v2219_v34, 9  ;;  %v2485_v34 = vld [vmem:[%s3236_s1 + $0x200] sm:$0xff] }
  0x4d   : > { %1318 = vmatpush.bf16.msra.mxu1 %v2468_v37  ;;  %1822 = vmatpush.bf16.msra.mxu0 %v2888_v45  ;;  %v1099_v37 = vunpack.c.l.b16 %v1026_v36  ;;  %v1063_v14 = vrot.slane %v1062_v58, 4  ;;  %v1084_v36 = vshrl.u32 %v2184_v16, 16  ;;  %v1225_v50 = vsel %vm2686_vm5, %v2226_v35, %v1224_v23  ;;  %v3042_v23 = vld [vmem:[%s2639_s8 + $0x2c] sm:$0x1] }
  0x4e   : > { %950 = vmatmul.bf16.gmra.mxu3 %v2133_v7  ;;  %2513 = vmatpush.bf16.msra.mxu2 %v2888_v45  ;;  %v2136_v45 = vld [vmem:[%s2639_s8 + $0x38] sm:$0xf]  ;;  %v2978_v7 = vld [vmem:[%s2639_s8 + $0x1c] sm:$0x1]  ;;  %v1495_v9 = vrot.slane %v1493_v54, 5  ;;  %v1506_v11 = vrot.slane %v1504_v55, 4  ;;  %v1254_v54 = vunpack.c.l.b16 %v1225_v50  ;;  %v1101_v58 = vunpack.c.l.b16 %v1054_v47 }
  0x4f   : > { %832 = vmatmul.bf16.gmra.mxu2 %v760_v60  ;;  %v2463_v60 = vld [vmem:[%s3236_s1 + $0x150] sm:$0xff]  ;;  %v1106_v62 = vpack.c.b16 %v1100_v38, %v1099_v37  ;;  %v2137_v13 = vor.u32 %v2500_v63, %v2136_v45  ;;  %v1513_v24 = vshll.u32 %v2978_v7, 16  ;;  %v1068_v30 = vsel %vm2677_vm4, %v1063_v14, %v1067_v15  ;;  %v2036_v55 = vld [vmem:[%s2639_s8 + $0x20] sm:$0xf]  ;;  %v2495_v45 = vld [vmem:[%s2639_s8 + $0x24] sm:$0xf0] }
  0x50   : > { %v1075_v37 = vrot.slane %v1073_v20, 5  ;;  %v1102_v59 = vunpack.c.l.b16 %v1068_v30  ;;  %v1079_v63 = vshll.u32 %v3010_v42, 16  ;;  %v2037_v17 = vor.u32 %v2495_v45, %v2036_v55  ;;  %v2040_v55 = vld [vmem:[%s2639_s8 + $0x30] sm:$0xf] }
  0x51   : > { %1319 = vmatpush.bf16.msra.mxu1 %v2467_v53  ;;  %1823 = vmatpush.bf16.msra.mxu0 %v2904_v1  ;;  %v1490_v53 = vshrl.u32 %v2322_v40, 16  ;;  %v1501_v40 = vrot.slane %v1499_v10, 5  ;;  %v1515_v48 = vrot.slane %v1513_v24, 5 }
  0x52   : > { %2514 = vmatpush.bf16.msra.mxu2 %v2904_v1  ;;  %v2462_v1 = vld [vmem:[%s3236_s1 + $0x148] sm:$0xff] }
  0x53   : > { %v1492_v8 = vrot.slane %v1490_v53, 4  ;;  %v1229_v53 = vsel %vm2686_vm5, %v2227_v41, %v1228_v32 }
  0x55   : > { %1320 = vmatpush.bf16.msra.mxu1 %v2466_v2  ;;  %1824 = vmatpush.bf16.msra.mxu0 %v2923_v18  ;;  %v1507_v2 = vshll.u32 %v2324_v51, 16  ;;  %v1496_v21 = vor.u32 %v1495_v9, %v1492_v8  ;;  %v1086_v51 = vrot.slane %v1084_v36, 4 }
  0x56   : > { %2515 = vmatpush.bf16.msra.mxu2 %v2923_v18  ;;  %v2486_v18 = vld [vmem:[%s3236_s1 + $0x208] sm:$0xff] }
  0x57   : > { %v1509_v22 = vrot.slane %v1507_v2, 5  ;;  %v1497_v38 = vrot.slane %v1496_v21, 4  ;;  %v2326_v2 = vld [vmem:[%s2639_s8 + $0x20] sm:$0xf] }
  0x58   : > { %v1518_v9 = vshrl.u32 %v2326_v2, 16 }
  0x59   : > { %1321 = vmatpush.bf16.msra.mxu1 %v2465_v12  ;;  %1825 = vmatpush.bf16.msra.mxu0 %v2944_v28  ;;  %v2488_v12 = vld [vmem:[%s3236_s1 + $0x218] sm:$0xff]  ;;  %v1510_v26 = vor.u32 %v1509_v22, %v1506_v11  ;;  %v1502_v0 = vsel %vm2677_vm4, %v1497_v38, %v1501_v40  ;;  %v1521_v11 = vshll.u32 %v2326_v2, 16  ;;  %v3039_v22 = vld [vmem:[%s2639_s8 + $0x24] sm:$0x1]  ;;  %v2221_v38 = vld [vmem:[%s2639_s8 + $0x20] sm:$0xe] }
  0x5a   : > { %2516 = vmatpush.bf16.msra.mxu2 %v2944_v28  ;;  %v1090_v28 = vor.u32 %v1089_v52, %v1086_v51  ;;  %v1520_v19 = vrot.slane %v1518_v9, 4  ;;  %v1601_v21 = vunpack.c.l.b16 %v1502_v0  ;;  %v1232_v52 = vrot.slane %v2883_v44, 5 }
  0x5b   : > { %v1511_v43 = vrot.slane %v1510_v26, 4  ;;  %v1523_v20 = vrot.slane %v1521_v11, 5  ;;  %v1081_v26 = vrot.slane %v1079_v63, 5  ;;  %v2370_v63 = vld [vmem:[%s2639_s8 + $0x10] sm:$0xe] }
  0x5c   : > { %675 = vmatmul.bf16.gmra.mxu1 %v2033_v61  ;;  %1174 = vmatmul.bf16.gmra.mxu0 %v1106_v62  ;;  %v1255_v61 = vunpack.c.l.b16 %v1229_v53  ;;  %v1076_v62 = vor.u32 %v1075_v37, %v1072_v56  ;;  %v1091_v29 = vrot.slane %v1090_v28, 4  ;;  %v1527_v56 = vshll.u32 %v3039_v22, 16  ;;  %v2220_v37 = vld [vmem:[%s2639_s8 + $0x18] sm:$0xe] }
  0x5d   : > { %1322 = vmatpush.bf16.msra.mxu1 %v2464_v31  ;;  %1826 = vmatpush.bf16.msra.mxu0 %v2488_v12  ;;  %v2461_v31 = vld [vmem:[%s3236_s1 + $0x140] sm:$0xff]  ;;  %v1516_v6 = vsel %vm2677_vm4, %v1511_v43, %v1515_v48  ;;  %v1524_v30 = vor.u32 %v1523_v20, %v1520_v19  ;;  %v2228_v50 = vrot.slane %v2220_v37, 9  ;;  %v2229_v53 = vrot.slane %v2221_v38, 9 }
  0x5e   : > { %955 = vmatmul.bf16.gmra.mxu3 %v2137_v13  ;;  %v3034_v8 = vpack.c.b16 %v1255_v61, %v1254_v54  ;;  %v2501_v13 = vld [vmem:[%s2639_s8 + $0x14] sm:$0xf0]  ;;  %2517 = vmatpush.bf16.msra.mxu2 %v2488_v12  ;;  %v1602_v10 = vunpack.c.l.b16 %v1516_v6  ;;  %v1077_v25 = vrot.slane %v1076_v62, 4  ;;  %v1541_v12 = vshll.u32 %v3042_v23, 16 }
  0x5f   : > { %837 = vmatmul.bf16.gmra.mxu2 %v761_v3  ;;  %v2328_v3 = vld [vmem:[%s2639_s8 + $0x28] sm:$0xf]  ;;  %v2277_v36 = vor.u32 %v2501_v13, %v2276_v4  ;;  %v1529_v43 = vrot.slane %v1527_v56, 5  ;;  %v1236_v54 = vrot.slane %v2891_v46, 5  ;;  %v1728_v62 = vrot.slane %v2975_v5, 5 }
  0x60   : > { %v1532_v15 = vshrl.u32 %v2328_v3, 16  ;;  %v1535_v16 = vshll.u32 %v2328_v3, 16  ;;  %v1082_v40 = vsel %vm2677_vm4, %v1077_v25, %v1081_v26  ;;  %v1543_v48 = vrot.slane %v1541_v12, 5  ;;  %v2371_v3 = vld [vmem:[%s2639_s8 + $0x18] sm:$0xe] }
  0x61   : > { %1323 = vmatpush.bf16.msra.mxu1 %v2463_v60  ;;  %1827 = vmatpush.bf16.msra.mxu0 %v2997_v27  ;;  %v3023_v60 = vld [vmem:[%s2639_s8 + $0x44] sm:$0x1]  ;;  %v1103_v45 = vunpack.c.l.b16 %v1082_v40  ;;  %v1237_v61 = vsel %vm2686_vm5, %v2229_v53, %v1236_v54  ;;  %v2330_v4 = vld [vmem:[%s2639_s8 + $0x30] sm:$0xf]  ;;  %v2332_v6 = vld [vmem:[%s2639_s8 + $0x38] sm:$0xf] }
  0x62   : > { %v1093_v14 = vshll.u32 %v3023_v60, 16  ;;  %v1534_v24 = vrot.slane %v1532_v15, 4  ;;  %v1537_v32 = vrot.slane %v1535_v16, 5  ;;  %2518 = vmatpush.bf16.msra.mxu2 %v2997_v27  ;;  %v1525_v27 = vrot.slane %v1524_v30, 4  ;;  %v2280_v16 = vld [vmem:[%s2639_s8 + $0x20] sm:$0xf] }
  0x63   : > { %v1257_v0 = vunpack.c.l.b16 %v1237_v61  ;;  %v1546_v11 = vshrl.u32 %v2330_v4, 16  ;;  %v1549_v13 = vshll.u32 %v2330_v4, 16  ;;  %v1560_v5 = vshrl.u32 %v2332_v6, 16  ;;  %v2222_v53 = vld [vmem:[%s2639_s8 + $0x28] sm:$0xe] }
  0x64   : > { %v1095_v47 = vrot.slane %v1093_v14, 5  ;;  %v1538_v35 = vor.u32 %v1537_v32, %v1534_v24  ;;  %v1530_v46 = vsel %vm2677_vm4, %v1525_v27, %v1529_v43  ;;  %v1732_v15 = vrot.slane %v2978_v7, 5  ;;  %v2223_v54 = vld [vmem:[%s2639_s8 + $0x30] sm:$0xe]  ;;  %v2372_v4 = vld [vmem:[%s2639_s8 + $0x20] sm:$0xe] }
  0x65   : > { %1324 = vmatpush.bf16.msra.mxu1 %v2462_v1  ;;  %1828 = vmatpush.bf16.msra.mxu0 %v2486_v18  ;;  %v1107_v1 = vpack.c.b16 %v1102_v59, %v1101_v58  ;;  %v1233_v59 = vsel %vm2686_vm5, %v2228_v50, %v1232_v52  ;;  %v1603_v19 = vunpack.c.l.b16 %v1530_v46  ;;  %v1548_v24 = vrot.slane %v1546_v11, 4  ;;  %v2284_v50 = vld [vmem:[%s2639_s8 + $0x30] sm:$0xf]  ;;  %v2373_v11 = vld [vmem:[%s2639_s8 + $0x28] sm:$0xe] }
  0x66   : > { %v1096_v41 = vsel %vm2677_vm4, %v1091_v29, %v1095_v47  ;;  %2519 = vmatpush.bf16.msra.mxu2 %v2486_v18  ;;  %v1539_v51 = vrot.slane %v1538_v35, 4  ;;  %v2496_v18 = vld [vmem:[%s2639_s8 + $0x34] sm:$0xf0]  ;;  %v1256_v44 = vunpack.c.l.b16 %v1233_v59  ;;  %v1551_v32 = vrot.slane %v1549_v13, 5  ;;  %v3079_v29 = vld [vmem:[%s2639_s8 + $0x34] sm:$0x1] }
  0x67   : > { %v1104_v58 = vunpack.c.l.b16 %v1096_v41  ;;  %v2041_v28 = vor.u32 %v2496_v18, %v2040_v55  ;;  %v3082_v47 = vld [vmem:[%s2639_s8 + $0x3c] sm:$0x1]  ;;  %v2334_v55 = vld [vmem:[%s2639_s8 + $0x40] sm:$0xf]  ;;  %v2231_v59 = vrot.slane %v2223_v54, 9  ;;  %v1244_v61 = vrot.slane %v2957_v39, 5 }
  0x68   : > { %v1544_v2 = vsel %vm2677_vm4, %v1539_v51, %v1543_v48  ;;  %v3073_v9 = vpack.c.b16 %v1257_v0, %v1256_v44  ;;  %v1552_v12 = vor.u32 %v1551_v32, %v1548_v24  ;;  %v1569_v35 = vshll.u32 %v3082_v47, 16  ;;  %v2336_v18 = vld [vmem:[%s2639_s8 + $0x48] sm:$0xf] }
  0x69   : > { %1325 = vmatpush.bf16.msra.mxu1 %v2461_v31  ;;  %v1609_v31 = vpack.c.b16 %v1602_v10, %v1601_v21  ;;  %1829 = vmatpush.bf16.msra.mxu0 %v2485_v34  ;;  %v1108_v14 = vpack.c.b16 %v1104_v58, %v1103_v45  ;;  %v1604_v20 = vunpack.c.l.b16 %v1544_v2  ;;  %v2378_v21 = vrot.slane %v2370_v63, 9 }
  0x6a   : > { %2520 = vmatpush.bf16.msra.mxu2 %v2485_v34  ;;  %v2379_v10 = vrot.slane %v2371_v3, 9  ;;  %v1553_v40 = vrot.slane %v1552_v12, 4  ;;  %v1571_v43 = vrot.slane %v1569_v35, 5  ;;  %v2230_v45 = vrot.slane %v2222_v53, 9 }
  0x6b   : > { %v1610_v30 = vpack.c.b16 %v1604_v20, %v1603_v19  ;;  %v1729_v7 = vsel %vm2686_vm5, %v2378_v21, %v1728_v62  ;;  %v1240_v58 = vrot.slane %v2954_v33, 5  ;;  %v2503_v62 = vld [vmem:[%s2639_s8 + $0x34] sm:$0xf0]  ;;  %v1574_v63 = vshrl.u32 %v2334_v55, 16 }
  0x6c   : > { %680 = vmatmul.bf16.gmra.mxu1 %v2037_v17  ;;  %1179 = vmatmul.bf16.gmra.mxu0 %v1107_v1  ;;  %v2502_v17 = vld [vmem:[%s2639_s8 + $0x24] sm:$0xf0]  ;;  %v1563_v1 = vshll.u32 %v2332_v6, 16  ;;  %v1733_v56 = vsel %vm2686_vm5, %v2379_v10, %v1732_v15  ;;  %v1758_v37 = vunpack.c.l.b16 %v1729_v7  ;;  %v1577_v44 = vshll.u32 %v2334_v55, 16  ;;  %v3109_v15 = vld [vmem:[%s2639_s8 + $0x44] sm:$0x1] }
  0x6d   : > { %v2281_v26 = vor.u32 %v2502_v17, %v2280_v16  ;;  %v1759_v38 = vunpack.c.l.b16 %v1733_v56  ;;  %v1588_v0 = vshrl.u32 %v2336_v18, 16  ;;  %v1591_v46 = vshll.u32 %v2336_v18, 16  ;;  %v3112_v16 = vld [vmem:[%s2639_s8 + $0x4c] sm:$0x1] }
  0x6e   : > { %1673 = vmatmul.bf16.vlgmr.msrb.gmra.mxu3 %v1609_v31  ;;  %v1565_v25 = vrot.slane %v1563_v1, 5  ;;  %v1555_v31 = vshll.u32 %v3079_v29, 16  ;;  %v1241_v6 = vsel %vm2686_vm5, %v2230_v45, %v1240_v58  ;;  %v1245_v33 = vsel %vm2686_vm5, %v2231_v59, %v1244_v61  ;;  %v2375_v61 = vld [vmem:[%s2639_s8 + $0x38] sm:$0xe] }
  0x6f   : > { %1444 = vmatmul.bf16.vlgmr.msrb.gmra.mxu2 %v2277_v36  ;;  %v1562_v36 = vrot.slane %v1560_v5, 4  ;;  %v1766_v48 = vpack.c.b16 %v1759_v38, %v1758_v37  ;;  %v1258_v13 = vunpack.c.l.b16 %v1241_v6  ;;  %v1259_v39 = vunpack.c.l.b16 %v1245_v33  ;;  %v2224_v38 = vld [vmem:[%s2639_s8 + $0x38] sm:$0xe] }
  0x70   : > { %v1557_v41 = vrot.slane %v1555_v31, 5  ;;  %v1576_v5 = vrot.slane %v1574_v63, 4  ;;  %v1590_v17 = vrot.slane %v1588_v0, 4  ;;  %v1593_v1 = vrot.slane %v1591_v46, 5  ;;  %v2377_v63 = vld [vmem:[%s2639_s8 + $0x48] sm:$0xe] }
  0x71   : > { %v1566_v34 = vor.u32 %v1565_v25, %v1562_v36  ;;  %v2380_v19 = vrot.slane %v2372_v4, 9  ;;  %v3114_v20 = vpack.c.b16 %v1259_v39, %v1258_v13  ;;  %v1736_v10 = vrot.slane %v3039_v22, 5 }
  0x72   : > { %v1558_v51 = vsel %vm2677_vm4, %v1553_v40, %v1557_v41  ;;  %v2381_v24 = vrot.slane %v2373_v11, 9  ;;  %v1740_v32 = vrot.slane %v3042_v23, 5  ;;  %v1583_v25 = vshll.u32 %v3109_v15, 16  ;;  %v2225_v40 = vld [vmem:[%s2639_s8 + $0x40] sm:$0xe] }
  0x73   : > { %v1567_v27 = vrot.slane %v1566_v34, 4  ;;  %v1605_v2 = vunpack.c.l.b16 %v1558_v51  ;;  %v1737_v7 = vsel %vm2686_vm5, %v2380_v19, %v1736_v10  ;;  %v2232_v41 = vrot.slane %v2224_v38, 9  ;;  %v2504_v51 = vld [vmem:[%s2639_s8 + $0x44] sm:$0xf0] }
  0x74   : > { %v1741_v22 = vsel %vm2686_vm5, %v2381_v24, %v1740_v32  ;;  %v1585_v23 = vrot.slane %v1583_v25, 5  ;;  %v1760_v31 = vunpack.c.l.b16 %v1737_v7  ;;  %v1744_v0 = vrot.slane %v3079_v29, 5 }
  0x75   : > { %v1572_v52 = vsel %vm2677_vm4, %v1567_v27, %v1571_v43  ;;  %v1761_v34 = vunpack.c.l.b16 %v1741_v22  ;;  %v1248_v27 = vrot.slane %v3010_v42, 5  ;;  %v2233_v43 = vrot.slane %v2225_v40, 9  ;;  %v2374_v42 = vld [vmem:[%s2639_s8 + $0x30] sm:$0xe] }
  0x76   : > { %v1606_v3 = vunpack.c.l.b16 %v1572_v52  ;;  %v2383_v46 = vrot.slane %v2375_v61, 9  ;;  %v1756_v4 = vrot.slane %v3112_v16, 5  ;;  %v2385_v33 = vrot.slane %v2377_v63, 9 }
  0x77   : > { %v1767_v52 = vpack.c.b16 %v1761_v34, %v1760_v31  ;;  %v1249_v53 = vsel %vm2686_vm5, %v2232_v41, %v1248_v27 }
  0x78   : > { %v1611_v21 = vpack.c.b16 %v1606_v3, %v1605_v2  ;;  %v1260_v45 = vunpack.c.l.b16 %v1249_v53  ;;  %v1748_v2 = vrot.slane %v3082_v47, 5  ;;  %v1752_v3 = vrot.slane %v3109_v15, 5 }
  0x79   : > { %v1757_v29 = vsel %vm2686_vm5, %v2385_v33, %v1756_v4 }
  0x7c   : > { %685 = vmatmul.bf16.gmra.mxu1 %v2041_v28  ;;  %1184 = vmatmul.bf16.gmra.mxu0 %v1108_v14  ;;  %v1579_v28 = vrot.slane %v1577_v44, 5  ;;  %v2285_v14 = vor.u32 %v2503_v62, %v2284_v50  ;;  %v2288_v50 = vld [vmem:[%s2639_s8 + $0x40] sm:$0xf]  ;;  %v2382_v44 = vrot.slane %v2374_v42, 9 }
  0x7d   : > { %v2289_v59 = vor.u32 %v2504_v51, %v2288_v50  ;;  %v2376_v62 = vld [vmem:[%s2639_s8 + $0x40] sm:$0xe]  ;;  %s2420_s8 = sshll.u32 %s3248_s12, 6 }
  0x7e   : > { %1678 = vmatmul.bf16.gmra.mxu3 %v1610_v30  ;;  %v1580_v36 = vor.u32 %v1579_v28, %v1576_v5  ;;  %v1597_v30 = vshll.u32 %v3112_v16, 16  ;;  %v2384_v6 = vrot.slane %v2376_v62, 9  ;;  %v1745_v11 = vsel %vm2686_vm5, %v2382_v44, %v1744_v0  ;;  %s3194_s9 = scalar_lea.vmem %s3238_s3, %s2420_s8 }
  0x7f   : > { %1449 = vmatmul.bf16.gmra.mxu2 %v2281_v26  ;;  %v1594_v26 = vor.u32 %v1593_v1, %v1590_v17  ;;  %v1762_v47 = vunpack.c.l.b16 %v1745_v11  ;;  %v1765_v28 = vunpack.c.l.b16 %v1757_v29 }
  0x80   : > { %v1599_v12 = vrot.slane %v1597_v30, 5  ;;  %v1753_v13 = vsel %vm2686_vm5, %v2384_v6, %v1752_v3 }
  0x81   : > { %v1595_v56 = vrot.slane %v1594_v26, 4  ;;  %v1764_v5 = vunpack.c.l.b16 %v1753_v13 }
  0x83   : > { %v1600_v37 = vsel %vm2677_vm4, %v1595_v56, %v1599_v12  ;;  %v1769_v17 = vpack.c.b16 %v1765_v28, %v1764_v5 }
  0x84   : > { %v1608_v55 = vunpack.c.l.b16 %v1600_v37 }
  0x8c   : > { %1326 = vmatmul.bf16.vlgmr.msra.gmra.mxu1 %v3034_v8  ;;  %1830 = vmatmul.bf16.vlgmr.msra.gmra.mxu0 %v1766_v48  ;;  %v1581_v8 = vrot.slane %v1580_v36, 4  ;;  %v1252_v48 = vrot.slane %v3023_v60, 5 }
  0x8e   : > { %1683 = vmatmul.bf16.gmra.mxu3 %v1611_v21  ;;  %v1586_v35 = vsel %vm2677_vm4, %v1581_v8, %v1585_v23  ;;  %v1253_v49 = vsel %vm2686_vm5, %v2233_v43, %v1252_v48 }
  0x8f   : > { %1454 = vmatmul.bf16.gmra.mxu2 %v2285_v14  ;;  %v1607_v54 = vunpack.c.l.b16 %v1586_v35  ;;  %v1261_v58 = vunpack.c.l.b16 %v1253_v49 }
  0x91   : > { %v1265_v18 = vpack.c.b16 %v1261_v58, %v1260_v45  ;;  %v1612_v60 = vpack.c.b16 %v1608_v55, %v1607_v54 }
  0x9c   : > { %1331 = vmatmul.bf16.gmra.mxu1 %v3073_v9  ;;  %1835 = vmatmul.bf16.gmra.mxu0 %v1767_v52  ;;  %v1749_v9 = vsel %vm2686_vm5, %v2383_v46, %v1748_v2 }
  0x9d   : > { %v1763_v39 = vunpack.c.l.b16 %v1749_v9 }
  0x9e   : > { %1688 = vmatmul.bf16.gmra.mxu3 %v1612_v60 }
  0x9f   : > { %1459 = vmatmul.bf16.gmra.mxu2 %v2289_v59  ;;  %v1768_v14 = vpack.c.b16 %v1763_v39, %v1762_v47 }
  0xa9   : > { %v580_v15 = vpop.f32.mrf.mxu1  ;;  %v570_v16 = vpop.f32.mrf.mxu0 }
  0xac   : > { %1336 = vmatmul.bf16.gmra.mxu1 %v3114_v20  ;;  %1840 = vmatmul.bf16.gmra.mxu0 %v1768_v14 }
  0xaf   : > { %1845 = vmatmul.bf16.vlgmr.msra.gmra.mxu2 %v1769_v17 }
  0xb1   : > { %v582_v19 = vpop.f32.mrf.mxu1  ;;  %v572_v21 = vpop.f32.mrf.mxu0 }
  0xb2   : > { %v823_v1 = vpop.f32.mrf.mxu2  ;;  %v941_v10 = vpop.f32.mrf.mxu3 }
  0xb9   : > { %v585_v32 = vpop.f32.mrf.mxu1  ;;  %v575_v57 = vpop.f32.mrf.mxu0 }
  0xba   : > { %v825_v24 = vpop.f32.mrf.mxu2  ;;  %v943_v36 = vpop.f32.mrf.mxu3 }
  0xbc   : > { %1341 = vmatmul.bf16.gmra.mxu1 %v1265_v18 }
  0xc1   : > { %v587_v26 = vpop.f32.mrf.mxu1  ;;  %v577_v30 = vpop.f32.mrf.mxu0 }
  0xc2   : > { %v828_v25 = vpop.f32.mrf.mxu2  ;;  %v3157_v7 = vpop.f32.mrf.mxu3 }
  0xc9   : > { %v671_v8 = vpop.f32.mrf.mxu1  ;;  %v1170_v23 = vpop.f32.mrf.mxu0 }
  0xca   : > { %v830_v22 = vpop.f32.mrf.mxu2  ;;  %v672_v20 = vadd.f32 %v671_v8, %v570_v16  ;;  %v3159_v12 = vpop.f32.mrf.mxu3 }
  0xcc   : > { %v843_v56 = vadd.f32 %v823_v1, %v672_v20 }
  0xce   : > { %v961_v39 = vadd.f32 %v941_v10, %v843_v56 }
  0xd0   : > { %v1190_v28 = vadd.f32 %v1170_v23, %v961_v39 }
  0xd1   : > { %v673_v34 = vpop.f32.mrf.mxu1  ;;  %v1172_v35 = vpop.f32.mrf.mxu0 }
  0xd2   : > { %v833_v31 = vpop.f32.mrf.mxu2  ;;  %v674_v37 = vadd.f32 %v673_v34, %v572_v21  ;;  %v3161_v40 = vpop.f32.mrf.mxu3 }
  0xd4   : > { %v844_v38 = vadd.f32 %v825_v24, %v674_v37 }
  0xd9   : > { %v676_v27 = vpop.f32.mrf.mxu1  ;;  %v1175_v43 = vpop.f32.mrf.mxu0 }
  0xda   : > { %v835_v41 = vpop.f32.mrf.mxu2  ;;  %v677_v48 = vadd.f32 %v676_v27, %v575_v57  ;;  %v3163_v52 = vpop.f32.mrf.mxu3 }
  0xdc   : > { %v845_v50 = vadd.f32 %v828_v25, %v677_v48 }
  0xde   : > { %v963_v8 = vadd.f32 %v3157_v7, %v845_v50 }
  0xe1   : > { %v678_v53 = vpop.f32.mrf.mxu1  ;;  %v3165_v49 = vpop.f32.mrf.mxu0 }
  0xe2   : > { %v838_v51 = vpop.f32.mrf.mxu2  ;;  %v679_v54 = vadd.f32 %v678_v53, %v577_v30  ;;  %v3169_v61 = vpop.f32.mrf.mxu3 }
  0xe4   : > { %v846_v55 = vadd.f32 %v830_v22, %v679_v54 }
  0xe6   : > { %v964_v27 = vadd.f32 %v3159_v12, %v846_v55 }
  0xe8   : > { %v1193_v7 = vadd.f32 %v3165_v49, %v964_v27 }
  0xe9   : > { %v681_v58 = vpop.f32.mrf.mxu1  ;;  %v3167_v59 = vpop.f32.mrf.mxu0 }
  0xea   : > { %v840_v45 = vpop.f32.mrf.mxu2  ;;  %v682_v42 = vadd.f32 %v681_v58, %v580_v15  ;;  %v3175_v46 = vpop.f32.mrf.mxu3 }
  0xec   : > { %v847_v18 = vadd.f32 %v833_v31, %v682_v42  ;;  %v1192_v31 = vadd.f32 %v1175_v43, %v963_v8 }
  0xf1   : > { %v683_v63 = vpop.f32.mrf.mxu1  ;;  %v3171_v60 = vpop.f32.mrf.mxu0 }
  0xf2   : > { %v1445_v62 = vpop.f32.mrf.mxu2  ;;  %v684_v44 = vadd.f32 %v683_v63, %v582_v19  ;;  %v1674_v11 = vpop.f32.mrf.mxu3  ;;  %v962_v19 = vadd.f32 %v943_v36, %v844_v38 }
  0xf4   : > { %v3173_v0 = vadd.f32 %v835_v41, %v684_v44  ;;  %v1191_v57 = vadd.f32 %v1172_v35, %v962_v19 }
  0xf9   : > { %v686_v3 = vpop.f32.mrf.mxu1  ;;  %v3177_v4 = vpop.f32.mrf.mxu0 }
  0xfa   : > { %v1447_v2 = vpop.f32.mrf.mxu2  ;;  %v687_v6 = vadd.f32 %v686_v3, %v585_v32  ;;  %v1676_v14 = vpop.f32.mrf.mxu3  ;;  %v3189_v32 = vld [vmem:[%s3237_s2] ss:$0 sm:$0xff] }
  0xfc   : > { %v3179_v33 = vadd.f32 %v838_v51, %v687_v6 }
 0x101   : > { %v688_v13 = vpop.f32.mrf.mxu1  ;;  %v3181_v29 = vpop.f32.mrf.mxu0 }
 0x102   : > { %v1450_v9 = vpop.f32.mrf.mxu2  ;;  %v689_v47 = vadd.f32 %v688_v13, %v587_v26  ;;  %v1679_v22 = vpop.f32.mrf.mxu3  ;;  %v966_v13 = vadd.f32 %v3163_v52, %v3173_v0 }
 0x104   : > { %v3183_v5 = vadd.f32 %v840_v45, %v689_v47 }
 0x109   : > { %v1327_v15 = vpop.f32.mrf.mxu1  ;;  %v1831_v16 = vpop.f32.mrf.mxu0 }
 0x10a   : > { %v1347_v17 = vadd.f32 %v1327_v15, %v1190_v28  ;;  %v1452_v1 = vpop.f32.mrf.mxu2  ;;  %v1681_v51 = vpop.f32.mrf.mxu3 }
 0x10c   : > { %v1465_v21 = vadd.f32 %v1445_v62, %v1347_v17  ;;  %v965_v62 = vadd.f32 %v3161_v40, %v847_v18  ;;  %v1195_v18 = vadd.f32 %v3171_v60, %v966_v13  ;;  %v967_v17 = vadd.f32 %v3169_v61, %v3179_v33 }
 0x10e   : > { %v1694_v24 = vadd.f32 %v1674_v11, %v1465_v21  ;;  %v1194_v55 = vadd.f32 %v3167_v59, %v965_v62  ;;  %v1196_v0 = vadd.f32 %v3177_v4, %v967_v17 }
 0x110   : > { %v1851_v25 = vadd.f32 %v1831_v16, %v1694_v24 }
 0x111   : > { %v1329_v10 = vpop.f32.mrf.mxu1  ;;  %v1833_v26 = vpop.f32.mrf.mxu0 }
 0x112   : > { %v1863_v36 = vadd.f32 %v3189_v32, %v1851_v25  ;;  %v1348_v30 = vadd.f32 %v1329_v10, %v1191_v57  ;;  %v1455_v20 = vpop.f32.mrf.mxu2  ;;  %v1684_v12 = vpop.f32.mrf.mxu3  ;;  %v968_v10 = vadd.f32 %v3175_v46, %v3183_v5 }
 0x114   : > { %1871 = vst [vmem:[%s3194_s9] sm:$0xff] %v1863_v36  ;;  %v1466_v23 = vadd.f32 %v1447_v2, %v1348_v30  ;;  %v1197_v36 = vadd.f32 %v3181_v29, %v968_v10 }
 0x116   : > { %v1695_v56 = vadd.f32 %v1676_v14, %v1466_v23 }
 0x118   : > { %v1852_v34 = vadd.f32 %v1833_v26, %v1695_v56 }
 0x119   : > { %v1332_v35 = vpop.f32.mrf.mxu1  ;;  %v1836_v37 = vpop.f32.mrf.mxu0 }
 0x11a   : > { %v1864_v38 = vadd.f32 %v3189_v32, %v1852_v34  ;;  %v1349_v41 = vadd.f32 %v1332_v35, %v1192_v31  ;;  %v1457_v54 = vpop.f32.mrf.mxu2  ;;  %v1686_v28 = vpop.f32.mrf.mxu3 }
 0x11c   : > { %1872 = vst [vmem:[%s3194_s9 + $0x8] sm:$0xff] %v1864_v38  ;;  %v1467_v48 = vadd.f32 %v1450_v9, %v1349_v41 }
 0x11e   : > { %v1696_v53 = vadd.f32 %v1679_v22, %v1467_v48 }
 0x120   : > { %v1853_v50 = vadd.f32 %v1836_v37, %v1696_v53 }
 0x121   : > { %v1334_v45 = vpop.f32.mrf.mxu1  ;;  %v1838_v58 = vpop.f32.mrf.mxu0 }
 0x122   : > { %v1865_v43 = vadd.f32 %v3189_v32, %v1853_v50  ;;  %v1350_v42 = vadd.f32 %v1334_v45, %v1193_v7  ;;  %v1460_v3 = vpop.f32.mrf.mxu2  ;;  %v1689_v25 = vpop.f32.mrf.mxu3 }
 0x124   : > { %1873 = vst [vmem:[%s3194_s9 + $0x10] sm:$0xff] %v1865_v43  ;;  %v1468_v63 = vadd.f32 %v1452_v1, %v1350_v42 }
 0x126   : > { %v1697_v44 = vadd.f32 %v1681_v51, %v1468_v63 }
 0x128   : > { %v1854_v2 = vadd.f32 %v1838_v58, %v1697_v44 }
 0x129   : > { %v1337_v6 = vpop.f32.mrf.mxu1  ;;  %v1841_v9 = vpop.f32.mrf.mxu0 }
 0x12a   : > { %v1866_v49 = vadd.f32 %v3189_v32, %v1854_v2  ;;  %v1351_v11 = vadd.f32 %v1337_v6, %v1194_v55  ;;  %v1462_v16 = vpop.f32.mrf.mxu2 }
 0x12c   : > { %1874 = vst [vmem:[%s3194_s9 + $0x18] sm:$0xff] %v1866_v49  ;;  %v1469_v47 = vadd.f32 %v1455_v20, %v1351_v11  ;;  %v1691_v20 = vpop.f32.mrf.mxu3 }
 0x12e   : > { %v1698_v40 = vadd.f32 %v1684_v12, %v1469_v47 }
 0x130   : > { %v1855_v39 = vadd.f32 %v1841_v9, %v1698_v40 }
 0x131   : > { %v1339_v14 = vpop.f32.mrf.mxu1  ;;  %v1843_v19 = vpop.f32.mrf.mxu0 }
 0x132   : > { %v1867_v59 = vadd.f32 %v3189_v32, %v1855_v39  ;;  %v1352_v15 = vadd.f32 %v1339_v14, %v1195_v18  ;;  %v1846_v61 = vpop.f32.mrf.mxu2 }
 0x134   : > { %1875 = vst [vmem:[%s3194_s9 + $0x20] sm:$0xff] %v1867_v59  ;;  %v1470_v1 = vadd.f32 %v1457_v54, %v1352_v15 }
 0x136   : > { %v1699_v52 = vadd.f32 %v1686_v28, %v1470_v1 }
 0x138   : > { %v1856_v21 = vadd.f32 %v1843_v19, %v1699_v52 }
 0x139   : > { %v1342_v60 = vpop.f32.mrf.mxu1 }
 0x13a   : > { %v1868_v24 = vadd.f32 %v3189_v32, %v1856_v21  ;;  %v1353_v57 = vadd.f32 %v1342_v60, %v1196_v0  ;;  %v1848_v31 = vpop.f32.mrf.mxu2 }
 0x13c   : > { %1876 = vst [vmem:[%s3194_s9 + $0x28] sm:$0xff] %v1868_v24  ;;  %v1471_v26 = vadd.f32 %v1460_v3, %v1353_v57 }
 0x13e   : > { %v1700_v33 = vadd.f32 %v1689_v25, %v1471_v26 }
 0x140   : > { %v1857_v30 = vadd.f32 %v1846_v61, %v1700_v33 }
 0x141   : > { %v1344_v22 = vpop.f32.mrf.mxu1 }
 0x142   : > { %v1869_v4 = vadd.f32 %v3189_v32, %v1857_v30  ;;  %v1354_v8 = vadd.f32 %v1344_v22, %v1197_v36 }
 0x144   : > { %1877 = vst [vmem:[%s3194_s9 + $0x30] sm:$0xff] %v1869_v4  ;;  %v1472_v23 = vadd.f32 %v1462_v16, %v1354_v8 }
 0x146   : > { %v1701_v56 = vadd.f32 %v1691_v20, %v1472_v23 }
 0x148   : > { %v1858_v34 = vadd.f32 %v1848_v31, %v1701_v56 }
 0x14a   : > { %v1870_v46 = vadd.f32 %v3189_v32, %v1858_v34 }
 0x14c   : > { %1878 = vst [vmem:[%s3194_s9 + $0x38] sm:$0xff] %v1870_v46 }
 0x14d PF: > { %s13_s14 = sadd.s32 1, %s2569_s14   ;;  %s3243_s12 = smov %s2565_s13 }
 0x14e   : > { %p10_p5 = scmp.ge.s32.totalorder %s13_s14, 4   ;;  %s3244_s13 = smov %s3246_s15 }
 0x150   :  { %12 = sbr.rel (!%p10_p5) target bundleno = 2 (0x2), region = 70 }

</bundles_post_ra>
